<compile_context>
chip_gen: v5e
topology: v5e:2x2
jax: 0.10.0
libtpu: 0.0.40
codegen_flags: <defaults>
</compile_context>

<pallas_src>
import functools
import math

import jax
import jax.numpy as jnp
from jax.experimental import pallas as pl
from jax.experimental.pallas import tpu as pltpu


PARAM_ORDER = ("w_q", "b_q", "w_k", "b_k", "w_v", "b_v", "w_o", "b_o",
               "gamma1", "beta1", "w_ff1", "b_ff1", "w_ff2", "b_ff2",
               "gamma2", "beta2")


def _layernorm(h, gamma, beta, eps):
    mu = jnp.mean(h, axis=-1, keepdims=True)
    var = jnp.mean(jnp.square(h - mu), axis=-1, keepdims=True)
    return (h - mu) * jax.lax.rsqrt(var + eps) * gamma + beta


def _encoder_layer_kernel(x_ref,
                          wq_ref, bq_ref, wk_ref, bk_ref, wv_ref, bv_ref,
                          wo_ref, bo_ref, g1_ref, be1_ref,
                          w1_ref, b1_ref, w2_ref, b2_ref, g2_ref, be2_ref,
                          o_ref, ctx_ref, *, num_heads, eps, ffn_chunk):
    f32 = jnp.float32
    x_in = x_ref[0]                           # (S, D), native dtype -> MXU inputs
    S, D = x_in.shape
    d_k = D // num_heads
    mx_dtype = wq_ref.dtype                   # matmul-input dtype (bf16 in prod)
    scale = 1.0 / math.sqrt(d_k)

    # ---- QKV projections: native-dtype MXU inputs, f32 accumulation ----
    q = jnp.dot(x_in, wq_ref[...], preferred_element_type=f32) + bq_ref[...].astype(f32)
    k = jnp.dot(x_in, wk_ref[...], preferred_element_type=f32) + bk_ref[...].astype(f32)
    v = jnp.dot(x_in, wv_ref[...], preferred_element_type=f32) + bv_ref[...].astype(f32)
    # Fold 1/sqrt(d_k) into q once (cheaper than scaling each (S,S) score tile).
    q = (q * scale).astype(mx_dtype)
    k = k.astype(mx_dtype)
    v = v.astype(mx_dtype)

    # ---- Multi-head self-attention (query = key = value = x) ----
    # Each head's context goes into the (S, D) VMEM scratch at lane offset h*d_k
    # so that W_o can be applied as a single full-contraction matmul afterwards.
    # TODO(synk): with many heads / long S, move heads or q-tiles onto a grid
    # axis (flash-style online softmax) to bound live vreg ranges further.
    for h in range(num_heads):
        lo = h * d_k
        qh = q[:, lo:lo + d_k]
        kh = k[:, lo:lo + d_k]
        vh = v[:, lo:lo + d_k]
        s = jnp.dot(qh, kh.T, preferred_element_type=f32)         # (S, S)
        # TODO(synk): attention mask unsupported (module forward default mask=None).
        s = s - jnp.max(s, axis=-1, keepdims=True)
        p = jnp.exp(s)
        # Normalization via EUP reciprocal (frees VALU slot; exp already on EUP).
        p = p * pl.reciprocal(jnp.sum(p, axis=-1, keepdims=True), approx=True)
        # TODO(synk): dropout layers are identity (eval mode).
        ctx = jnp.dot(p.astype(mx_dtype), vh, preferred_element_type=f32)
        ctx_ref[:, lo:lo + d_k] = ctx.astype(ctx_ref.dtype)

    attn = jnp.dot(ctx_ref[...], wo_ref[...], preferred_element_type=f32)
    attn = attn + bo_ref[...].astype(f32)

    # ---- Add & Norm 1 (f32 VPU math) ----
    x_f32 = x_in.astype(f32)
    h1 = _layernorm(x_f32 + attn, g1_ref[...].astype(f32), be1_ref[...].astype(f32), eps)

    # ---- Position-wise FFN + Add & Norm 2, row-tiled so the (rows, d_ff)
    #      ReLU intermediate stays small. Bias/param loads hoisted out of loop.
    b1 = b1_ref[...].astype(f32)
    b2 = b2_ref[...].astype(f32)
    g2 = g2_ref[...].astype(f32)
    be2 = be2_ref[...].astype(f32)
    for r0 in range(0, S, ffn_chunk):
        r1 = min(r0 + ffn_chunk, S)
        h1c = h1[r0:r1]
        f = jnp.dot(h1c.astype(mx_dtype), w1_ref[...], preferred_element_type=f32) + b1
        f = jnp.maximum(f, 0.0)
        ffc = jnp.dot(f.astype(mx_dtype), w2_ref[...], preferred_element_type=f32) + b2
        o_ref[0, r0:r1] = _layernorm(h1c + ffc, g2, be2, eps).astype(o_ref.dtype)


def _vmem_limit_bytes():
    # Raise the scoped-VMEM limit toward physical so the fused, weights-resident
    # design is accepted at real model sizes (leave ~15% headroom).
    try:
        cap = pltpu.get_tpu_info().vmem_capacity_bytes
        return int(cap * 0.85)
    except Exception:
        return 48 * 1024 * 1024


def encoder_layer(x, params, *, num_heads, eps=1e-5, ffn_chunk_rows=256):
    """Pallas implementation of EncoderLayer.forward (eval mode, mask=None)."""
    B, S, D = x.shape
    assert D % num_heads == 0
    weights = [params[k] for k in PARAM_ORDER]
    ffn_chunk = S if S <= ffn_chunk_rows else ffn_chunk_rows

    kernel = functools.partial(_encoder_layer_kernel, num_heads=num_heads,
                               eps=eps, ffn_chunk=ffn_chunk)

    def run(single_buffer_weights):
        in_specs = [pl.BlockSpec((1, S, D), lambda b: (b, 0, 0))]
        for w in weights:
            # Full-block, constant index_map: weight stays VMEM-resident across
            # the whole grid.  Constant block index => a single buffer suffices.
            kw = {"pipeline_mode": pl.Buffered(1)} if single_buffer_weights else {}
            in_specs.append(pl.BlockSpec(w.shape, lambda b: (0, 0), **kw))
        return pl.pallas_call(
            kernel,
            out_shape=jax.ShapeDtypeStruct((B, S, D), x.dtype),
            grid_spec=pltpu.PrefetchScalarGridSpec(
                num_scalar_prefetch=0,
                grid=(B,),
                in_specs=in_specs,
                out_specs=pl.BlockSpec((1, S, D), lambda b: (b, 0, 0)),
                scratch_shapes=[pltpu.VMEM((S, D), params["w_o"].dtype)],
            ),
            compiler_params=pltpu.CompilerParams(
                dimension_semantics=("parallel",),
                vmem_limit_bytes=_vmem_limit_bytes()),
        )(x, *weights)

    try:
        return run(True)   # single-buffered weight residency
    except Exception:      # pipeline_mode=pl.Buffered unsupported on this jax version
        return run(False)


# ----------------------------- reference & test -----------------------------

def init_params(key, d_model, d_ff, dtype=jnp.float32):
    ks = jax.random.split(key, 6)

    def lin(k, fan_in, fan_out):
        lim = 1.0 / math.sqrt(fan_in)
        kw, kb = jax.random.split(k)
        w = jax.random.uniform(kw, (fan_in, fan_out), dtype, -lim, lim)
        b = jax.random.uniform(kb, (1, fan_out), dtype, -lim, lim)
        return w, b

    w_q, b_q = lin(ks[0], d_model, d_model)
    w_k, b_k = lin(ks[1], d_model, d_model)
    w_v, b_v = lin(ks[2], d_model, d_model)
    w_o, b_o = lin(ks[3], d_model, d_model)
    w_ff1, b_ff1 = lin(ks[4], d_model, d_ff)
    w_ff2, b_ff2 = lin(ks[5], d_ff, d_model)
    return dict(
        w_q=w_q, b_q=b_q, w_k=w_k, b_k=b_k, w_v=w_v, b_v=b_v, w_o=w_o, b_o=b_o,
        gamma1=jnp.ones((1, d_model), dtype), beta1=jnp.zeros((1, d_model), dtype),
        w_ff1=w_ff1, b_ff1=b_ff1, w_ff2=w_ff2, b_ff2=b_ff2,
        gamma2=jnp.ones((1, d_model), dtype), beta2=jnp.zeros((1, d_model), dtype),
    )


def _reference(x, params, *, num_heads, eps=1e-5):
    """Pure-JAX mirror of the PyTorch EncoderLayer.forward (eval, mask=None)."""
    B, S, D = x.shape
    d_k = D // num_heads
    lin = lambda z, w, b: jnp.dot(z, w) + b
    q = lin(x, params["w_q"], params["b_q"]).reshape(B, S, num_heads, d_k).transpose(0, 2, 1, 3)
    k = lin(x, params["w_k"], params["b_k"]).reshape(B, S, num_heads, d_k).transpose(0, 2, 1, 3)
    v = lin(x, params["w_v"], params["b_v"]).reshape(B, S, num_heads, d_k).transpose(0, 2, 1, 3)
    scores = jnp.einsum("bhqd,bhkd->bhqk", q, k) / math.sqrt(d_k)
    attn = jax.nn.softmax(scores, axis=-1)
    ctx = jnp.einsum("bhqk,bhkd->bhqd", attn, v).transpose(0, 2, 1, 3).reshape(B, S, D)
    h1 = _layernorm(x + lin(ctx, params["w_o"], params["b_o"]),
                    params["gamma1"], params["beta1"], eps)
    ff = lin(jax.nn.relu(lin(h1, params["w_ff1"], params["b_ff1"])),
             params["w_ff2"], params["b_ff2"])
    return _layernorm(h1 + ff, params["gamma2"], params["beta2"], eps)


if __name__ == "__main__":
    jax.config.update("jax_default_matmul_precision", "highest")

    B, S, D, H, D_FF = 2, 8, 32, 4, 64
    key = jax.random.PRNGKey(0)
    kx, kp = jax.random.split(key)
    x = jax.random.normal(kx, (B, S, D), dtype=jnp.float32)
    params = init_params(kp, D, D_FF)

    # f32 run: tight correctness check against the pure-JAX reference.
    out = jax.block_until_ready(encoder_layer(x, params, num_heads=H))
    ref = _reference(x, params, num_heads=H)
    assert out.shape == (B, S, D) and out.dtype == x.dtype
    err = float(jnp.max(jnp.abs(out - ref)))
    assert err < 2e-2, f"f32 mismatch vs reference, max abs err={err}"

    # bf16 run: exercises the bf16-MXU-input path (f32 accumulation); loose check.
    x_bf = x.astype(jnp.bfloat16)
    params_bf = {kk: vv.astype(jnp.bfloat16) for kk, vv in params.items()}
    out_bf = jax.block_until_ready(encoder_layer(x_bf, params_bf, num_heads=H))
    assert out_bf.shape == (B, S, D) and out_bf.dtype == jnp.bfloat16
    err_bf = float(jnp.max(jnp.abs(out_bf.astype(jnp.float32) - ref)))
    assert err_bf < 1.5e-1, f"bf16 mismatch vs reference, max abs err={err_bf}"

    print("KERNEL_OK")
</pallas_src>

<mosaic_0001>
module attributes {stable_mosaic.version = 11 : i64} {
  func.func @_encoder_layer_kernel(%arg0: i32, %arg1: memref<1x8x32xf32, #tpu.memory_space<vmem>>, %arg2: memref<32x32xf32, #tpu.memory_space<vmem>>, %arg3: memref<1x32xf32, #tpu.memory_space<vmem>>, %arg4: memref<32x32xf32, #tpu.memory_space<vmem>>, %arg5: memref<1x32xf32, #tpu.memory_space<vmem>>, %arg6: memref<32x32xf32, #tpu.memory_space<vmem>>, %arg7: memref<1x32xf32, #tpu.memory_space<vmem>>, %arg8: memref<32x32xf32, #tpu.memory_space<vmem>>, %arg9: memref<1x32xf32, #tpu.memory_space<vmem>>, %arg10: memref<1x32xf32, #tpu.memory_space<vmem>>, %arg11: memref<1x32xf32, #tpu.memory_space<vmem>>, %arg12: memref<32x64xf32, #tpu.memory_space<vmem>>, %arg13: memref<1x64xf32, #tpu.memory_space<vmem>>, %arg14: memref<64x32xf32, #tpu.memory_space<vmem>>, %arg15: memref<1x32xf32, #tpu.memory_space<vmem>>, %arg16: memref<1x32xf32, #tpu.memory_space<vmem>>, %arg17: memref<1x32xf32, #tpu.memory_space<vmem>>, %arg18: memref<1x8x32xf32, #tpu.memory_space<vmem>>, %arg19: memref<8x32xf32, #tpu.memory_space<vmem>>) attributes {dimension_semantics = [#tpu.dimension_semantics<parallel>], iteration_bounds = array<i64: 2>, scalar_prefetch = 0 : i64, scratch_operands = 1 : i64, tpu.core_type = #tpu.core_type<tc>, window_params = [{transform_indices = @transform_0, window_bounds = array<i64: 1, 8, 32>}, {pipeline_mode = #tpu.pipeline_mode<synchronous>, transform_indices = @transform_1, window_bounds = array<i64: 32, 32>}, {pipeline_mode = #tpu.pipeline_mode<synchronous>, transform_indices = @transform_2, window_bounds = array<i64: 1, 32>}, {pipeline_mode = #tpu.pipeline_mode<synchronous>, transform_indices = @transform_3, window_bounds = array<i64: 32, 32>}, {pipeline_mode = #tpu.pipeline_mode<synchronous>, transform_indices = @transform_4, window_bounds = array<i64: 1, 32>}, {pipeline_mode = #tpu.pipeline_mode<synchronous>, transform_indices = @transform_5, window_bounds = array<i64: 32, 32>}, {pipeline_mode = #tpu.pipeline_mode<synchronous>, transform_indices = @transform_6, window_bounds = array<i64: 1, 32>}, {pipeline_mode = #tpu.pipeline_mode<synchronous>, transform_indices = @transform_7, window_bounds = array<i64: 32, 32>}, {pipeline_mode = #tpu.pipeline_mode<synchronous>, transform_indices = @transform_8, window_bounds = array<i64: 1, 32>}, {pipeline_mode = #tpu.pipeline_mode<synchronous>, transform_indices = @transform_9, window_bounds = array<i64: 1, 32>}, {pipeline_mode = #tpu.pipeline_mode<synchronous>, transform_indices = @transform_10, window_bounds = array<i64: 1, 32>}, {pipeline_mode = #tpu.pipeline_mode<synchronous>, transform_indices = @transform_11, window_bounds = array<i64: 32, 64>}, {pipeline_mode = #tpu.pipeline_mode<synchronous>, transform_indices = @transform_12, window_bounds = array<i64: 1, 64>}, {pipeline_mode = #tpu.pipeline_mode<synchronous>, transform_indices = @transform_13, window_bounds = array<i64: 64, 32>}, {pipeline_mode = #tpu.pipeline_mode<synchronous>, transform_indices = @transform_14, window_bounds = array<i64: 1, 32>}, {pipeline_mode = #tpu.pipeline_mode<synchronous>, transform_indices = @transform_15, window_bounds = array<i64: 1, 32>}, {pipeline_mode = #tpu.pipeline_mode<synchronous>, transform_indices = @transform_16, window_bounds = array<i64: 1, 32>}, {transform_indices = @transform_17, window_bounds = array<i64: 1, 8, 32>}]} {
    %c0 = arith.constant 0 : index
    %c0_0 = arith.constant 0 : index
    %c0_1 = arith.constant 0 : index
    %0 = vector.load %arg1[%c0, %c0_0, %c0_1] : memref<1x8x32xf32, #tpu.memory_space<vmem>>, vector<1x8x32xf32>
    %1 = vector.shape_cast %0 : vector<1x8x32xf32> to vector<8x32xf32>
    %c0_2 = arith.constant 0 : index
    %c0_3 = arith.constant 0 : index
    %2 = vector.load %arg2[%c0_2, %c0_3] : memref<32x32xf32, #tpu.memory_space<vmem>>, vector<32x32xf32>
    %cst = arith.constant dense<0.000000e+00> : vector<8x32xf32>
    %3 = tpu.matmul %1, %2, %cst {dimension_numbers = #tpu.dot_dimension_numbers<[1], [0], [0], [1], [0, 0, 1, 1], [], []>, precision = #tpu.contract_precision<fp32>} : vector<8x32xf32>, vector<32x32xf32>, vector<8x32xf32> -> vector<8x32xf32>
    %c0_4 = arith.constant 0 : index
    %c0_5 = arith.constant 0 : index
    %4 = vector.load %arg3[%c0_4, %c0_5] : memref<1x32xf32, #tpu.memory_space<vmem>>, vector<1x32xf32>
    %5 = vector.broadcast %4 : vector<1x32xf32> to vector<8x32xf32>
    %6 = arith.addf %3, %5 : vector<8x32xf32>
    %c0_6 = arith.constant 0 : index
    %c0_7 = arith.constant 0 : index
    %7 = vector.load %arg4[%c0_6, %c0_7] : memref<32x32xf32, #tpu.memory_space<vmem>>, vector<32x32xf32>
    %cst_8 = arith.constant dense<0.000000e+00> : vector<8x32xf32>
    %8 = tpu.matmul %1, %7, %cst_8 {dimension_numbers = #tpu.dot_dimension_numbers<[1], [0], [0], [1], [0, 0, 1, 1], [], []>, precision = #tpu.contract_precision<fp32>} : vector<8x32xf32>, vector<32x32xf32>, vector<8x32xf32> -> vector<8x32xf32>
    %c0_9 = arith.constant 0 : index
    %c0_10 = arith.constant 0 : index
    %9 = vector.load %arg5[%c0_9, %c0_10] : memref<1x32xf32, #tpu.memory_space<vmem>>, vector<1x32xf32>
    %10 = vector.broadcast %9 : vector<1x32xf32> to vector<8x32xf32>
    %11 = arith.addf %8, %10 : vector<8x32xf32>
    %c0_11 = arith.constant 0 : index
    %c0_12 = arith.constant 0 : index
    %12 = vector.load %arg6[%c0_11, %c0_12] : memref<32x32xf32, #tpu.memory_space<vmem>>, vector<32x32xf32>
    %cst_13 = arith.constant dense<0.000000e+00> : vector<8x32xf32>
    %13 = tpu.matmul %1, %12, %cst_13 {dimension_numbers = #tpu.dot_dimension_numbers<[1], [0], [0], [1], [0, 0, 1, 1], [], []>, precision = #tpu.contract_precision<fp32>} : vector<8x32xf32>, vector<32x32xf32>, vector<8x32xf32> -> vector<8x32xf32>
    %c0_14 = arith.constant 0 : index
    %c0_15 = arith.constant 0 : index
    %14 = vector.load %arg7[%c0_14, %c0_15] : memref<1x32xf32, #tpu.memory_space<vmem>>, vector<1x32xf32>
    %15 = vector.broadcast %14 : vector<1x32xf32> to vector<8x32xf32>
    %16 = arith.addf %13, %15 : vector<8x32xf32>
    %cst_16 = arith.constant 0.353553385 : f32
    %17 = vector.broadcast %cst_16 : f32 to vector<8x32xf32>
    %18 = arith.mulf %6, %17 : vector<8x32xf32>
    %19 = vector.extract_strided_slice %18 {offsets = [0, 0], sizes = [8, 8], strides = [1, 1]} : vector<8x32xf32> to vector<8x8xf32>
    %20 = vector.extract_strided_slice %11 {offsets = [0, 0], sizes = [8, 8], strides = [1, 1]} : vector<8x32xf32> to vector<8x8xf32>
    %21 = vector.extract_strided_slice %16 {offsets = [0, 0], sizes = [8, 8], strides = [1, 1]} : vector<8x32xf32> to vector<8x8xf32>
    %22 = tpu.transpose %20, [1, 0] : vector<8x8xf32> -> vector<8x8xf32>
    %cst_17 = arith.constant dense<0.000000e+00> : vector<8x8xf32>
    %23 = tpu.matmul %19, %22, %cst_17 {dimension_numbers = #tpu.dot_dimension_numbers<[1], [0], [0], [1], [0, 0, 1, 1], [], []>, precision = #tpu.contract_precision<fp32>} : vector<8x8xf32>, vector<8x8xf32>, vector<8x8xf32> -> vector<8x8xf32>
    %cst_18 = arith.constant dense<0xFF800000> : vector<8xf32>
    %24 = vector.multi_reduction <maximumf>, %23, %cst_18 [1] : vector<8x8xf32> to vector<8xf32>
    %25 = vector.shape_cast %24 : vector<8xf32> to vector<8x1xf32>
    %26 = vector.broadcast %25 : vector<8x1xf32> to vector<8x8xf32>
    %27 = arith.subf %23, %26 : vector<8x8xf32>
    %28 = math.exp %27 : vector<8x8xf32>
    %cst_19 = arith.constant dense<0.000000e+00> : vector<8xf32>
    %29 = vector.multi_reduction <add>, %28, %cst_19 [1] : vector<8x8xf32> to vector<8xf32>
    %30 = vector.shape_cast %29 : vector<8xf32> to vector<8x1xf32>
    %31 = tpu.reciprocal %30 {approx = true} : vector<8x1xf32> -> vector<8x1xf32>
    %32 = vector.broadcast %31 : vector<8x1xf32> to vector<8x8xf32>
    %33 = arith.mulf %28, %32 : vector<8x8xf32>
    %cst_20 = arith.constant dense<0.000000e+00> : vector<8x8xf32>
    %34 = tpu.matmul %33, %21, %cst_20 {dimension_numbers = #tpu.dot_dimension_numbers<[1], [0], [0], [1], [0, 0, 1, 1], [], []>, precision = #tpu.contract_precision<fp32>} : vector<8x8xf32>, vector<8x8xf32>, vector<8x8xf32> -> vector<8x8xf32>
    %c0_21 = arith.constant 0 : index
    %c0_22 = arith.constant 0 : index
    %35 = vector.load %arg19[%c0_21, %c0_22] : memref<8x32xf32, #tpu.memory_space<vmem>>, vector<8x8xf32>
    tpu.vector_store %arg19[%c0_21, %c0_22], %34 {strides = array<i32>} : memref<8x32xf32, #tpu.memory_space<vmem>>, vector<8x8xf32>,
    %36 = vector.extract_strided_slice %18 {offsets = [0, 8], sizes = [8, 8], strides = [1, 1]} : vector<8x32xf32> to vector<8x8xf32>
    %37 = vector.extract_strided_slice %11 {offsets = [0, 8], sizes = [8, 8], strides = [1, 1]} : vector<8x32xf32> to vector<8x8xf32>
    %38 = vector.extract_strided_slice %16 {offsets = [0, 8], sizes = [8, 8], strides = [1, 1]} : vector<8x32xf32> to vector<8x8xf32>
    %39 = tpu.transpose %37, [1, 0] : vector<8x8xf32> -> vector<8x8xf32>
    %cst_23 = arith.constant dense<0.000000e+00> : vector<8x8xf32>
    %40 = tpu.matmul %36, %39, %cst_23 {dimension_numbers = #tpu.dot_dimension_numbers<[1], [0], [0], [1], [0, 0, 1, 1], [], []>, precision = #tpu.contract_precision<fp32>} : vector<8x8xf32>, vector<8x8xf32>, vector<8x8xf32> -> vector<8x8xf32>
    %cst_24 = arith.constant dense<0xFF800000> : vector<8xf32>
    %41 = vector.multi_reduction <maximumf>, %40, %cst_24 [1] : vector<8x8xf32> to vector<8xf32>
    %42 = vector.shape_cast %41 : vector<8xf32> to vector<8x1xf32>
    %43 = vector.broadcast %42 : vector<8x1xf32> to vector<8x8xf32>
    %44 = arith.subf %40, %43 : vector<8x8xf32>
    %45 = math.exp %44 : vector<8x8xf32>
    %cst_25 = arith.constant dense<0.000000e+00> : vector<8xf32>
    %46 = vector.multi_reduction <add>, %45, %cst_25 [1] : vector<8x8xf32> to vector<8xf32>
    %47 = vector.shape_cast %46 : vector<8xf32> to vector<8x1xf32>
    %48 = tpu.reciprocal %47 {approx = true} : vector<8x1xf32> -> vector<8x1xf32>
    %49 = vector.broadcast %48 : vector<8x1xf32> to vector<8x8xf32>
    %50 = arith.mulf %45, %49 : vector<8x8xf32>
    %cst_26 = arith.constant dense<0.000000e+00> : vector<8x8xf32>
    %51 = tpu.matmul %50, %38, %cst_26 {dimension_numbers = #tpu.dot_dimension_numbers<[1], [0], [0], [1], [0, 0, 1, 1], [], []>, precision = #tpu.contract_precision<fp32>} : vector<8x8xf32>, vector<8x8xf32>, vector<8x8xf32> -> vector<8x8xf32>
    %c0_27 = arith.constant 0 : index
    %c8 = arith.constant 8 : index
    %52 = vector.load %arg19[%c0_27, %c8] : memref<8x32xf32, #tpu.memory_space<vmem>>, vector<8x8xf32>
    tpu.vector_store %arg19[%c0_27, %c8], %51 {strides = array<i32>} : memref<8x32xf32, #tpu.memory_space<vmem>>, vector<8x8xf32>,
    %53 = vector.extract_strided_slice %18 {offsets = [0, 16], sizes = [8, 8], strides = [1, 1]} : vector<8x32xf32> to vector<8x8xf32>
    %54 = vector.extract_strided_slice %11 {offsets = [0, 16], sizes = [8, 8], strides = [1, 1]} : vector<8x32xf32> to vector<8x8xf32>
    %55 = vector.extract_strided_slice %16 {offsets = [0, 16], sizes = [8, 8], strides = [1, 1]} : vector<8x32xf32> to vector<8x8xf32>
    %56 = tpu.transpose %54, [1, 0] : vector<8x8xf32> -> vector<8x8xf32>
    %cst_28 = arith.constant dense<0.000000e+00> : vector<8x8xf32>
    %57 = tpu.matmul %53, %56, %cst_28 {dimension_numbers = #tpu.dot_dimension_numbers<[1], [0], [0], [1], [0, 0, 1, 1], [], []>, precision = #tpu.contract_precision<fp32>} : vector<8x8xf32>, vector<8x8xf32>, vector<8x8xf32> -> vector<8x8xf32>
    %cst_29 = arith.constant dense<0xFF800000> : vector<8xf32>
    %58 = vector.multi_reduction <maximumf>, %57, %cst_29 [1] : vector<8x8xf32> to vector<8xf32>
    %59 = vector.shape_cast %58 : vector<8xf32> to vector<8x1xf32>
    %60 = vector.broadcast %59 : vector<8x1xf32> to vector<8x8xf32>
    %61 = arith.subf %57, %60 : vector<8x8xf32>
    %62 = math.exp %61 : vector<8x8xf32>
    %cst_30 = arith.constant dense<0.000000e+00> : vector<8xf32>
    %63 = vector.multi_reduction <add>, %62, %cst_30 [1] : vector<8x8xf32> to vector<8xf32>
    %64 = vector.shape_cast %63 : vector<8xf32> to vector<8x1xf32>
    %65 = tpu.reciprocal %64 {approx = true} : vector<8x1xf32> -> vector<8x1xf32>
    %66 = vector.broadcast %65 : vector<8x1xf32> to vector<8x8xf32>
    %67 = arith.mulf %62, %66 : vector<8x8xf32>
    %cst_31 = arith.constant dense<0.000000e+00> : vector<8x8xf32>
    %68 = tpu.matmul %67, %55, %cst_31 {dimension_numbers = #tpu.dot_dimension_numbers<[1], [0], [0], [1], [0, 0, 1, 1], [], []>, precision = #tpu.contract_precision<fp32>} : vector<8x8xf32>, vector<8x8xf32>, vector<8x8xf32> -> vector<8x8xf32>
    %c0_32 = arith.constant 0 : index
    %c16 = arith.constant 16 : index
    %69 = vector.load %arg19[%c0_32, %c16] : memref<8x32xf32, #tpu.memory_space<vmem>>, vector<8x8xf32>
    tpu.vector_store %arg19[%c0_32, %c16], %68 {strides = array<i32>} : memref<8x32xf32, #tpu.memory_space<vmem>>, vector<8x8xf32>,
    %70 = vector.extract_strided_slice %18 {offsets = [0, 24], sizes = [8, 8], strides = [1, 1]} : vector<8x32xf32> to vector<8x8xf32>
    %71 = vector.extract_strided_slice %11 {offsets = [0, 24], sizes = [8, 8], strides = [1, 1]} : vector<8x32xf32> to vector<8x8xf32>
    %72 = vector.extract_strided_slice %16 {offsets = [0, 24], sizes = [8, 8], strides = [1, 1]} : vector<8x32xf32> to vector<8x8xf32>
    %73 = tpu.transpose %71, [1, 0] : vector<8x8xf32> -> vector<8x8xf32>
    %cst_33 = arith.constant dense<0.000000e+00> : vector<8x8xf32>
    %74 = tpu.matmul %70, %73, %cst_33 {dimension_numbers = #tpu.dot_dimension_numbers<[1], [0], [0], [1], [0, 0, 1, 1], [], []>, precision = #tpu.contract_precision<fp32>} : vector<8x8xf32>, vector<8x8xf32>, vector<8x8xf32> -> vector<8x8xf32>
    %cst_34 = arith.constant dense<0xFF800000> : vector<8xf32>
    %75 = vector.multi_reduction <maximumf>, %74, %cst_34 [1] : vector<8x8xf32> to vector<8xf32>
    %76 = vector.shape_cast %75 : vector<8xf32> to vector<8x1xf32>
    %77 = vector.broadcast %76 : vector<8x1xf32> to vector<8x8xf32>
    %78 = arith.subf %74, %77 : vector<8x8xf32>
    %79 = math.exp %78 : vector<8x8xf32>
    %cst_35 = arith.constant dense<0.000000e+00> : vector<8xf32>
    %80 = vector.multi_reduction <add>, %79, %cst_35 [1] : vector<8x8xf32> to vector<8xf32>
    %81 = vector.shape_cast %80 : vector<8xf32> to vector<8x1xf32>
    %82 = tpu.reciprocal %81 {approx = true} : vector<8x1xf32> -> vector<8x1xf32>
    %83 = vector.broadcast %82 : vector<8x1xf32> to vector<8x8xf32>
    %84 = arith.mulf %79, %83 : vector<8x8xf32>
    %cst_36 = arith.constant dense<0.000000e+00> : vector<8x8xf32>
    %85 = tpu.matmul %84, %72, %cst_36 {dimension_numbers = #tpu.dot_dimension_numbers<[1], [0], [0], [1], [0, 0, 1, 1], [], []>, precision = #tpu.contract_precision<fp32>} : vector<8x8xf32>, vector<8x8xf32>, vector<8x8xf32> -> vector<8x8xf32>
    %c0_37 = arith.constant 0 : index
    %c24 = arith.constant 24 : index
    %86 = vector.load %arg19[%c0_37, %c24] : memref<8x32xf32, #tpu.memory_space<vmem>>, vector<8x8xf32>
    tpu.vector_store %arg19[%c0_37, %c24], %85 {strides = array<i32>} : memref<8x32xf32, #tpu.memory_space<vmem>>, vector<8x8xf32>,
    %c0_38 = arith.constant 0 : index
    %c0_39 = arith.constant 0 : index
    %87 = vector.load %arg19[%c0_38, %c0_39] : memref<8x32xf32, #tpu.memory_space<vmem>>, vector<8x32xf32>
    %c0_40 = arith.constant 0 : index
    %c0_41 = arith.constant 0 : index
    %88 = vector.load %arg8[%c0_40, %c0_41] : memref<32x32xf32, #tpu.memory_space<vmem>>, vector<32x32xf32>
    %cst_42 = arith.constant dense<0.000000e+00> : vector<8x32xf32>
    %89 = tpu.matmul %87, %88, %cst_42 {dimension_numbers = #tpu.dot_dimension_numbers<[1], [0], [0], [1], [0, 0, 1, 1], [], []>, precision = #tpu.contract_precision<fp32>} : vector<8x32xf32>, vector<32x32xf32>, vector<8x32xf32> -> vector<8x32xf32>
    %c0_43 = arith.constant 0 : index
    %c0_44 = arith.constant 0 : index
    %90 = vector.load %arg9[%c0_43, %c0_44] : memref<1x32xf32, #tpu.memory_space<vmem>>, vector<1x32xf32>
    %91 = vector.broadcast %90 : vector<1x32xf32> to vector<8x32xf32>
    %92 = arith.addf %89, %91 : vector<8x32xf32>
    %93 = arith.addf %1, %92 : vector<8x32xf32>
    %c0_45 = arith.constant 0 : index
    %c0_46 = arith.constant 0 : index
    %94 = vector.load %arg10[%c0_45, %c0_46] : memref<1x32xf32, #tpu.memory_space<vmem>>, vector<1x32xf32>
    %c0_47 = arith.constant 0 : index
    %c0_48 = arith.constant 0 : index
    %95 = vector.load %arg11[%c0_47, %c0_48] : memref<1x32xf32, #tpu.memory_space<vmem>>, vector<1x32xf32>
    %cst_49 = arith.constant dense<0.000000e+00> : vector<8xf32>
    %96 = vector.multi_reduction <add>, %93, %cst_49 [1] : vector<8x32xf32> to vector<8xf32>
    %97 = vector.shape_cast %96 : vector<8xf32> to vector<8x1xf32>
    %cst_50 = arith.constant 3.200000e+01 : f32
    %98 = vector.broadcast %cst_50 : f32 to vector<8x1xf32>
    %99 = arith.divf %97, %98 : vector<8x1xf32>
    %100 = vector.broadcast %99 : vector<8x1xf32> to vector<8x32xf32>
    %101 = arith.subf %93, %100 : vector<8x32xf32>
    %102 = arith.mulf %101, %101 : vector<8x32xf32>
    %cst_51 = arith.constant dense<0.000000e+00> : vector<8xf32>
    %103 = vector.multi_reduction <add>, %102, %cst_51 [1] : vector<8x32xf32> to vector<8xf32>
    %104 = vector.shape_cast %103 : vector<8xf32> to vector<8x1xf32>
    %cst_52 = arith.constant 3.200000e+01 : f32
    %105 = vector.broadcast %cst_52 : f32 to vector<8x1xf32>
    %106 = arith.divf %104, %105 : vector<8x1xf32>
    %107 = vector.broadcast %99 : vector<8x1xf32> to vector<8x32xf32>
    %108 = arith.subf %93, %107 : vector<8x32xf32>
    %cst_53 = arith.constant 9.99999974E-6 : f32
    %109 = vector.broadcast %cst_53 : f32 to vector<8x1xf32>
    %110 = arith.addf %106, %109 : vector<8x1xf32>
    %111 = math.rsqrt %110 : vector<8x1xf32>
    %112 = vector.broadcast %111 : vector<8x1xf32> to vector<8x32xf32>
    %113 = arith.mulf %108, %112 : vector<8x32xf32>
    %114 = vector.broadcast %94 : vector<1x32xf32> to vector<8x32xf32>
    %115 = arith.mulf %113, %114 : vector<8x32xf32>
    %116 = vector.broadcast %95 : vector<1x32xf32> to vector<8x32xf32>
    %117 = arith.addf %115, %116 : vector<8x32xf32>
    %c0_54 = arith.constant 0 : index
    %c0_55 = arith.constant 0 : index
    %118 = vector.load %arg13[%c0_54, %c0_55] : memref<1x64xf32, #tpu.memory_space<vmem>>, vector<1x64xf32>
    %c0_56 = arith.constant 0 : index
    %c0_57 = arith.constant 0 : index
    %119 = vector.load %arg15[%c0_56, %c0_57] : memref<1x32xf32, #tpu.memory_space<vmem>>, vector<1x32xf32>
    %c0_58 = arith.constant 0 : index
    %c0_59 = arith.constant 0 : index
    %120 = vector.load %arg16[%c0_58, %c0_59] : memref<1x32xf32, #tpu.memory_space<vmem>>, vector<1x32xf32>
    %c0_60 = arith.constant 0 : index
    %c0_61 = arith.constant 0 : index
    %121 = vector.load %arg17[%c0_60, %c0_61] : memref<1x32xf32, #tpu.memory_space<vmem>>, vector<1x32xf32>
    %c0_62 = arith.constant 0 : index
    %c0_63 = arith.constant 0 : index
    %122 = vector.load %arg12[%c0_62, %c0_63] : memref<32x64xf32, #tpu.memory_space<vmem>>, vector<32x64xf32>
    %cst_64 = arith.constant dense<0.000000e+00> : vector<8x64xf32>
    %123 = tpu.matmul %117, %122, %cst_64 {dimension_numbers = #tpu.dot_dimension_numbers<[1], [0], [0], [1], [0, 0, 1, 1], [], []>, precision = #tpu.contract_precision<fp32>} : vector<8x32xf32>, vector<32x64xf32>, vector<8x64xf32> -> vector<8x64xf32>
    %124 = vector.broadcast %118 : vector<1x64xf32> to vector<8x64xf32>
    %125 = arith.addf %123, %124 : vector<8x64xf32>
    %cst_65 = arith.constant 0.000000e+00 : f32
    %126 = vector.broadcast %cst_65 : f32 to vector<8x64xf32>
    %127 = arith.maximumf %125, %126 : vector<8x64xf32>
    %c0_66 = arith.constant 0 : index
    %c0_67 = arith.constant 0 : index
    %128 = vector.load %arg14[%c0_66, %c0_67] : memref<64x32xf32, #tpu.memory_space<vmem>>, vector<64x32xf32>
    %cst_68 = arith.constant dense<0.000000e+00> : vector<8x32xf32>
    %129 = tpu.matmul %127, %128, %cst_68 {dimension_numbers = #tpu.dot_dimension_numbers<[1], [0], [0], [1], [0, 0, 1, 1], [], []>, precision = #tpu.contract_precision<fp32>} : vector<8x64xf32>, vector<64x32xf32>, vector<8x32xf32> -> vector<8x32xf32>
    %130 = vector.broadcast %119 : vector<1x32xf32> to vector<8x32xf32>
    %131 = arith.addf %129, %130 : vector<8x32xf32>
    %132 = arith.addf %117, %131 : vector<8x32xf32>
    %cst_69 = arith.constant dense<0.000000e+00> : vector<8xf32>
    %133 = vector.multi_reduction <add>, %132, %cst_69 [1] : vector<8x32xf32> to vector<8xf32>
    %134 = vector.shape_cast %133 : vector<8xf32> to vector<8x1xf32>
    %cst_70 = arith.constant 3.200000e+01 : f32
    %135 = vector.broadcast %cst_70 : f32 to vector<8x1xf32>
    %136 = arith.divf %134, %135 : vector<8x1xf32>
    %137 = vector.broadcast %136 : vector<8x1xf32> to vector<8x32xf32>
    %138 = arith.subf %132, %137 : vector<8x32xf32>
    %139 = arith.mulf %138, %138 : vector<8x32xf32>
    %cst_71 = arith.constant dense<0.000000e+00> : vector<8xf32>
    %140 = vector.multi_reduction <add>, %139, %cst_71 [1] : vector<8x32xf32> to vector<8xf32>
    %141 = vector.shape_cast %140 : vector<8xf32> to vector<8x1xf32>
    %cst_72 = arith.constant 3.200000e+01 : f32
    %142 = vector.broadcast %cst_72 : f32 to vector<8x1xf32>
    %143 = arith.divf %141, %142 : vector<8x1xf32>
    %144 = vector.broadcast %136 : vector<8x1xf32> to vector<8x32xf32>
    %145 = arith.subf %132, %144 : vector<8x32xf32>
    %cst_73 = arith.constant 9.99999974E-6 : f32
    %146 = vector.broadcast %cst_73 : f32 to vector<8x1xf32>
    %147 = arith.addf %143, %146 : vector<8x1xf32>
    %148 = math.rsqrt %147 : vector<8x1xf32>
    %149 = vector.broadcast %148 : vector<8x1xf32> to vector<8x32xf32>
    %150 = arith.mulf %145, %149 : vector<8x32xf32>
    %151 = vector.broadcast %120 : vector<1x32xf32> to vector<8x32xf32>
    %152 = arith.mulf %150, %151 : vector<8x32xf32>
    %153 = vector.broadcast %121 : vector<1x32xf32> to vector<8x32xf32>
    %154 = arith.addf %152, %153 : vector<8x32xf32>
    %c0_74 = arith.constant 0 : index
    %c0_75 = arith.constant 0 : index
    %c0_76 = arith.constant 0 : index
    %155 = vector.load %arg18[%c0_74, %c0_75, %c0_76] : memref<1x8x32xf32, #tpu.memory_space<vmem>>, vector<1x8x32xf32>
    %156 = vector.shape_cast %155 : vector<1x8x32xf32> to vector<8x32xf32>
    %157 = vector.shape_cast %154 : vector<8x32xf32> to vector<1x8x32xf32>
    tpu.vector_store %arg18[%c0_74, %c0_75, %c0_76], %157 {strides = array<i32>} : memref<1x8x32xf32, #tpu.memory_space<vmem>>, vector<1x8x32xf32>,
    return
  }
  func.func @transform_0(%arg0: i32) -> (i32, i32, i32) {
    %c0_i32 = arith.constant 0 : i32
    %c0_i32_0 = arith.constant 0 : i32
    %c0_i32_1 = arith.constant 0 : i32
    return %arg0, %c0_i32, %c0_i32_0 : i32, i32, i32
  }
  func.func @transform_1(%arg0: i32) -> (i32, i32) {
    %c0_i32 = arith.constant 0 : i32
    %c0_i32_0 = arith.constant 0 : i32
    %c0_i32_1 = arith.constant 0 : i32
    return %c0_i32, %c0_i32_0 : i32, i32
  }
  func.func @transform_2(%arg0: i32) -> (i32, i32) {
    %c0_i32 = arith.constant 0 : i32
    %c0_i32_0 = arith.constant 0 : i32
    %c0_i32_1 = arith.constant 0 : i32
    return %c0_i32, %c0_i32_0 : i32, i32
  }
  func.func @transform_3(%arg0: i32) -> (i32, i32) {
    %c0_i32 = arith.constant 0 : i32
    %c0_i32_0 = arith.constant 0 : i32
    %c0_i32_1 = arith.constant 0 : i32
    return %c0_i32, %c0_i32_0 : i32, i32
  }
  func.func @transform_4(%arg0: i32) -> (i32, i32) {
    %c0_i32 = arith.constant 0 : i32
    %c0_i32_0 = arith.constant 0 : i32
    %c0_i32_1 = arith.constant 0 : i32
    return %c0_i32, %c0_i32_0 : i32, i32
  }
  func.func @transform_5(%arg0: i32) -> (i32, i32) {
    %c0_i32 = arith.constant 0 : i32
    %c0_i32_0 = arith.constant 0 : i32
    %c0_i32_1 = arith.constant 0 : i32
    return %c0_i32, %c0_i32_0 : i32, i32
  }
  func.func @transform_6(%arg0: i32) -> (i32, i32) {
    %c0_i32 = arith.constant 0 : i32
    %c0_i32_0 = arith.constant 0 : i32
    %c0_i32_1 = arith.constant 0 : i32
    return %c0_i32, %c0_i32_0 : i32, i32
  }
  func.func @transform_7(%arg0: i32) -> (i32, i32) {
    %c0_i32 = arith.constant 0 : i32
    %c0_i32_0 = arith.constant 0 : i32
    %c0_i32_1 = arith.constant 0 : i32
    return %c0_i32, %c0_i32_0 : i32, i32
  }
  func.func @transform_8(%arg0: i32) -> (i32, i32) {
    %c0_i32 = arith.constant 0 : i32
    %c0_i32_0 = arith.constant 0 : i32
    %c0_i32_1 = arith.constant 0 : i32
    return %c0_i32, %c0_i32_0 : i32, i32
  }
  func.func @transform_9(%arg0: i32) -> (i32, i32) {
    %c0_i32 = arith.constant 0 : i32
    %c0_i32_0 = arith.constant 0 : i32
    %c0_i32_1 = arith.constant 0 : i32
    return %c0_i32, %c0_i32_0 : i32, i32
  }
  func.func @transform_10(%arg0: i32) -> (i32, i32) {
    %c0_i32 = arith.constant 0 : i32
    %c0_i32_0 = arith.constant 0 : i32
    %c0_i32_1 = arith.constant 0 : i32
    return %c0_i32, %c0_i32_0 : i32, i32
  }
  func.func @transform_11(%arg0: i32) -> (i32, i32) {
    %c0_i32 = arith.constant 0 : i32
    %c0_i32_0 = arith.constant 0 : i32
    %c0_i32_1 = arith.constant 0 : i32
    return %c0_i32, %c0_i32_0 : i32, i32
  }
  func.func @transform_12(%arg0: i32) -> (i32, i32) {
    %c0_i32 = arith.constant 0 : i32
    %c0_i32_0 = arith.constant 0 : i32
    %c0_i32_1 = arith.constant 0 : i32
    return %c0_i32, %c0_i32_0 : i32, i32
  }
  func.func @transform_13(%arg0: i32) -> (i32, i32) {
    %c0_i32 = arith.constant 0 : i32
    %c0_i32_0 = arith.constant 0 : i32
    %c0_i32_1 = arith.constant 0 : i32
    return %c0_i32, %c0_i32_0 : i32, i32
  }
  func.func @transform_14(%arg0: i32) -> (i32, i32) {
    %c0_i32 = arith.constant 0 : i32
    %c0_i32_0 = arith.constant 0 : i32
    %c0_i32_1 = arith.constant 0 : i32
    return %c0_i32, %c0_i32_0 : i32, i32
  }
  func.func @transform_15(%arg0: i32) -> (i32, i32) {
    %c0_i32 = arith.constant 0 : i32
    %c0_i32_0 = arith.constant 0 : i32
    %c0_i32_1 = arith.constant 0 : i32
    return %c0_i32, %c0_i32_0 : i32, i32
  }
  func.func @transform_16(%arg0: i32) -> (i32, i32) {
    %c0_i32 = arith.constant 0 : i32
    %c0_i32_0 = arith.constant 0 : i32
    %c0_i32_1 = arith.constant 0 : i32
    return %c0_i32, %c0_i32_0 : i32, i32
  }
  func.func @transform_17(%arg0: i32) -> (i32, i32, i32) {
    %c0_i32 = arith.constant 0 : i32
    %c0_i32_0 = arith.constant 0 : i32
    %c0_i32_1 = arith.constant 0 : i32
    return %arg0, %c0_i32, %c0_i32_0 : i32, i32, i32
  }
}

module attributes {stable_mosaic.version = 11 : i64} {
  func.func @_encoder_layer_kernel(%arg0: i32, %arg1: memref<1x8x32xf32, #tpu.memory_space<vmem>>, %arg2: memref<32x32xf32, #tpu.memory_space<vmem>>, %arg3: memref<1x32xf32, #tpu.memory_space<vmem>>, %arg4: memref<32x32xf32, #tpu.memory_space<vmem>>, %arg5: memref<1x32xf32, #tpu.memory_space<vmem>>, %arg6: memref<32x32xf32, #tpu.memory_space<vmem>>, %arg7: memref<1x32xf32, #tpu.memory_space<vmem>>, %arg8: memref<32x32xf32, #tpu.memory_space<vmem>>, %arg9: memref<1x32xf32, #tpu.memory_space<vmem>>, %arg10: memref<1x32xf32, #tpu.memory_space<vmem>>, %arg11: memref<1x32xf32, #tpu.memory_space<vmem>>, %arg12: memref<32x64xf32, #tpu.memory_space<vmem>>, %arg13: memref<1x64xf32, #tpu.memory_space<vmem>>, %arg14: memref<64x32xf32, #tpu.memory_space<vmem>>, %arg15: memref<1x32xf32, #tpu.memory_space<vmem>>, %arg16: memref<1x32xf32, #tpu.memory_space<vmem>>, %arg17: memref<1x32xf32, #tpu.memory_space<vmem>>, %arg18: memref<1x8x32xf32, #tpu.memory_space<vmem>>, %arg19: memref<8x32xf32, #tpu.memory_space<vmem>>) attributes {dimension_semantics = [#tpu.dimension_semantics<parallel>], iteration_bounds = array<i64: 2>, scalar_prefetch = 0 : i64, scratch_operands = 1 : i64, tpu.core_type = #tpu.core_type<tc>, window_params = [{transform_indices = @transform_0, window_bounds = array<i64: 1, 8, 32>}, {pipeline_mode = #tpu.pipeline_mode<synchronous>, transform_indices = @transform_1, window_bounds = array<i64: 32, 32>}, {pipeline_mode = #tpu.pipeline_mode<synchronous>, transform_indices = @transform_2, window_bounds = array<i64: 1, 32>}, {pipeline_mode = #tpu.pipeline_mode<synchronous>, transform_indices = @transform_3, window_bounds = array<i64: 32, 32>}, {pipeline_mode = #tpu.pipeline_mode<synchronous>, transform_indices = @transform_4, window_bounds = array<i64: 1, 32>}, {pipeline_mode = #tpu.pipeline_mode<synchronous>, transform_indices = @transform_5, window_bounds = array<i64: 32, 32>}, {pipeline_mode = #tpu.pipeline_mode<synchronous>, transform_indices = @transform_6, window_bounds = array<i64: 1, 32>}, {pipeline_mode = #tpu.pipeline_mode<synchronous>, transform_indices = @transform_7, window_bounds = array<i64: 32, 32>}, {pipeline_mode = #tpu.pipeline_mode<synchronous>, transform_indices = @transform_8, window_bounds = array<i64: 1, 32>}, {pipeline_mode = #tpu.pipeline_mode<synchronous>, transform_indices = @transform_9, window_bounds = array<i64: 1, 32>}, {pipeline_mode = #tpu.pipeline_mode<synchronous>, transform_indices = @transform_10, window_bounds = array<i64: 1, 32>}, {pipeline_mode = #tpu.pipeline_mode<synchronous>, transform_indices = @transform_11, window_bounds = array<i64: 32, 64>}, {pipeline_mode = #tpu.pipeline_mode<synchronous>, transform_indices = @transform_12, window_bounds = array<i64: 1, 64>}, {pipeline_mode = #tpu.pipeline_mode<synchronous>, transform_indices = @transform_13, window_bounds = array<i64: 64, 32>}, {pipeline_mode = #tpu.pipeline_mode<synchronous>, transform_indices = @transform_14, window_bounds = array<i64: 1, 32>}, {pipeline_mode = #tpu.pipeline_mode<synchronous>, transform_indices = @transform_15, window_bounds = array<i64: 1, 32>}, {pipeline_mode = #tpu.pipeline_mode<synchronous>, transform_indices = @transform_16, window_bounds = array<i64: 1, 32>}, {transform_indices = @transform_17, window_bounds = array<i64: 1, 8, 32>}]} {
    %c0 = arith.constant 0 : index
    %c0_0 = arith.constant 0 : index
    %c0_1 = arith.constant 0 : index
    %0 = vector.load %arg1[%c0, %c0_0, %c0_1] : memref<1x8x32xf32, #tpu.memory_space<vmem>>, vector<1x8x32xf32>
    %1 = vector.shape_cast %0 : vector<1x8x32xf32> to vector<8x32xf32>
    %c0_2 = arith.constant 0 : index
    %c0_3 = arith.constant 0 : index
    %2 = vector.load %arg2[%c0_2, %c0_3] : memref<32x32xf32, #tpu.memory_space<vmem>>, vector<32x32xf32>
    %cst = arith.constant dense<0.000000e+00> : vector<8x32xf32>
    %3 = tpu.matmul %1, %2, %cst {dimension_numbers = #tpu.dot_dimension_numbers<[1], [0], [0], [1], [0, 0, 1, 1], [], []>, precision = #tpu.contract_precision<fp32>} : vector<8x32xf32>, vector<32x32xf32>, vector<8x32xf32> -> vector<8x32xf32>
    %c0_4 = arith.constant 0 : index
    %c0_5 = arith.constant 0 : index
    %4 = vector.load %arg3[%c0_4, %c0_5] : memref<1x32xf32, #tpu.memory_space<vmem>>, vector<1x32xf32>
    %5 = vector.broadcast %4 : vector<1x32xf32> to vector<8x32xf32>
    %6 = arith.addf %3, %5 : vector<8x32xf32>
    %c0_6 = arith.constant 0 : index
    %c0_7 = arith.constant 0 : index
    %7 = vector.load %arg4[%c0_6, %c0_7] : memref<32x32xf32, #tpu.memory_space<vmem>>, vector<32x32xf32>
    %cst_8 = arith.constant dense<0.000000e+00> : vector<8x32xf32>
    %8 = tpu.matmul %1, %7, %cst_8 {dimension_numbers = #tpu.dot_dimension_numbers<[1], [0], [0], [1], [0, 0, 1, 1], [], []>, precision = #tpu.contract_precision<fp32>} : vector<8x32xf32>, vector<32x32xf32>, vector<8x32xf32> -> vector<8x32xf32>
    %c0_9 = arith.constant 0 : index
    %c0_10 = arith.constant 0 : index
    %9 = vector.load %arg5[%c0_9, %c0_10] : memref<1x32xf32, #tpu.memory_space<vmem>>, vector<1x32xf32>
    %10 = vector.broadcast %9 : vector<1x32xf32> to vector<8x32xf32>
    %11 = arith.addf %8, %10 : vector<8x32xf32>
    %c0_11 = arith.constant 0 : index
    %c0_12 = arith.constant 0 : index
    %12 = vector.load %arg6[%c0_11, %c0_12] : memref<32x32xf32, #tpu.memory_space<vmem>>, vector<32x32xf32>
    %cst_13 = arith.constant dense<0.000000e+00> : vector<8x32xf32>
    %13 = tpu.matmul %1, %12, %cst_13 {dimension_numbers = #tpu.dot_dimension_numbers<[1], [0], [0], [1], [0, 0, 1, 1], [], []>, precision = #tpu.contract_precision<fp32>} : vector<8x32xf32>, vector<32x32xf32>, vector<8x32xf32> -> vector<8x32xf32>
    %c0_14 = arith.constant 0 : index
    %c0_15 = arith.constant 0 : index
    %14 = vector.load %arg7[%c0_14, %c0_15] : memref<1x32xf32, #tpu.memory_space<vmem>>, vector<1x32xf32>
    %15 = vector.broadcast %14 : vector<1x32xf32> to vector<8x32xf32>
    %16 = arith.addf %13, %15 : vector<8x32xf32>
    %cst_16 = arith.constant 0.353553385 : f32
    %17 = vector.broadcast %cst_16 : f32 to vector<8x32xf32>
    %18 = arith.mulf %6, %17 : vector<8x32xf32>
    %19 = vector.extract_strided_slice %18 {offsets = [0, 0], sizes = [8, 8], strides = [1, 1]} : vector<8x32xf32> to vector<8x8xf32>
    %20 = vector.extract_strided_slice %11 {offsets = [0, 0], sizes = [8, 8], strides = [1, 1]} : vector<8x32xf32> to vector<8x8xf32>
    %21 = vector.extract_strided_slice %16 {offsets = [0, 0], sizes = [8, 8], strides = [1, 1]} : vector<8x32xf32> to vector<8x8xf32>
    %22 = tpu.transpose %20, [1, 0] : vector<8x8xf32> -> vector<8x8xf32>
    %cst_17 = arith.constant dense<0.000000e+00> : vector<8x8xf32>
    %23 = tpu.matmul %19, %22, %cst_17 {dimension_numbers = #tpu.dot_dimension_numbers<[1], [0], [0], [1], [0, 0, 1, 1], [], []>, precision = #tpu.contract_precision<fp32>} : vector<8x8xf32>, vector<8x8xf32>, vector<8x8xf32> -> vector<8x8xf32>
    %cst_18 = arith.constant dense<0xFF800000> : vector<8xf32>
    %24 = vector.multi_reduction <maximumf>, %23, %cst_18 [1] : vector<8x8xf32> to vector<8xf32>
    %25 = vector.shape_cast %24 : vector<8xf32> to vector<8x1xf32>
    %26 = vector.broadcast %25 : vector<8x1xf32> to vector<8x8xf32>
    %27 = arith.subf %23, %26 : vector<8x8xf32>
    %28 = math.exp %27 : vector<8x8xf32>
    %cst_19 = arith.constant dense<0.000000e+00> : vector<8xf32>
    %29 = vector.multi_reduction <add>, %28, %cst_19 [1] : vector<8x8xf32> to vector<8xf32>
    %30 = vector.shape_cast %29 : vector<8xf32> to vector<8x1xf32>
    %31 = tpu.reciprocal %30 {approx = true} : vector<8x1xf32> -> vector<8x1xf32>
    %32 = vector.broadcast %31 : vector<8x1xf32> to vector<8x8xf32>
    %33 = arith.mulf %28, %32 : vector<8x8xf32>
    %cst_20 = arith.constant dense<0.000000e+00> : vector<8x8xf32>
    %34 = tpu.matmul %33, %21, %cst_20 {dimension_numbers = #tpu.dot_dimension_numbers<[1], [0], [0], [1], [0, 0, 1, 1], [], []>, precision = #tpu.contract_precision<fp32>} : vector<8x8xf32>, vector<8x8xf32>, vector<8x8xf32> -> vector<8x8xf32>
    %c0_21 = arith.constant 0 : index
    %c0_22 = arith.constant 0 : index
    %35 = vector.load %arg19[%c0_21, %c0_22] : memref<8x32xf32, #tpu.memory_space<vmem>>, vector<8x8xf32>
    tpu.vector_store %arg19[%c0_21, %c0_22], %34 {strides = array<i32>} : memref<8x32xf32, #tpu.memory_space<vmem>>, vector<8x8xf32>,
    %36 = vector.extract_strided_slice %18 {offsets = [0, 8], sizes = [8, 8], strides = [1, 1]} : vector<8x32xf32> to vector<8x8xf32>
    %37 = vector.extract_strided_slice %11 {offsets = [0, 8], sizes = [8, 8], strides = [1, 1]} : vector<8x32xf32> to vector<8x8xf32>
    %38 = vector.extract_strided_slice %16 {offsets = [0, 8], sizes = [8, 8], strides = [1, 1]} : vector<8x32xf32> to vector<8x8xf32>
    %39 = tpu.transpose %37, [1, 0] : vector<8x8xf32> -> vector<8x8xf32>
    %cst_23 = arith.constant dense<0.000000e+00> : vector<8x8xf32>
    %40 = tpu.matmul %36, %39, %cst_23 {dimension_numbers = #tpu.dot_dimension_numbers<[1], [0], [0], [1], [0, 0, 1, 1], [], []>, precision = #tpu.contract_precision<fp32>} : vector<8x8xf32>, vector<8x8xf32>, vector<8x8xf32> -> vector<8x8xf32>
    %cst_24 = arith.constant dense<0xFF800000> : vector<8xf32>
    %41 = vector.multi_reduction <maximumf>, %40, %cst_24 [1] : vector<8x8xf32> to vector<8xf32>
    %42 = vector.shape_cast %41 : vector<8xf32> to vector<8x1xf32>
    %43 = vector.broadcast %42 : vector<8x1xf32> to vector<8x8xf32>
    %44 = arith.subf %40, %43 : vector<8x8xf32>
    %45 = math.exp %44 : vector<8x8xf32>
    %cst_25 = arith.constant dense<0.000000e+00> : vector<8xf32>
    %46 = vector.multi_reduction <add>, %45, %cst_25 [1] : vector<8x8xf32> to vector<8xf32>
    %47 = vector.shape_cast %46 : vector<8xf32> to vector<8x1xf32>
    %48 = tpu.reciprocal %47 {approx = true} : vector<8x1xf32> -> vector<8x1xf32>
    %49 = vector.broadcast %48 : vector<8x1xf32> to vector<8x8xf32>
    %50 = arith.mulf %45, %49 : vector<8x8xf32>
    %cst_26 = arith.constant dense<0.000000e+00> : vector<8x8xf32>
    %51 = tpu.matmul %50, %38, %cst_26 {dimension_numbers = #tpu.dot_dimension_numbers<[1], [0], [0], [1], [0, 0, 1, 1], [], []>, precision = #tpu.contract_precision<fp32>} : vector<8x8xf32>, vector<8x8xf32>, vector<8x8xf32> -> vector<8x8xf32>
    %c0_27 = arith.constant 0 : index
    %c8 = arith.constant 8 : index
    %52 = vector.load %arg19[%c0_27, %c8] : memref<8x32xf32, #tpu.memory_space<vmem>>, vector<8x8xf32>
    tpu.vector_store %arg19[%c0_27, %c8], %51 {strides = array<i32>} : memref<8x32xf32, #tpu.memory_space<vmem>>, vector<8x8xf32>,
    %53 = vector.extract_strided_slice %18 {offsets = [0, 16], sizes = [8, 8], strides = [1, 1]} : vector<8x32xf32> to vector<8x8xf32>
    %54 = vector.extract_strided_slice %11 {offsets = [0, 16], sizes = [8, 8], strides = [1, 1]} : vector<8x32xf32> to vector<8x8xf32>
    %55 = vector.extract_strided_slice %16 {offsets = [0, 16], sizes = [8, 8], strides = [1, 1]} : vector<8x32xf32> to vector<8x8xf32>
    %56 = tpu.transpose %54, [1, 0] : vector<8x8xf32> -> vector<8x8xf32>
    %cst_28 = arith.constant dense<0.000000e+00> : vector<8x8xf32>
    %57 = tpu.matmul %53, %56, %cst_28 {dimension_numbers = #tpu.dot_dimension_numbers<[1], [0], [0], [1], [0, 0, 1, 1], [], []>, precision = #tpu.contract_precision<fp32>} : vector<8x8xf32>, vector<8x8xf32>, vector<8x8xf32> -> vector<8x8xf32>
    %cst_29 = arith.constant dense<0xFF800000> : vector<8xf32>
    %58 = vector.multi_reduction <maximumf>, %57, %cst_29 [1] : vector<8x8xf32> to vector<8xf32>
    %59 = vector.shape_cast %58 : vector<8xf32> to vector<8x1xf32>
    %60 = vector.broadcast %59 : vector<8x1xf32> to vector<8x8xf32>
    %61 = arith.subf %57, %60 : vector<8x8xf32>
    %62 = math.exp %61 : vector<8x8xf32>
    %cst_30 = arith.constant dense<0.000000e+00> : vector<8xf32>
    %63 = vector.multi_reduction <add>, %62, %cst_30 [1] : vector<8x8xf32> to vector<8xf32>
    %64 = vector.shape_cast %63 : vector<8xf32> to vector<8x1xf32>
    %65 = tpu.reciprocal %64 {approx = true} : vector<8x1xf32> -> vector<8x1xf32>
    %66 = vector.broadcast %65 : vector<8x1xf32> to vector<8x8xf32>
    %67 = arith.mulf %62, %66 : vector<8x8xf32>
    %cst_31 = arith.constant dense<0.000000e+00> : vector<8x8xf32>
    %68 = tpu.matmul %67, %55, %cst_31 {dimension_numbers = #tpu.dot_dimension_numbers<[1], [0], [0], [1], [0, 0, 1, 1], [], []>, precision = #tpu.contract_precision<fp32>} : vector<8x8xf32>, vector<8x8xf32>, vector<8x8xf32> -> vector<8x8xf32>
    %c0_32 = arith.constant 0 : index
    %c16 = arith.constant 16 : index
    %69 = vector.load %arg19[%c0_32, %c16] : memref<8x32xf32, #tpu.memory_space<vmem>>, vector<8x8xf32>
    tpu.vector_store %arg19[%c0_32, %c16], %68 {strides = array<i32>} : memref<8x32xf32, #tpu.memory_space<vmem>>, vector<8x8xf32>,
    %70 = vector.extract_strided_slice %18 {offsets = [0, 24], sizes = [8, 8], strides = [1, 1]} : vector<8x32xf32> to vector<8x8xf32>
    %71 = vector.extract_strided_slice %11 {offsets = [0, 24], sizes = [8, 8], strides = [1, 1]} : vector<8x32xf32> to vector<8x8xf32>
    %72 = vector.extract_strided_slice %16 {offsets = [0, 24], sizes = [8, 8], strides = [1, 1]} : vector<8x32xf32> to vector<8x8xf32>
    %73 = tpu.transpose %71, [1, 0] : vector<8x8xf32> -> vector<8x8xf32>
    %cst_33 = arith.constant dense<0.000000e+00> : vector<8x8xf32>
    %74 = tpu.matmul %70, %73, %cst_33 {dimension_numbers = #tpu.dot_dimension_numbers<[1], [0], [0], [1], [0, 0, 1, 1], [], []>, precision = #tpu.contract_precision<fp32>} : vector<8x8xf32>, vector<8x8xf32>, vector<8x8xf32> -> vector<8x8xf32>
    %cst_34 = arith.constant dense<0xFF800000> : vector<8xf32>
    %75 = vector.multi_reduction <maximumf>, %74, %cst_34 [1] : vector<8x8xf32> to vector<8xf32>
    %76 = vector.shape_cast %75 : vector<8xf32> to vector<8x1xf32>
    %77 = vector.broadcast %76 : vector<8x1xf32> to vector<8x8xf32>
    %78 = arith.subf %74, %77 : vector<8x8xf32>
    %79 = math.exp %78 : vector<8x8xf32>
    %cst_35 = arith.constant dense<0.000000e+00> : vector<8xf32>
    %80 = vector.multi_reduction <add>, %79, %cst_35 [1] : vector<8x8xf32> to vector<8xf32>
    %81 = vector.shape_cast %80 : vector<8xf32> to vector<8x1xf32>
    %82 = tpu.reciprocal %81 {approx = true} : vector<8x1xf32> -> vector<8x1xf32>
    %83 = vector.broadcast %82 : vector<8x1xf32> to vector<8x8xf32>
    %84 = arith.mulf %79, %83 : vector<8x8xf32>
    %cst_36 = arith.constant dense<0.000000e+00> : vector<8x8xf32>
    %85 = tpu.matmul %84, %72, %cst_36 {dimension_numbers = #tpu.dot_dimension_numbers<[1], [0], [0], [1], [0, 0, 1, 1], [], []>, precision = #tpu.contract_precision<fp32>} : vector<8x8xf32>, vector<8x8xf32>, vector<8x8xf32> -> vector<8x8xf32>
    %c0_37 = arith.constant 0 : index
    %c24 = arith.constant 24 : index
    %86 = vector.load %arg19[%c0_37, %c24] : memref<8x32xf32, #tpu.memory_space<vmem>>, vector<8x8xf32>
    tpu.vector_store %arg19[%c0_37, %c24], %85 {strides = array<i32>} : memref<8x32xf32, #tpu.memory_space<vmem>>, vector<8x8xf32>,
    %c0_38 = arith.constant 0 : index
    %c0_39 = arith.constant 0 : index
    %87 = vector.load %arg19[%c0_38, %c0_39] : memref<8x32xf32, #tpu.memory_space<vmem>>, vector<8x32xf32>
    %c0_40 = arith.constant 0 : index
    %c0_41 = arith.constant 0 : index
    %88 = vector.load %arg8[%c0_40, %c0_41] : memref<32x32xf32, #tpu.memory_space<vmem>>, vector<32x32xf32>
    %cst_42 = arith.constant dense<0.000000e+00> : vector<8x32xf32>
    %89 = tpu.matmul %87, %88, %cst_42 {dimension_numbers = #tpu.dot_dimension_numbers<[1], [0], [0], [1], [0, 0, 1, 1], [], []>, precision = #tpu.contract_precision<fp32>} : vector<8x32xf32>, vector<32x32xf32>, vector<8x32xf32> -> vector<8x32xf32>
    %c0_43 = arith.constant 0 : index
    %c0_44 = arith.constant 0 : index
    %90 = vector.load %arg9[%c0_43, %c0_44] : memref<1x32xf32, #tpu.memory_space<vmem>>, vector<1x32xf32>
    %91 = vector.broadcast %90 : vector<1x32xf32> to vector<8x32xf32>
    %92 = arith.addf %89, %91 : vector<8x32xf32>
    %93 = arith.addf %1, %92 : vector<8x32xf32>
    %c0_45 = arith.constant 0 : index
    %c0_46 = arith.constant 0 : index
    %94 = vector.load %arg10[%c0_45, %c0_46] : memref<1x32xf32, #tpu.memory_space<vmem>>, vector<1x32xf32>
    %c0_47 = arith.constant 0 : index
    %c0_48 = arith.constant 0 : index
    %95 = vector.load %arg11[%c0_47, %c0_48] : memref<1x32xf32, #tpu.memory_space<vmem>>, vector<1x32xf32>
    %cst_49 = arith.constant dense<0.000000e+00> : vector<8xf32>
    %96 = vector.multi_reduction <add>, %93, %cst_49 [1] : vector<8x32xf32> to vector<8xf32>
    %97 = vector.shape_cast %96 : vector<8xf32> to vector<8x1xf32>
    %cst_50 = arith.constant 3.200000e+01 : f32
    %98 = vector.broadcast %cst_50 : f32 to vector<8x1xf32>
    %99 = arith.divf %97, %98 : vector<8x1xf32>
    %100 = vector.broadcast %99 : vector<8x1xf32> to vector<8x32xf32>
    %101 = arith.subf %93, %100 : vector<8x32xf32>
    %102 = arith.mulf %101, %101 : vector<8x32xf32>
    %cst_51 = arith.constant dense<0.000000e+00> : vector<8xf32>
    %103 = vector.multi_reduction <add>, %102, %cst_51 [1] : vector<8x32xf32> to vector<8xf32>
    %104 = vector.shape_cast %103 : vector<8xf32> to vector<8x1xf32>
    %cst_52 = arith.constant 3.200000e+01 : f32
    %105 = vector.broadcast %cst_52 : f32 to vector<8x1xf32>
    %106 = arith.divf %104, %105 : vector<8x1xf32>
    %107 = vector.broadcast %99 : vector<8x1xf32> to vector<8x32xf32>
    %108 = arith.subf %93, %107 : vector<8x32xf32>
    %cst_53 = arith.constant 9.99999974E-6 : f32
    %109 = vector.broadcast %cst_53 : f32 to vector<8x1xf32>
    %110 = arith.addf %106, %109 : vector<8x1xf32>
    %111 = math.rsqrt %110 : vector<8x1xf32>
    %112 = vector.broadcast %111 : vector<8x1xf32> to vector<8x32xf32>
    %113 = arith.mulf %108, %112 : vector<8x32xf32>
    %114 = vector.broadcast %94 : vector<1x32xf32> to vector<8x32xf32>
    %115 = arith.mulf %113, %114 : vector<8x32xf32>
    %116 = vector.broadcast %95 : vector<1x32xf32> to vector<8x32xf32>
    %117 = arith.addf %115, %116 : vector<8x32xf32>
    %c0_54 = arith.constant 0 : index
    %c0_55 = arith.constant 0 : index
    %118 = vector.load %arg13[%c0_54, %c0_55] : memref<1x64xf32, #tpu.memory_space<vmem>>, vector<1x64xf32>
    %c0_56 = arith.constant 0 : index
    %c0_57 = arith.constant 0 : index
    %119 = vector.load %arg15[%c0_56, %c0_57] : memref<1x32xf32, #tpu.memory_space<vmem>>, vector<1x32xf32>
    %c0_58 = arith.constant 0 : index
    %c0_59 = arith.constant 0 : index
    %120 = vector.load %arg16[%c0_58, %c0_59] : memref<1x32xf32, #tpu.memory_space<vmem>>, vector<1x32xf32>
    %c0_60 = arith.constant 0 : index
    %c0_61 = arith.constant 0 : index
    %121 = vector.load %arg17[%c0_60, %c0_61] : memref<1x32xf32, #tpu.memory_space<vmem>>, vector<1x32xf32>
    %c0_62 = arith.constant 0 : index
    %c0_63 = arith.constant 0 : index
    %122 = vector.load %arg12[%c0_62, %c0_63] : memref<32x64xf32, #tpu.memory_space<vmem>>, vector<32x64xf32>
    %cst_64 = arith.constant dense<0.000000e+00> : vector<8x64xf32>
    %123 = tpu.matmul %117, %122, %cst_64 {dimension_numbers = #tpu.dot_dimension_numbers<[1], [0], [0], [1], [0, 0, 1, 1], [], []>, precision = #tpu.contract_precision<fp32>} : vector<8x32xf32>, vector<32x64xf32>, vector<8x64xf32> -> vector<8x64xf32>
    %124 = vector.broadcast %118 : vector<1x64xf32> to vector<8x64xf32>
    %125 = arith.addf %123, %124 : vector<8x64xf32>
    %cst_65 = arith.constant 0.000000e+00 : f32
    %126 = vector.broadcast %cst_65 : f32 to vector<8x64xf32>
    %127 = arith.maximumf %125, %126 : vector<8x64xf32>
    %c0_66 = arith.constant 0 : index
    %c0_67 = arith.constant 0 : index
    %128 = vector.load %arg14[%c0_66, %c0_67] : memref<64x32xf32, #tpu.memory_space<vmem>>, vector<64x32xf32>
    %cst_68 = arith.constant dense<0.000000e+00> : vector<8x32xf32>
    %129 = tpu.matmul %127, %128, %cst_68 {dimension_numbers = #tpu.dot_dimension_numbers<[1], [0], [0], [1], [0, 0, 1, 1], [], []>, precision = #tpu.contract_precision<fp32>} : vector<8x64xf32>, vector<64x32xf32>, vector<8x32xf32> -> vector<8x32xf32>
    %130 = vector.broadcast %119 : vector<1x32xf32> to vector<8x32xf32>
    %131 = arith.addf %129, %130 : vector<8x32xf32>
    %132 = arith.addf %117, %131 : vector<8x32xf32>
    %cst_69 = arith.constant dense<0.000000e+00> : vector<8xf32>
    %133 = vector.multi_reduction <add>, %132, %cst_69 [1] : vector<8x32xf32> to vector<8xf32>
    %134 = vector.shape_cast %133 : vector<8xf32> to vector<8x1xf32>
    %cst_70 = arith.constant 3.200000e+01 : f32
    %135 = vector.broadcast %cst_70 : f32 to vector<8x1xf32>
    %136 = arith.divf %134, %135 : vector<8x1xf32>
    %137 = vector.broadcast %136 : vector<8x1xf32> to vector<8x32xf32>
    %138 = arith.subf %132, %137 : vector<8x32xf32>
    %139 = arith.mulf %138, %138 : vector<8x32xf32>
    %cst_71 = arith.constant dense<0.000000e+00> : vector<8xf32>
    %140 = vector.multi_reduction <add>, %139, %cst_71 [1] : vector<8x32xf32> to vector<8xf32>
    %141 = vector.shape_cast %140 : vector<8xf32> to vector<8x1xf32>
    %cst_72 = arith.constant 3.200000e+01 : f32
    %142 = vector.broadcast %cst_72 : f32 to vector<8x1xf32>
    %143 = arith.divf %141, %142 : vector<8x1xf32>
    %144 = vector.broadcast %136 : vector<8x1xf32> to vector<8x32xf32>
    %145 = arith.subf %132, %144 : vector<8x32xf32>
    %cst_73 = arith.constant 9.99999974E-6 : f32
    %146 = vector.broadcast %cst_73 : f32 to vector<8x1xf32>
    %147 = arith.addf %143, %146 : vector<8x1xf32>
    %148 = math.rsqrt %147 : vector<8x1xf32>
    %149 = vector.broadcast %148 : vector<8x1xf32> to vector<8x32xf32>
    %150 = arith.mulf %145, %149 : vector<8x32xf32>
    %151 = vector.broadcast %120 : vector<1x32xf32> to vector<8x32xf32>
    %152 = arith.mulf %150, %151 : vector<8x32xf32>
    %153 = vector.broadcast %121 : vector<1x32xf32> to vector<8x32xf32>
    %154 = arith.addf %152, %153 : vector<8x32xf32>
    %c0_74 = arith.constant 0 : index
    %c0_75 = arith.constant 0 : index
    %c0_76 = arith.constant 0 : index
    %155 = vector.load %arg18[%c0_74, %c0_75, %c0_76] : memref<1x8x32xf32, #tpu.memory_space<vmem>>, vector<1x8x32xf32>
    %156 = vector.shape_cast %155 : vector<1x8x32xf32> to vector<8x32xf32>
    %157 = vector.shape_cast %154 : vector<8x32xf32> to vector<1x8x32xf32>
    tpu.vector_store %arg18[%c0_74, %c0_75, %c0_76], %157 {strides = array<i32>} : memref<1x8x32xf32, #tpu.memory_space<vmem>>, vector<1x8x32xf32>,
    return
  }
  func.func @transform_0(%arg0: i32) -> (i32, i32, i32) {
    %c0_i32 = arith.constant 0 : i32
    %c0_i32_0 = arith.constant 0 : i32
    %c0_i32_1 = arith.constant 0 : i32
    return %arg0, %c0_i32, %c0_i32_0 : i32, i32, i32
  }
  func.func @transform_1(%arg0: i32) -> (i32, i32) {
    %c0_i32 = arith.constant 0 : i32
    %c0_i32_0 = arith.constant 0 : i32
    %c0_i32_1 = arith.constant 0 : i32
    return %c0_i32, %c0_i32_0 : i32, i32
  }
  func.func @transform_2(%arg0: i32) -> (i32, i32) {
    %c0_i32 = arith.constant 0 : i32
    %c0_i32_0 = arith.constant 0 : i32
    %c0_i32_1 = arith.constant 0 : i32
    return %c0_i32, %c0_i32_0 : i32, i32
  }
  func.func @transform_3(%arg0: i32) -> (i32, i32) {
    %c0_i32 = arith.constant 0 : i32
    %c0_i32_0 = arith.constant 0 : i32
    %c0_i32_1 = arith.constant 0 : i32
    return %c0_i32, %c0_i32_0 : i32, i32
  }
  func.func @transform_4(%arg0: i32) -> (i32, i32) {
    %c0_i32 = arith.constant 0 : i32
    %c0_i32_0 = arith.constant 0 : i32
    %c0_i32_1 = arith.constant 0 : i32
    return %c0_i32, %c0_i32_0 : i32, i32
  }
  func.func @transform_5(%arg0: i32) -> (i32, i32) {
    %c0_i32 = arith.constant 0 : i32
    %c0_i32_0 = arith.constant 0 : i32
    %c0_i32_1 = arith.constant 0 : i32
    return %c0_i32, %c0_i32_0 : i32, i32
  }
  func.func @transform_6(%arg0: i32) -> (i32, i32) {
    %c0_i32 = arith.constant 0 : i32
    %c0_i32_0 = arith.constant 0 : i32
    %c0_i32_1 = arith.constant 0 : i32
    return %c0_i32, %c0_i32_0 : i32, i32
  }
  func.func @transform_7(%arg0: i32) -> (i32, i32) {
    %c0_i32 = arith.constant 0 : i32
    %c0_i32_0 = arith.constant 0 : i32
    %c0_i32_1 = arith.constant 0 : i32
    return %c0_i32, %c0_i32_0 : i32, i32
  }
  func.func @transform_8(%arg0: i32) -> (i32, i32) {
    %c0_i32 = arith.constant 0 : i32
    %c0_i32_0 = arith.constant 0 : i32
    %c0_i32_1 = arith.constant 0 : i32
    return %c0_i32, %c0_i32_0 : i32, i32
  }
  func.func @transform_9(%arg0: i32) -> (i32, i32) {
    %c0_i32 = arith.constant 0 : i32
    %c0_i32_0 = arith.constant 0 : i32
    %c0_i32_1 = arith.constant 0 : i32
    return %c0_i32, %c0_i32_0 : i32, i32
  }
  func.func @transform_10(%arg0: i32) -> (i32, i32) {
    %c0_i32 = arith.constant 0 : i32
    %c0_i32_0 = arith.constant 0 : i32
    %c0_i32_1 = arith.constant 0 : i32
    return %c0_i32, %c0_i32_0 : i32, i32
  }
  func.func @transform_11(%arg0: i32) -> (i32, i32) {
    %c0_i32 = arith.constant 0 : i32
    %c0_i32_0 = arith.constant 0 : i32
    %c0_i32_1 = arith.constant 0 : i32
    return %c0_i32, %c0_i32_0 : i32, i32
  }
  func.func @transform_12(%arg0: i32) -> (i32, i32) {
    %c0_i32 = arith.constant 0 : i32
    %c0_i32_0 = arith.constant 0 : i32
    %c0_i32_1 = arith.constant 0 : i32
    return %c0_i32, %c0_i32_0 : i32, i32
  }
  func.func @transform_13(%arg0: i32) -> (i32, i32) {
    %c0_i32 = arith.constant 0 : i32
    %c0_i32_0 = arith.constant 0 : i32
    %c0_i32_1 = arith.constant 0 : i32
    return %c0_i32, %c0_i32_0 : i32, i32
  }
  func.func @transform_14(%arg0: i32) -> (i32, i32) {
    %c0_i32 = arith.constant 0 : i32
    %c0_i32_0 = arith.constant 0 : i32
    %c0_i32_1 = arith.constant 0 : i32
    return %c0_i32, %c0_i32_0 : i32, i32
  }
  func.func @transform_15(%arg0: i32) -> (i32, i32) {
    %c0_i32 = arith.constant 0 : i32
    %c0_i32_0 = arith.constant 0 : i32
    %c0_i32_1 = arith.constant 0 : i32
    return %c0_i32, %c0_i32_0 : i32, i32
  }
  func.func @transform_16(%arg0: i32) -> (i32, i32) {
    %c0_i32 = arith.constant 0 : i32
    %c0_i32_0 = arith.constant 0 : i32
    %c0_i32_1 = arith.constant 0 : i32
    return %c0_i32, %c0_i32_0 : i32, i32
  }
  func.func @transform_17(%arg0: i32) -> (i32, i32, i32) {
    %c0_i32 = arith.constant 0 : i32
    %c0_i32_0 = arith.constant 0 : i32
    %c0_i32_1 = arith.constant 0 : i32
    return %arg0, %c0_i32, %c0_i32_0 : i32, i32, i32
  }
}

</mosaic_0001>

<bundles_post_ra>
// kernel: tpu_custom_call.1
= control target key start
LH: loop header
LB: loop body
LE: loop exit
PB: predicated region body
PF: predicated region fallthrough
CT: control target
= control target key end

     0   :  { %s4183_s0 = inlined_call_operand.hbm [shape: f32[2,8,32], index: 0, kind: input, shape index: {}]   ;;  %s4184_s1 = inlined_call_operand.vmem [shape: f32[32,32], index: 1, kind: input, shape index: {}]   ;;  %s4185_s2 = inlined_call_operand.vmem [shape: f32[1,32], index: 2, kind: input, shape index: {}]   ;;  %s4186_s3 = inlined_call_operand.vmem [shape: f32[32,32], index: 3, kind: input, shape index: {}]   ;;  %s4187_s4 = inlined_call_operand.vmem [shape: f32[1,32], index: 4, kind: input, shape index: {}]   ;;  %s4188_s5 = inlined_call_operand.vmem [shape: f32[32,32], index: 5, kind: input, shape index: {}]   ;;  %s4189_s6 = inlined_call_operand.vmem [shape: f32[1,32], index: 6, kind: input, shape index: {}]   ;;  %s4190_s7 = inlined_call_operand.hbm [shape: f32[32,32], index: 7, kind: input, shape index: {}]   ;;  %s4191_s8 = inlined_call_operand.vmem [shape: f32[1,32], index: 8, kind: input, shape index: {}]   ;;  %s4192_s9 = inlined_call_operand.vmem [shape: f32[1,32], index: 9, kind: input, shape index: {}]   ;;  %s4193_s10 = inlined_call_operand.vmem [shape: f32[1,32], index: 10, kind: input, shape index: {}]   ;;  %s4194_s11 = inlined_call_operand.hbm [shape: f32[32,64], index: 11, kind: input, shape index: {}]   ;;  %s4195_s12 = inlined_call_operand.vmem [shape: f32[1,64], index: 12, kind: input, shape index: {}]   ;;  %s4196_s13 = inlined_call_operand.vmem [shape: f32[64,32], index: 13, kind: input, shape index: {}]   ;;  %s4197_s14 = inlined_call_operand.vmem [shape: f32[1,32], index: 14, kind: input, shape index: {}]   ;;  %s4198_s15 = inlined_call_operand.vmem [shape: f32[1,32], index: 15, kind: input, shape index: {}]   ;;  %s4199_s16 = inlined_call_operand.vmem [shape: f32[1,32], index: 16, kind: input, shape index: {}]   ;;  %s4200_s17 = inlined_call_operand.hbm [shape: f32[2,8,32], index: 17, kind: output, shape index: {}]  }
   0x1   :  { %4211 = sst [smem:[#allocation19_spill]] %s4183_s0 }
   0x2   :  { %4212 = sst [smem:[#allocation20_spill]] %s4184_s1 }
   0x3   :  { %4213 = sst [smem:[#allocation21_spill]] %s4185_s2 }
   0x4   :  { %4214 = sst [smem:[#allocation22_spill]] %s4186_s3 }
   0x5   :  { %4215 = sst [smem:[#allocation23_spill]] %s4190_s7 }
   0x6   :  { %4216 = sst [smem:[#allocation24_spill]] %s4194_s11 }
   0x7   :  { %4217 = sst [smem:[#allocation25_spill]] %s4198_s15 }
   0x8   :  { %4218 = sst [smem:[#allocation26_spill]] %s4199_s16 }
   0x9   :  { %4219 = sst [smem:[#allocation27_spill]] %s4200_s17 }
   0xa   :  { %22 = vsyncpa [#allocation4], 0 }
   0xb   :  { %24 = vsyncpa [#allocation4 + $0x1], 0 }
   0xc   :  { %25 = vsyncpa [#allocation7], 0 }
   0xd   :  { %26 = vsyncpa [#allocation5], 0 }
   0xe   :  { %28 = vsyncpa [#allocation5 + $0x1], 0  ;;  %s3682_s24 = smov 0   ;;  %s3684_s25 = smov 0  }
   0xf   :  { %s3686_s26 = smov 0   ;;  %s3688_s27 = smov 0  }
  0x10 LB: > { %4220 = sst [smem:[#allocation13_spill]] %s3567_s24  ;;  %s3706_s30 = sadd.s32 4294967295, %s3579_s27   ;;  %s3579_s27 = sphi %s3688_s27, %s4247_s27   ;;  %s3575_s26 = sphi %s3686_s26, %s4249_s26   ;;  %s3571_s25 = sphi %s3684_s25, %s4251_s25   ;;  %s3567_s24 = sphi %s3682_s24, %s4250_s24  }
  0x11   : > { %4221 = sst [smem:[#allocation14_spill]] %s3575_s26  ;;  %p3295_p0 = scmp.ge.s32.totalorder %s3579_s27, 1 }
  0x12   : > { %s4222_s7 = sld [smem:[#allocation23_spill]]  ;;  %p55_p1 = scmp.eq.s32.totalorder %s3706_s30, 0 }
  0x13   : > { %p427_p2 = scmp.lt.s32.totalorder %s3579_s27, 3  ;;  %s3581_s19 = smov [#allocation6]  }
  0x14   : > { %s458_s1 = sshll.u32 %s3581_s19, 4  ;;  %s4224_s11 = sld [smem:[#allocation24_spill]]  ;;  %s459_s1 = int_to_ptr.vmem [resolvable:$true] %s458_s1 }
  0x15   : > { %p3711_p3 = pnand %p3295_p0, %p427_p2  ;;  %s3582_s23 = smov [#allocation8]  }
  0x16   : > { %s481_s28 = sshll.u32 %s3582_s23, 4  ;;  %s3583_s29 = smov 128   ;;  %s482_s28 = int_to_ptr.vmem [resolvable:$true] %s481_s28 }
  0x17   : > { %p3322_p4 = pneg %p3711_p3  ;;  %s3584_s19 = smov 8  }
  0x18   : > { %s456_s0 = sshll.u32 %s4222_s7, 4  ;;  %s3294_s20 = sadd.s32 4294967294, %s3579_s27   ;;  %s457_s0 = int_to_ptr.hbm [resolvable:$true] %s456_s0 }
  0x19   : > { %p3323_p6 = pnand %p3322_p4, %p55_p1  ;;  %s3725_s21 = sadd.s32 1, %s3579_s27  }
  0x1a   : > { %s479_s22 = sshll.u32 %s4224_s11, 4  ;;  %4225 = sst [smem:[#allocation15_spill]] %s3725_s21  ;;  %s480_s22 = int_to_ptr.hbm [resolvable:$true] %s479_s22 }
  0x1b   : > { %3325 = dma.hbm_to_vmem [thread:$0]  (!%p3323_p6), %s457_s0, 512, %s459_s1, [#allocation7], %s3583_s29, %s3583_s29, %s3584_s19  }
  0x1c   : > { %3328 = dma.hbm_to_vmem [thread:$0]  (!%p3323_p6), %s480_s22, 512, %s482_s28, [#allocation7], %s3583_s29, %s3583_s29, %s3584_s19  }
  0x1d   : > { %s38_s7 = ssub.s32 %s3579_s27, %s3725_s21  ;;  %s41_s11 = sadd.s32 1, %s3575_s26 }
  0x1e   : > { %p39_p7 = scmp.eq.s32.totalorder %s38_s7, 0  ;;  %p48_p8 = scmp.ne.s32.totalorder %s3575_s26, %s3571_s25 }
  0x1f   : > { %p49_p9 = scmp.eq.s32.totalorder %s3579_s27, 0  ;;  %p54_p10 = scmp.ne.s32.totalorder %s3571_s25, %s3567_s24 }
  0x20   : > { %s3736_s23 = scalar_select %p39_p7, %s3575_s26, %s41_s11  }
  0x21   : > { %p3738_p11 = por %p49_p9, %p48_p8  ;;  %p3744_p12 = por %p55_p1, %p54_p10 }
  0x22   : > { %4226 = sst [smem:[#allocation16_spill]] %s3736_s23  ;;  %p414_p13 = scmp.eq.s32.totalorder %s3706_s30, 1 }
  0x23   : > { %p420_p0 = scmp.eq.s32.totalorder %s3294_s20, 1  ;;  %p3339_p2 = scmp.lt.s32.totalorder %s3579_s27, 2 }
  0x24   : > { %s510_s1 = sand.u32 1, %s3575_s26   ;;  %p3751_p4 = por %p414_p13, %p48_p8 }
  0x25   : > { %p3755_p6 = por %p420_p0, %p54_p10  ;;  %s3299_s22 = sshll.u32 %s510_s1, 3 }
  0x26   : > { %s4229_s7 = scalar_select %p3751_p4, 1, 0 }
  0x27   : > { %s4231_s11 = scalar_select %p3755_p6, 1, 0 }
  0x28   : > { %4230 = sst [smem:[#allocation17_spill]] %s4229_s7  ;;  %s3300_s28 = sshll.u32 %s3579_s27, 3 }
  0x29   : > { %4232 = sst [smem:[#allocation18_spill]] %s4231_s11  ;;  %s514_s24 = scalar_lea.vmem [#allocation3], %s3299_s22 }
  0x2a   : > { %s4233_s23 = sld [smem:[#allocation19_spill]]  ;;  %s522_s17 = sshll.u32 %s514_s24, 4  ;;  %s523_s17 = int_to_ptr.vmem [resolvable:$true] %s522_s17 }
  0x2b   : > { %p3765_p7 = pnand %p3339_p2, %p3738_p11  ;;  %s511_s26 = scalar_lea.sflag [#allocation4], %s510_s1 }
  0x2d   : > { %p3483_p9 = pneg %p3765_p7 }
  0x30   : > { %s518_s21 = scalar_lea.hbm %s4233_s23, %s3300_s28 }
  0x31   : > { %s520_s15 = sshll.u32 %s518_s21, 4  ;;  %s3486_s21 = scalar_lea.hbm %s4233_s23, 16  ;;  %s521_s15 = int_to_ptr.hbm [resolvable:$true] %s520_s15 }
  0x32   : > { %s3479_s7 = sshra.s32 %s521_s15, 4  ;;  %s3480_s7 = int_to_ptr.hbm [resolvable:$true] %s3479_s7 }
  0x33   : > { %s3481_s11 = scalar_lea.hbm %s3480_s7, 8  ;;  %p3487_p11 = scmp.lt.s32.totalorder %s3480_s7, %s4233_s23 }
  0x34   : > { %p3482_p8 = scmp.ne.s32.totalorder %s3480_s7, %s3481_s11  ;;  %p3488_p0 = scmp.lt.s32.totalorder %s3486_s21, %s3481_s11 }
  0x36   : > { %p3484_p10 = pnand %p3483_p9, %p3482_p8  ;;  %p3489_p2 = por %p3488_p0, %p3487_p11 }
  0x38   : > { %p3485_p13 = pneg %p3484_p10 }
  0x3a   : > { %p3490_p5 = pnand %p3489_p2, %p3485_p13 }
  0x3c   : > { %3493 = shalt.err (!%p3490_p5)
}
  0x3d   : > { %3332 = dma.hbm_to_vmem [thread:$0]  (!%p3765_p7), %s521_s15, 128, %s523_s17, %s511_s26  }
  0x3e   : > { %531 = sbr.rel (%p3711_p3) target bundleno = 3187 (0xc73), region = 88  ;;  %s3782_s1 = sand.u32 (!%p3711_p3), 1, %s3571_s25  }
  0x3f   : > { %s3302_s29 = sshll.u32 (!%p3711_p3), %s3782_s1, 3  ;;  %s534_s19 = scalar_lea.sflag (!%p3711_p3), [#allocation4], %s3782_s1 }
  0x40   : > { %s3788_s7 = scalar_lea.vmem (!%p3711_p3), [#allocation3], %s3302_s29 }
  0x43   : > { %3554 = dma.done.wait (%p3744_p12), %s534_s19, 128  }
  0x44   : > { %3556 = vsyncadd (%p3744_p12), %s534_s19, 4294967168 }
  0x45   : > { %3558 = dma.done.wait (%p55_p1), [#allocation7], 1024  }
  0x46   : > { %3560 = vsyncadd (%p55_p1), [#allocation7], 4294966272  ;;  %vm608_vm0 = vcmask 261120   ;;  %s4235_s26 = sld [smem:[#allocation20_spill]]  ;;  %v599_v7 = vld [vmem:[%s3788_s7] sm:$0xff]  ;;  %v993_v52 = vld [vmem:[%s4188_s5 + $0x18] sm:$0xff] }
  0x47   : > { %s4237_s3 = sld [smem:[#allocation22_spill]]  ;;  %v610_v10 = vsel %vm608_vm0, %v599_v7, 0  ;;  %v992_v55 = vld [vmem:[%s4188_s5 + $0x10] sm:$0xff]  ;;  %v3902_v56 = vand.u32 4294901760, %v993_v52  ;;  %v991_v59 = vld [vmem:[%s4188_s5 + $0x8] sm:$0xff]  ;;  %vm1184_vm1 = vcmask 64512  }
  0x48   : > { %v3838_v17 = vand.u32 4294901760, %v610_v10  ;;  %v3907_v58 = vand.u32 4294901760, %v992_v55  ;;  %v3915_v61 = vand.u32 4294901760, %v991_v59  ;;  %s4238_s2 = sld [smem:[#allocation21_spill]]  ;;  %s3585_s22 = smov 120   ;;  %vm1820_vm2 = vcmask 130112  }
  0x49   : > { %v1040_v60 = vsub.f32 %v993_v52, %v3902_v56  ;;  %s3586_s24 = smov 112   ;;  %s3587_s28 = smov 104   ;;  %vm2143_vm3 = vcmask 195712   ;;  %vm2466_vm4 = vcmask 261312   ;;  %vm2916_vm9 = vcmask 523264  }
  0x4a   : > { %v3855_v25 = vsub.f32 %v610_v10, %v3838_v17  ;;  %v1046_v62 = vsub.f32 %v992_v55, %v3907_v58  ;;  %s3588_s16 = smov 8   ;;  %s3589_s19 = smov 16  }
  0x4b   : > { %v1041_v63 = vand.u32 4294901760, %v1040_v60  ;;  %s3590_s15 = smov 24   ;;  %s3307_s17 = sshll.u32 %s3706_s30, 3 }
  0x4c   : > { %s4236_s18 = smov %s4235_s26  ;;  %v603_v0 = vld [vmem:[%s4235_s26 + $0x18] sm:$0xff]  ;;  %v3869_v34 = vand.u32 4294901760, %v3855_v25  ;;  %s4239_s11 = sld [smem:[#allocation25_spill]] }
  0x4d   : > { %v602_v1 = vld [vmem:[%s4236_s18 + $0x10] sm:$0xff]  ;;  %v601_v2 = vld [vmem:[%s4236_s18 + $0x8] sm:$0xff]  ;;  %v3807_v3 = vand.u32 4294901760, %v603_v0  ;;  %v600_v6 = vld [vmem:[%s4236_s18] sm:$0xff]  ;;  %s598_s30 = scalar_lea.vmem [#allocation9], %s3302_s29  ;;  %s3190_s26 = scalar_lea.sflag [#allocation5], %s3782_s1 }
  0x4e   : > { %v3809_v4 = vand.u32 4294901760, %v602_v1  ;;  %v3811_v5 = vand.u32 4294901760, %v601_v2  ;;  %v800_v8 = vld [vmem:[%s4237_s3 + $0x18] sm:$0xff]  ;;  %v3820_v9 = vand.u32 4294901760, %v600_v6  ;;  %v799_v12 = vld [vmem:[%s4237_s3 + $0x10] sm:$0xff]  ;;  %v798_v13 = vld [vmem:[%s4237_s3 + $0x8] sm:$0xff]  ;;  %v635_v40 = vsub.f32 %v3855_v25, %v3869_v34 }
  0x4f   : > { %v3823_v11 = vand.u32 4294901760, %v800_v8  ;;  %v654_v14 = vsub.f32 %v603_v0, %v3807_v3  ;;  %625 = vmatpush.msra.mxu0 %v3807_v3  ;;  %725 = vmatpush.msra.mxu3 %v3807_v3  ;;  %v797_v18 = vld [vmem:[%s4237_s3] sm:$0xff]  ;;  %v3846_v20 = vand.u32 4294901760, %v799_v12  ;;  %v3851_v22 = vand.u32 4294901760, %v798_v13 }
  0x50   : > { %v660_v15 = vsub.f32 %v602_v1, %v3809_v4  ;;  %v3836_v16 = vsub.f32 %v601_v2, %v3811_v5  ;;  %v3844_v19 = vsub.f32 %v600_v6, %v3820_v9  ;;  %v3864_v30 = vand.u32 4294901760, %v797_v18 }
  0x51   : > { %v3849_v21 = vsub.f32 %v800_v8, %v3823_v11  ;;  %696 = vmatpush.msra.mxu2 %v654_v14  ;;  %627 = vmatpush.msra.mxu0 %v3809_v4  ;;  %v655_v23 = vand.u32 4294901760, %v654_v14  ;;  %v3862_v29 = vsub.f32 %v799_v12, %v3846_v20  ;;  %v3875_v37 = vsub.f32 %v798_v13, %v3851_v22 }
  0x52   : > { %v661_v24 = vand.u32 4294901760, %v660_v15  ;;  %v667_v26 = vand.u32 4294901760, %v3836_v16  ;;  %727 = vmatpush.msra.mxu3 %v3809_v4  ;;  %v673_v27 = vand.u32 4294901760, %v3844_v19  ;;  %v3886_v46 = vand.u32 4294901760, %v635_v40 }
  0x53   : > { %v848_v28 = vand.u32 4294901760, %v3849_v21  ;;  %699 = vmatpush.msra.mxu2 %v660_v15  ;;  %v656_v31 = vsub.f32 %v654_v14, %v655_v23  ;;  %629 = vmatpush.msra.mxu0 %v3811_v5  ;;  %v854_v36 = vand.u32 4294901760, %v3862_v29  ;;  %v860_v44 = vand.u32 4294901760, %v3875_v37 }
  0x54   : > { %v662_v32 = vsub.f32 %v660_v15, %v661_v24  ;;  %v668_v33 = vsub.f32 %v3836_v16, %v667_v26  ;;  %729 = vmatpush.msra.mxu3 %v3811_v5  ;;  %v674_v41 = vsub.f32 %v3844_v19, %v673_v27  ;;  %v865_v47 = vsub.f32 %v797_v18, %v3864_v30  ;;  %v3386_v15 = vld [vmem:[%s4238_s2] ss:$0 sm:$0xff]  ;;  %s3202_s2 = sshll.u32 %s598_s30, 4  ;;  %s3203_s2 = int_to_ptr.vmem [resolvable:$true] %s3202_s2 }
  0x55   : > { %v849_v35 = vsub.f32 %v3849_v21, %v848_v28  ;;  %v657_v38 = vand.u32 4294901760, %v656_v31  ;;  %702 = vmatpush.msra.mxu2 %v3836_v16  ;;  %631 = vmatpush.msra.mxu0 %v3820_v9  ;;  %v855_v43 = vsub.f32 %v3862_v29, %v854_v36  ;;  %v861_v49 = vsub.f32 %v3875_v37, %v860_v44 }
  0x56   : > { %v663_v39 = vand.u32 4294901760, %v662_v32  ;;  %731 = vmatpush.msra.mxu3 %v3820_v9  ;;  %v669_v45 = vand.u32 4294901760, %v668_v33  ;;  %v675_v50 = vand.u32 4294901760, %v674_v41  ;;  %v866_v51 = vand.u32 4294901760, %v865_v47  ;;  %637 = vmatmul.f32.vlgmr.msra.gmra.mxu0 %v3886_v46 }
  0x57   : > { %754 = vmatpush.msrb.mxu0 %v655_v23  ;;  %v850_v42 = vand.u32 4294901760, %v849_v35  ;;  %658 = vmatpush.msra.mxu1 %v657_v38  ;;  %v856_v48 = vand.u32 4294901760, %v855_v43  ;;  %v862_v54 = vand.u32 4294901760, %v861_v49  ;;  %v1052_v0 = vsub.f32 %v991_v59, %v3915_v61 }
  0x58   : > { %705 = vmatpush.msra.mxu2 %v3844_v19  ;;  %735 = vmatmul.f32.vlgmr.msra.gmra.mxu3 %v3869_v34  ;;  %v867_v53 = vsub.f32 %v865_v47, %v866_v51  ;;  %v1047_v1 = vand.u32 4294901760, %v1046_v62  ;;  %v1042_v2 = vsub.f32 %v1040_v60, %v1041_v63 }
  0x59   : > { %708 = vmatmul.f32.vlgmr.msra.gmra.mxu2 %v3855_v25  ;;  %664 = vmatpush.msra.mxu1 %v663_v39 }
  0x5a   : > { %818 = vmatpush.msrb.mxu2 %v3823_v11  ;;  %851 = vmatpush.msrb.mxu3 %v850_v42  ;;  %v868_v57 = vand.u32 4294901760, %v867_v53  ;;  %v1043_v6 = vand.u32 4294901760, %v1042_v2 }
  0x5b   : > { %670 = vmatpush.msra.mxu1 %v669_v45  ;;  %758 = vmatpush.msrb.mxu0 %v661_v24 }
  0x5c   : > { %820 = vmatpush.msrb.mxu2 %v3846_v20  ;;  %857 = vmatpush.msrb.mxu3 %v856_v48 }
  0x5d   : > { %676 = vmatpush.msra.mxu1 %v675_v50  ;;  %762 = vmatpush.msrb.mxu0 %v667_v26  ;;  %v3387_v26 = vld [vmem:[%s4187_s4] ss:$0 sm:$0xff] }
  0x5e   : > { %822 = vmatpush.msrb.mxu2 %v3851_v22  ;;  %678 = vmatmul.f32.vlgmr.msra.gmra.mxu1 %v3838_v17 }
  0x5f   : > { %785 = vmatpush.msrb.mxu1 %v3807_v3  ;;  %863 = vmatpush.msrb.mxu3 %v862_v54  ;;  %v1053_v3 = vand.u32 4294901760, %v1052_v0  ;;  %v3388_v54 = vld [vmem:[%s4189_s6] ss:$0 sm:$0xff] }
  0x60   : > { %824 = vmatpush.msrb.mxu2 %v3864_v30  ;;  %766 = vmatpush.msrb.mxu0 %v673_v27 }
  0x61   : > { %830 = vmatmul.f32.vlgmr.msrb.gmra.mxu2 %v3886_v46  ;;  %787 = vmatpush.msrb.mxu1 %v3809_v4  ;;  %v1048_v4 = vsub.f32 %v1046_v62, %v1047_v1  ;;  %v1054_v8 = vsub.f32 %v1052_v0, %v1053_v3 }
  0x62   : > { %869 = vmatpush.msrb.mxu3 %v868_v57  ;;  %947 = vmatpush.msra.mxu2 %v848_v28 }
  0x63   : > { %789 = vmatpush.msrb.mxu1 %v3811_v5  ;;  %768 = vmatmul.f32.vlgmr.msrb.gmra.mxu0 %v3838_v17  ;;  %v990_v5 = vld [vmem:[%s4188_s5] sm:$0xff] }
  0x64   : > { %871 = vmatmul.f32.vlgmr.msrb.gmra.mxu3 %v3838_v17  ;;  %889 = vmatpush.msra.mxu0 %v3849_v21  ;;  %v1016_v7 = vand.u32 4294901760, %v990_v5 }
  0x65   : > { %791 = vmatpush.msrb.mxu1 %v3820_v9  ;;  %951 = vmatpush.msra.mxu2 %v854_v36  ;;  %v1049_v9 = vand.u32 4294901760, %v1048_v4 }
  0x66   : > { %978 = vmatpush.msra.mxu3 %v3823_v11  ;;  %793 = vmatmul.f32.vlgmr.msrb.gmra.mxu1 %v3838_v17  ;;  %v1058_v10 = vsub.f32 %v990_v5, %v1016_v7 }
  0x67   : > { %892 = vmatpush.msra.mxu0 %v3862_v29  ;;  %918 = vmatpush.msra.mxu1 %v3823_v11  ;;  %v1055_v11 = vand.u32 4294901760, %v1054_v8 }
  0x68   : > { %955 = vmatpush.msra.mxu2 %v860_v44  ;;  %980 = vmatpush.msra.mxu3 %v3846_v20  ;;  %v1059_v12 = vand.u32 4294901760, %v1058_v10 }
  0x69   : > { %895 = vmatpush.msra.mxu0 %v3875_v37  ;;  %920 = vmatpush.msra.mxu1 %v3846_v20 }
  0x6a   : > { %959 = vmatpush.msra.mxu2 %v866_v51  ;;  %982 = vmatpush.msra.mxu3 %v3851_v22  ;;  %v1060_v13 = vsub.f32 %v1058_v10, %v1059_v12 }
  0x6b   : > { %961 = vmatmul.f32.vlgmr.msra.gmra.mxu2 %v3838_v17  ;;  %898 = vmatpush.msra.mxu0 %v865_v47 }
  0x6c   : > { %922 = vmatpush.msra.mxu1 %v3851_v22  ;;  %984 = vmatpush.msra.mxu3 %v3864_v30  ;;  %v1061_v14 = vand.u32 4294901760, %v1060_v13 }
  0x6d   : > { %901 = vmatmul.f32.vlgmr.msra.gmra.mxu0 %v3855_v25  ;;  %986 = vmatmul.f32.vlgmr.msra.gmra.mxu3 %v3838_v17 }
  0x6e   : > { %924 = vmatpush.msra.mxu1 %v3864_v30  ;;  %1082 = vmatpush.msrb.mxu2 %v1040_v60 }
  0x6f   : > { %928 = vmatmul.f32.vlgmr.msra.gmra.mxu1 %v3869_v34  ;;  %1011 = vmatpush.msrb.mxu0 %v3902_v56 }
  0x70   : > { %1085 = vmatpush.msrb.mxu2 %v1046_v62  ;;  %1111 = vmatpush.msrb.mxu3 %v3902_v56 }
  0x71   : > { %1013 = vmatpush.msrb.mxu0 %v3907_v58  ;;  %1044 = vmatpush.msrb.mxu1 %v1043_v6 }
  0x72   : > { %1088 = vmatpush.msrb.mxu2 %v1052_v0  ;;  %1113 = vmatpush.msrb.mxu3 %v3907_v58 }
  0x73   : > { %1015 = vmatpush.msrb.mxu0 %v3915_v61  ;;  %1050 = vmatpush.msrb.mxu1 %v1049_v9 }
  0x74   : > { %1091 = vmatpush.msrb.mxu2 %v1058_v10  ;;  %1115 = vmatpush.msrb.mxu3 %v3915_v61 }
  0x75   : > { %1094 = vmatmul.f32.vlgmr.msrb.gmra.mxu2 %v3855_v25  ;;  %1017 = vmatpush.msrb.mxu0 %v1016_v7 }
  0x76   : > { %1056 = vmatpush.msrb.mxu1 %v1055_v11  ;;  %1117 = vmatpush.msrb.mxu3 %v1016_v7 }
  0x77   : > { %1023 = vmatmul.f32.vlgmr.msrb.gmra.mxu0 %v3886_v46  ;;  %1121 = vmatmul.f32.vlgmr.msrb.gmra.mxu3 %v3869_v34 }
  0x78   : > { %1140 = vmatpush.msra.mxu0 %v1041_v63  ;;  %1062 = vmatpush.msrb.mxu1 %v1061_v14 }
  0x79   : > { %1064 = vmatmul.f32.vlgmr.msrb.gmra.mxu1 %v3838_v17 }
  0x7a   : > { %1144 = vmatpush.msra.mxu0 %v1047_v1  ;;  %1171 = vmatpush.msra.mxu1 %v3902_v56 }
  0x7c   : > { %1148 = vmatpush.msra.mxu0 %v1053_v3  ;;  %1173 = vmatpush.msra.mxu1 %v3907_v58 }
  0x7e   : > { %1152 = vmatpush.msra.mxu0 %v1059_v12  ;;  %1175 = vmatpush.msra.mxu1 %v3915_v61 }
  0x7f   : > { %1154 = vmatmul.f32.vlgmr.msra.gmra.mxu0 %v3838_v17 }
  0x80   : > { %1177 = vmatpush.msra.mxu1 %v1016_v7 }
  0x81   : > { %1179 = vmatmul.f32.vlgmr.msra.gmra.mxu1 %v3838_v17 }
  0xd3   : > { %v638_v16 = vpop.f32.mrf.mxu0 }
  0xd4   : > { %v639_v18 = vadd.f32 %v3386_v15, %v638_v16 }
  0xdb   : > { %v679_v19 = vpop.f32.mrf.mxu1  ;;  %v736_v22 = vpop.f32.mrf.mxu3 }
  0xdc   : > { %v709_v20 = vpop.f32.mrf.mxu2  ;;  %v680_v21 = vadd.f32 %v679_v19, %v639_v18 }
  0xde   : > { %v710_v23 = vadd.f32 %v709_v20, %v680_v21 }
  0xe0   : > { %v737_v24 = vadd.f32 %v736_v22, %v710_v23  ;;  %v769_v25 = vpop.f32.mrf.mxu0 }
  0xe2   : > { %v770_v27 = vadd.f32 %v769_v25, %v737_v24 }
  0xe3   : > { %v794_v28 = vpop.f32.mrf.mxu1 }
  0xe4   : > { %v831_v17 = vpop.f32.mrf.mxu2  ;;  %v795_v29 = vadd.f32 %v794_v28, %v770_v27 }
  0xe5   : > { %v832_v30 = vadd.f32 %v3387_v26, %v831_v17 }
  0xe6   : > { %v3963_v31 = vmul.f32 0.35355338, %v795_v29 }
  0xe7   : > { %v872_v32 = vpop.f32.mrf.mxu3 }
  0xe8   : > { %v1186_v33 = vsel %vm1184_vm1, %v3963_v31, 0  ;;  %v873_v34 = vadd.f32 %v872_v32, %v832_v30 }
  0xe9   : > { %v1208_v35 = vand.u32 4294901760, %v1186_v33 }
  0xea   : > { %v902_v36 = vpop.f32.mrf.mxu0 }
  0xeb   : > { %v1209_v37 = vsub.f32 %v1186_v33, %v1208_v35  ;;  %v903_v38 = vadd.f32 %v902_v36, %v873_v34 }
  0xec   : > { %v929_v39 = vpop.f32.mrf.mxu1 }
  0xed   : > { %v930_v40 = vadd.f32 %v929_v39, %v903_v38  ;;  %v1210_v43 = vand.u32 4294901760, %v1209_v37 }
  0xee   : > { %v962_v41 = vpop.f32.mrf.mxu2 }
  0xef   : > { %v963_v42 = vadd.f32 %v962_v41, %v930_v40  ;;  %v1211_v47 = vsub.f32 %v1209_v37, %v1210_v43 }
  0xf0   : > { %v987_v44 = vpop.f32.mrf.mxu3 }
  0xf1   : > { %v3967_v45 = vadd.f32 %v987_v44, %v963_v42  ;;  %v1212_v50 = vand.u32 4294901760, %v1211_v47 }
  0xf3   : > { %1500 = vrot.lane.b32.xlu1 %v3967_v45, %s3585_s22  ;;  %v1189_v46 = vsel %vm1184_vm1, %v3967_v45, 0 }
  0xf4   : > { %v1206_v48 = vand.u32 4294901760, %v1189_v46  ;;  %v1024_v55 = vpop.f32.mrf.mxu0 }
  0xf5   : > { %v1025_v56 = vadd.f32 %v3388_v54, %v1024_v55 }
  0xf6   : > { %1207 = vmatpush.xpose.msra.mxu2 %v1206_v48  ;;  %1283 = vmatpush.xpose.msrb.mxu1 %v1206_v48  ;;  %v1233_v49 = vsub.f32 %v1189_v46, %v1206_v48  ;;  %v1065_v57 = vpop.f32.mrf.mxu1 }
  0xf7   : > { %v1066_v59 = vadd.f32 %v1065_v57, %v1025_v56 }
  0xf8   : > { %1260 = vmatpush.xpose.msrb.mxu0 %v1233_v49  ;;  %v1234_v51 = vand.u32 4294901760, %v1233_v49  ;;  %v1095_v58 = vpop.f32.mrf.mxu2 }
  0xf9   : > { %1213 = vmatmul.f32.vlgmr.msra.gmra.mxu2 %v1212_v50  ;;  %1287 = vmatmul.f32.vlgmr.msrb.gmra.mxu1 %v1210_v43  ;;  %v1096_v61 = vadd.f32 %v1095_v58, %v1066_v59 }
  0xfa   : > { %1309 = vmatpush.xpose.msrb.mxu2 %v1234_v51  ;;  %v1235_v52 = vsub.f32 %v1233_v49, %v1234_v51  ;;  %v1122_v60 = vpop.f32.mrf.mxu3 }
  0xfb   : > { %1498 = vrot.lane.b32.xlu1 %v3963_v31, %s3585_s22  ;;  %1263 = vmatmul.f32.vlgmr.msrb.gmra.mxu0 %v1209_v37  ;;  %v1123_v63 = vadd.f32 %v1122_v60, %v1096_v61 }
  0xfc   : > { %v1236_v53 = vand.u32 4294901760, %v1235_v52  ;;  %v1155_v62 = vpop.f32.mrf.mxu0 }
  0xfd   : > { %v1156_v0 = vadd.f32 %v1155_v62, %v1123_v63 }
  0xfe   : > { %1237 = vmatpush.xpose.msra.mxu3 %v1236_v53  ;;  %v1180_v1 = vpop.f32.mrf.mxu1 }
  0xff   : > { %v3980_v2 = vadd.f32 %v1180_v1, %v1156_v0 }
 0x101   : > { %1239 = vmatmul.f32.vlgmr.msra.gmra.mxu3 %v1208_v35  ;;  %1311 = vmatmul.f32.vlgmr.msrb.gmra.mxu2 %v1208_v35  ;;  %v1366_v3 = vand.u32 4294901760, %v3980_v2 }
 0x102   : > { %1331 = vmatpush.xpose.msrb.mxu3 %v1206_v48 }
 0x103   : > { %1824 = vrot.lane.b32.xlu1 %v3967_v45, %s3586_s24  ;;  %v1393_v4 = vsub.f32 %v3980_v2, %v1366_v3  ;;  %1367 = vmatpush.msra.mxu0 %v1366_v3 }
 0x105   : > { %1420 = vmatpush.msra.mxu2 %v1393_v4  ;;  %v1394_v5 = vand.u32 4294901760, %v1393_v4 }
 0x106   : > { %1443 = vmatpush.msra.mxu3 %v1366_v3 }
 0x107   : > { %v1395_v6 = vsub.f32 %v1393_v4, %v1394_v5  ;;  %1469 = vmatpush.msrb.mxu0 %v1394_v5 }
 0x109   : > { %1333 = vmatmul.f32.vlgmr.msrb.gmra.mxu3 %v1208_v35  ;;  %v1396_v7 = vand.u32 4294901760, %v1395_v6 }
 0x10b   : > { %1397 = vmatpush.msra.mxu1 %v1396_v7 }
 0x10d   : > { %1491 = vmatpush.msrb.mxu1 %v1366_v3 }
 0x165   : > { %v1501_v8 = vpop.permute.xlu1 %1500 }
 0x166   : > { %v1504_v9 = vsel %vm1184_vm1, %v1501_v8, 0 }
 0x167   : > { %v1521_v10 = vand.u32 4294901760, %v1504_v9 }
 0x169   : > { %v1548_v11 = vsub.f32 %v1504_v9, %v1521_v10  ;;  %1522 = vmatpush.xpose.msrb.mxu2 %v1521_v10 }
 0x16b   : > { %v1549_v12 = vand.u32 4294901760, %v1548_v11 }
 0x16d   : > { %v1550_v13 = vsub.f32 %v1548_v11, %v1549_v12  ;;  %v1499_v33 = vpop.permute.xlu1 %1498 }
 0x16e   : > { %v1502_v35 = vsel %vm1184_vm1, %v1499_v33, 0 }
 0x16f   : > { %v1551_v14 = vand.u32 4294901760, %v1550_v13  ;;  %v1523_v36 = vand.u32 4294901760, %v1502_v35 }
 0x171   : > { %1552 = vmatpush.xpose.msrb.mxu3 %v1551_v14  ;;  %v1524_v39 = vsub.f32 %v1502_v35, %v1523_v36 }
 0x173   : > { %v1525_v43 = vand.u32 4294901760, %v1524_v39 }
 0x175   : > { %v1825_v40 = vpop.permute.xlu1 %1824  ;;  %v1526_v49 = vsub.f32 %v1524_v39, %v1525_v43 }
 0x176   : > { %v1288_v21 = vpop.f32.mrf.mxu1  ;;  %v1828_v44 = vsel %vm1184_vm1, %v1825_v40, 0 }
 0x177   : > { %v3992_v48 = vand.u32 4294901760, %v1828_v44  ;;  %v1527_v55 = vand.u32 4294901760, %v1526_v49 }
 0x178   : > { %v1264_v19 = vpop.f32.mrf.mxu0 }
 0x179   : > { %v3995_v53 = vsub.f32 %v1828_v44, %v3992_v48 }
 0x17b   : > { %v1873_v57 = vand.u32 4294901760, %v3995_v53 }
 0x17c   : > { %v1214_v15 = vpop.f32.mrf.mxu2 }
 0x17d   : > { %v1874_v60 = vsub.f32 %v3995_v53, %v1873_v57 }
 0x17f   : > { %v1875_v62 = vand.u32 4294901760, %v1874_v60 }
 0x184   : > { %v1240_v16 = vpop.f32.mrf.mxu3  ;;  %v1312_v23 = vpop.f32.mrf.mxu2 }
 0x185   : > { %v1241_v18 = vadd.f32 %v1240_v16, %v1214_v15 }
 0x187   : > { %v1265_v20 = vadd.f32 %v1264_v19, %v1241_v18 }
 0x189   : > { %v1289_v22 = vadd.f32 %v1288_v21, %v1265_v20 }
 0x18b   : > { %v1313_v24 = vadd.f32 %v1312_v23, %v1289_v22 }
 0x18c   : > { %v1334_v25 = vpop.f32.mrf.mxu3 }
 0x18d   : > { %v1335_v26 = vadd.f32 %v1334_v25, %v1313_v24 }
 0x18f   : > { %v1337_v27 = vsel %vm1184_vm1, %v1335_v26, -inf }
 0x190   : > { %1338 = vmax.xlane.f32.xlu0 %v1337_v27 }
 0x203   : > { %v1339_v28 = vpop.xlane.xlu0 %1338 }
 0x204   : > { %v1340_v17 = vsub.f32 %v1335_v26, %v1339_v28 }
 0x206   : > { %v1341_v29 = vmul.f32 1.442695, %v1340_v17 }
 0x208   : > { %3396 = vpow2.f32 %v1341_v29 }
 0x20e   : > { %v3397_v30 = vpop.eup %3396 }
 0x20f   : > { %v1343_v32 = vsel %vm1184_vm1, %v3397_v30, 0.0 }
 0x210   : > { %1344 = vadd.xlane.f32.xlu0 %v1343_v32 }
 0x224   : > { %1664 = vrot.lane.b32.xlu0 %v3980_v2, %s3585_s22 }
 0x283   : > { %v1345_v34 = vpop.xlane.xlu0 %1344 }
 0x284   : > { %3398 = vrcp.f32 %v1345_v34 }
 0x28a   : > { %v3399_v37 = vpop.eup %3398 }
 0x28b   : > { %v1347_v38 = vmul.f32 %v3399_v37, %v3397_v30 }
 0x28d   : > { %v1349_v41 = vsel %vm1184_vm1, %v1347_v38, 0 }
 0x28e   : > { %v1368_v42 = vand.u32 4294901760, %v1349_v41 }
 0x290   : > { %1399 = vmatmul.f32.vlgmr.msra.gmra.mxu1 %v1368_v42  ;;  %v1369_v46 = vsub.f32 %v1349_v41, %v1368_v42 }
 0x291   : > { %1598 = vmatpush.xpose.msra.mxu1 %v1521_v10 }
 0x292   : > { %1423 = vmatmul.f32.vlgmr.msra.gmra.mxu2 %v1369_v46  ;;  %v1370_v47 = vand.u32 4294901760, %v1369_v46 }
 0x293   : > { %1624 = vmatpush.xpose.msra.mxu2 %v1549_v12 }
 0x294   : > { %1447 = vmatmul.f32.vlgmr.msra.gmra.mxu3 %v1370_v47  ;;  %v1371_v50 = vsub.f32 %v1369_v46, %v1370_v47 }
 0x295   : > { %1646 = vmatpush.xpose.msra.mxu3 %v1521_v10 }
 0x296   : > { %v1665_v51 = vpop.permute.xlu0 %1664  ;;  %v1372_v52 = vand.u32 4294901760, %v1371_v50 }
 0x297   : > { %v1685_v54 = vand.u32 4294901760, %v1665_v51 }
 0x298   : > { %1373 = vmatmul.f32.vlgmr.msra.gmra.mxu0 %v1372_v52  ;;  %1493 = vmatmul.f32.vlgmr.msrb.gmra.mxu1 %v1368_v42 }
 0x299   : > { %v1712_v56 = vsub.f32 %v1665_v51, %v1685_v54  ;;  %1575 = vmatpush.xpose.msra.mxu0 %v1548_v11 }
 0x29a   : > { %1528 = vmatmul.f32.vlgmr.msrb.gmra.mxu2 %v1527_v55 }
 0x29b   : > { %v1713_v58 = vand.u32 4294901760, %v1712_v56  ;;  %1739 = vmatpush.msrb.mxu2 %v1712_v56 }
 0x29c   : > { %1554 = vmatmul.f32.vlgmr.msrb.gmra.mxu3 %v1523_v36 }
 0x29d   : > { %v1714_v59 = vsub.f32 %v1712_v56, %v1713_v58  ;;  %1762 = vmatpush.msrb.mxu3 %v1685_v54 }
 0x29f   : > { %v1715_v61 = vand.u32 4294901760, %v1714_v59 }
 0x2a0   : > { %1471 = vmatmul.f32.vlgmr.msrb.gmra.mxu0 %v1368_v42  ;;  %1602 = vmatmul.f32.vlgmr.msra.gmra.mxu1 %v1525_v43 }
 0x2a1   : > { %1686 = vmatpush.msrb.mxu0 %v1685_v54  ;;  %1716 = vmatpush.msrb.mxu1 %v1715_v61 }
 0x2a2   : > { %1626 = vmatmul.f32.vlgmr.msra.gmra.mxu2 %v1523_v36 }
 0x2a3   : > { %1810 = vmatpush.msra.mxu1 %v1685_v54  ;;  %1846 = vmatpush.xpose.msra.mxu2 %v3992_v48 }
 0x2a4   : > { %1648 = vmatmul.f32.vlgmr.msra.gmra.mxu3 %v1523_v36 }
 0x2a5   : > { %1876 = vmatpush.xpose.msra.mxu3 %v1875_v62 }
 0x2a8   : > { %1578 = vmatmul.f32.vlgmr.msra.gmra.mxu0 %v1524_v39 }
 0x2a9   : > { %1788 = vmatpush.msra.mxu0 %v1713_v58 }
 0x30d   : > { %v1400_v63 = vpop.f32.mrf.mxu1 }
 0x315   : > { %v1374_v0 = vpop.f32.mrf.mxu0  ;;  %v1424_v1 = vpop.f32.mrf.mxu2 }
 0x316   : > { %v1401_v3 = vadd.f32 %v1400_v63, %v1374_v0  ;;  %v1494_v7 = vpop.f32.mrf.mxu1 }
 0x317   : > { %v1448_v4 = vpop.f32.mrf.mxu3 }
 0x318   : > { %v1425_v5 = vadd.f32 %v1424_v1, %v1401_v3 }
 0x31a   : > { %v1449_v6 = vadd.f32 %v1448_v4, %v1425_v5 }
 0x31d   : > { %v1472_v8 = vpop.f32.mrf.mxu0  ;;  %v1529_v10 = vpop.f32.mrf.mxu2 }
 0x31e   : > { %v1473_v9 = vadd.f32 %v1472_v8, %v1449_v6  ;;  %v1603_v16 = vpop.f32.mrf.mxu1 }
 0x31f   : > { %v1555_v12 = vpop.f32.mrf.mxu3 }
 0x320   : > { %v1495_v11 = vadd.f32 %v1494_v7, %v1473_v9  ;;  %v1556_v13 = vadd.f32 %v1555_v12, %v1529_v10 }
 0x322   : > { %1497 = vst.msk [vmem:[#allocation2] sm:$0xff] %vm1184_vm1, %v1495_v11 }
 0x325   : > { %v1579_v14 = vpop.f32.mrf.mxu0  ;;  %v1627_v19 = vpop.f32.mrf.mxu2 }
 0x326   : > { %v1580_v15 = vadd.f32 %v1579_v14, %v1556_v13 }
 0x327   : > { %v1649_v21 = vpop.f32.mrf.mxu3 }
 0x328   : > { %v1604_v18 = vadd.f32 %v1603_v16, %v1580_v15 }
 0x32a   : > { %v1628_v20 = vadd.f32 %v1627_v19, %v1604_v18 }
 0x32c   : > { %v1650_v22 = vadd.f32 %v1649_v21, %v1628_v20 }
 0x32e   : > { %v1652_v23 = vsel %vm1184_vm1, %v1650_v22, -inf }
 0x32f   : > { %1653 = vmax.xlane.f32.xlu2 %v1652_v23 }
 0x3a2   : > { %v1654_v24 = vpop.xlane.xlu2 %1653 }
 0x3a3   : > { %v1655_v25 = vsub.f32 %v1650_v22, %v1654_v24 }
 0x3a5   : > { %v1656_v26 = vmul.f32 1.442695, %v1655_v25 }
 0x3a7   : > { %3400 = vpow2.f32 %v1656_v26 }
 0x3ad   : > { %v3401_v27 = vpop.eup %3400 }
 0x3ae   : > { %v1658_v28 = vsel %vm1184_vm1, %v3401_v27, 0.0 }
 0x3af   : > { %1659 = vadd.xlane.f32.xlu2 %v1658_v28 }
 0x3c7   : > { %1822 = vrot.lane.b32.xlu2 %v3963_v31, %s3586_s24 }
 0x3cf   : > { %1987 = vrot.lane.b32.xlu2 %v3980_v2, %s3586_s24  ;;  %s4240_s24 = sld [smem:[#allocation27_spill]] }
 0x3d5   : > { %s4241_s0 = smov %s4240_s24  ;;  %s3200_s21 = scalar_lea.hbm %s4240_s24, %s3307_s17 }
 0x3d6   : > { %s3204_s3 = sshll.u32 %s3200_s21, 4  ;;  %s3529_s29 = scalar_lea.hbm %s4241_s0, 16  ;;  %s3205_s3 = int_to_ptr.hbm [resolvable:$true] %s3204_s3 }
 0x3d7   : > { %2147 = vrot.lane.b32.xlu2 %v3967_v45, %s3587_s28 }
 0x3df   : > { %2145 = vrot.lane.b32.xlu2 %v3963_v31, %s3587_s28 }
 0x422   : > { %v1660_v17 = vpop.xlane.xlu2 %1659 }
 0x423   : > { %3402 = vrcp.f32 %v1660_v17 }
 0x429   : > { %v3403_v29 = vpop.eup %3402 }
 0x42a   : > { %v1662_v30 = vmul.f32 %v3403_v29, %v3401_v27  ;;  %v1823_v32 = vpop.permute.xlu2 %1822 }
 0x42b   : > { %v1826_v33 = vsel %vm1184_vm1, %v1823_v32, 0 }
 0x42c   : > { %v1847_v34 = vand.u32 4294901760, %v1826_v33  ;;  %v1668_v35 = vsel %vm1184_vm1, %v1662_v30, 0 }
 0x42d   : > { %v1687_v36 = vand.u32 4294901760, %v1668_v35 }
 0x42e   : > { %v1848_v37 = vsub.f32 %v1826_v33, %v1847_v34 }
 0x42f   : > { %1718 = vmatmul.f32.vlgmr.msrb.gmra.mxu1 %v1687_v36  ;;  %v1688_v38 = vsub.f32 %v1668_v35, %v1687_v36 }
 0x430   : > { %v1849_v39 = vand.u32 4294901760, %v1848_v37  ;;  %1922 = vmatpush.xpose.msrb.mxu1 %v3992_v48 }
 0x431   : > { %1742 = vmatmul.f32.vlgmr.msrb.gmra.mxu2 %v1688_v38  ;;  %v1689_v45 = vand.u32 4294901760, %v1688_v38 }
 0x432   : > { %1948 = vmatpush.xpose.msrb.mxu2 %v1873_v57  ;;  %v1988_v31 = vpop.permute.xlu2 %1987  ;;  %v1850_v40 = vsub.f32 %v1848_v37, %v1849_v39 }
 0x433   : > { %v2008_v41 = vand.u32 4294901760, %v1988_v31  ;;  %1766 = vmatmul.f32.vlgmr.msrb.gmra.mxu3 %v1689_v45  ;;  %v1690_v42 = vsub.f32 %v1688_v38, %v1689_v45 }
 0x434   : > { %1970 = vmatpush.xpose.msrb.mxu3 %v3992_v48  ;;  %v1851_v46 = vand.u32 4294901760, %v1850_v40 }
 0x435   : > { %v2035_v43 = vsub.f32 %v1988_v31, %v2008_v41  ;;  %v1691_v44 = vand.u32 4294901760, %v1690_v42 }
 0x437   : > { %v2036_v47 = vand.u32 4294901760, %v2035_v43  ;;  %1692 = vmatmul.f32.vlgmr.msrb.gmra.mxu0 %v1691_v44  ;;  %1812 = vmatmul.f32.vlgmr.msra.gmra.mxu1 %v1687_v36 }
 0x438   : > { %1899 = vmatpush.xpose.msrb.mxu0 %v3995_v53 }
 0x439   : > { %v2037_v49 = vsub.f32 %v2035_v43, %v2036_v47  ;;  %1852 = vmatmul.f32.vlgmr.msra.gmra.mxu2 %v1851_v46 }
 0x43a   : > { %2062 = vmatpush.msra.mxu2 %v2035_v43  ;;  %v2148_v50 = vpop.permute.xlu2 %2147 }
 0x43b   : > { %v2038_v51 = vand.u32 4294901760, %v2037_v49  ;;  %v2151_v52 = vsel %vm1184_vm1, %v2148_v50, 0  ;;  %1878 = vmatmul.f32.vlgmr.msra.gmra.mxu3 %v1847_v34 }
 0x43c   : > { %v4021_v54 = vand.u32 4294901760, %v2151_v52  ;;  %2085 = vmatpush.msra.mxu3 %v2008_v41 }
 0x43d   : > { %2039 = vmatpush.msra.mxu1 %v2038_v51 }
 0x43e   : > { %v4024_v48 = vsub.f32 %v2151_v52, %v4021_v54 }
 0x43f   : > { %1790 = vmatmul.f32.vlgmr.msra.gmra.mxu0 %v1687_v36  ;;  %1926 = vmatmul.f32.vlgmr.msrb.gmra.mxu1 %v1849_v39 }
 0x440   : > { %v2196_v55 = vand.u32 4294901760, %v4024_v48  ;;  %2009 = vmatpush.msra.mxu0 %v2008_v41  ;;  %2133 = vmatpush.msrb.mxu1 %v2008_v41 }
 0x441   : > { %1950 = vmatmul.f32.vlgmr.msrb.gmra.mxu2 %v1847_v34 }
 0x442   : > { %v2197_v53 = vsub.f32 %v4024_v48, %v2196_v55  ;;  %2169 = vmatpush.xpose.msrb.mxu2 %v4021_v54  ;;  %v2146_v23 = vpop.permute.xlu2 %2145 }
 0x443   : > { %1972 = vmatmul.f32.vlgmr.msrb.gmra.mxu3 %v1847_v34  ;;  %v2149_v25 = vsel %vm1184_vm1, %v2146_v23, 0 }
 0x444   : > { %v2198_v56 = vand.u32 4294901760, %v2197_v53  ;;  %v2170_v26 = vand.u32 4294901760, %v2149_v25 }
 0x446   : > { %2199 = vmatpush.xpose.msrb.mxu3 %v2198_v56  ;;  %v2171_v17 = vsub.f32 %v2149_v25, %v2170_v26 }
 0x447   : > { %1902 = vmatmul.f32.vlgmr.msrb.gmra.mxu0 %v1848_v37 }
 0x448   : > { %2111 = vmatpush.msrb.mxu0 %v2036_v47  ;;  %v2172_v32 = vand.u32 4294901760, %v2171_v17 }
 0x44a   : > { %v2173_v35 = vsub.f32 %v2171_v17, %v2172_v32 }
 0x44c   : > { %v2174_v39 = vand.u32 4294901760, %v2173_v35 }
 0x4ac   : > { %v1719_v57 = vpop.f32.mrf.mxu1 }
 0x4b4   : > { %v1693_v58 = vpop.f32.mrf.mxu0  ;;  %v1743_v59 = vpop.f32.mrf.mxu2 }
 0x4b5   : > { %v1720_v60 = vadd.f32 %v1719_v57, %v1693_v58  ;;  %v1813_v0 = vpop.f32.mrf.mxu1 }
 0x4b6   : > { %v1767_v61 = vpop.f32.mrf.mxu3 }
 0x4b7   : > { %v1744_v62 = vadd.f32 %v1743_v59, %v1720_v60 }
 0x4b9   : > { %v1768_v63 = vadd.f32 %v1767_v61, %v1744_v62 }
 0x4bc   : > { %v1791_v1 = vpop.f32.mrf.mxu0  ;;  %v1853_v4 = vpop.f32.mrf.mxu2 }
 0x4bd   : > { %v1792_v3 = vadd.f32 %v1791_v1, %v1768_v63  ;;  %v1927_v10 = vpop.f32.mrf.mxu1 }
 0x4be   : > { %v1879_v6 = vpop.f32.mrf.mxu3 }
 0x4bf   : > { %v1814_v5 = vadd.f32 %v1813_v0, %v1792_v3  ;;  %v1880_v7 = vadd.f32 %v1879_v6, %v1853_v4 }
 0x4c4   : > { %v1903_v8 = vpop.f32.mrf.mxu0  ;;  %v1951_v12 = vpop.f32.mrf.mxu2 }
 0x4c5   : > { %v1904_v9 = vadd.f32 %v1903_v8, %v1880_v7 }
 0x4c6   : > { %v1973_v14 = vpop.f32.mrf.mxu3 }
 0x4c7   : > { %v1928_v11 = vadd.f32 %v1927_v10, %v1904_v9 }
 0x4c9   : > { %v1952_v13 = vadd.f32 %v1951_v12, %v1928_v11 }
 0x4cb   : > { %v1974_v15 = vadd.f32 %v1973_v14, %v1952_v13 }
 0x4cd   : > { %v1976_v16 = vsel %vm1184_vm1, %v1974_v15, -inf }
 0x4ce   : > { %1977 = vmax.xlane.f32.xlu1 %v1976_v16 }
 0x541   : > { %v1978_v18 = vpop.xlane.xlu1 %1977 }
 0x542   : > { %v1979_v19 = vsub.f32 %v1974_v15, %v1978_v18 }
 0x544   : > { %v1980_v20 = vmul.f32 1.442695, %v1979_v19 }
 0x546   : > { %3404 = vpow2.f32 %v1980_v20 }
 0x54c   : > { %v3405_v21 = vpop.eup %3404 }
 0x54d   : > { %v1982_v22 = vsel %vm1184_vm1, %v3405_v21, 0.0 }
 0x54e   : > { %1983 = vadd.xlane.f32.xlu0 %v1982_v22 }
 0x562   : > { %1817 = vrot.lane.b32.xlu0 %v1814_v5, %s3588_s16 }
 0x5c1   : > { %v1984_v24 = vpop.xlane.xlu0 %1983 }
 0x5c2   : > { %3406 = vrcp.f32 %v1984_v24 }
 0x5c8   : > { %v3407_v27 = vpop.eup %3406 }
 0x5c9   : > { %v1986_v28 = vmul.f32 %v3407_v27, %v3405_v21 }
 0x5cb   : > { %v1991_v29 = vsel %vm1184_vm1, %v1986_v28, 0 }
 0x5cc   : > { %v2010_v30 = vand.u32 4294901760, %v1991_v29 }
 0x5ce   : > { %2041 = vmatmul.f32.vlgmr.msra.gmra.mxu1 %v2010_v30  ;;  %v2011_v33 = vsub.f32 %v1991_v29, %v2010_v30 }
 0x5cf   : > { %2245 = vmatpush.xpose.msra.mxu1 %v4021_v54 }
 0x5d0   : > { %2065 = vmatmul.f32.vlgmr.msra.gmra.mxu2 %v2011_v33  ;;  %v2012_v34 = vand.u32 4294901760, %v2011_v33 }
 0x5d1   : > { %2271 = vmatpush.xpose.msra.mxu2 %v2196_v55 }
 0x5d2   : > { %2089 = vmatmul.f32.vlgmr.msra.gmra.mxu3 %v2012_v34  ;;  %v2013_v36 = vsub.f32 %v2011_v33, %v2012_v34  ;;  %v2471_v33 = vld [vmem:[#allocation6 + $0x10] sm:$0xff] }
 0x5d3   : > { %2293 = vmatpush.xpose.msra.mxu3 %v4021_v54  ;;  %v2494_v35 = vand.u32 4294901760, %v2471_v33 }
 0x5d4   : > { %v1818_v37 = vpop.permute.xlu0 %1817  ;;  %v2014_v38 = vand.u32 4294901760, %v2013_v36  ;;  %v2470_v36 = vld [vmem:[#allocation6 + $0x8] sm:$0xff] }
 0x5d5   : > { %1821 = vst.msk [vmem:[#allocation2] sm:$0xff] %vm1820_vm2, %v1818_v37 }
 0x5d6   : > { %2015 = vmatmul.f32.vlgmr.msra.gmra.mxu0 %v2014_v38  ;;  %2135 = vmatmul.f32.vlgmr.msrb.gmra.mxu1 %v2010_v30  ;;  %v2528_v38 = vsub.f32 %v2471_v33, %v2494_v35 }
 0x5d7   : > { %2222 = vmatpush.xpose.msra.mxu0 %v4024_v48 }
 0x5d8   : > { %2175 = vmatmul.f32.vlgmr.msrb.gmra.mxu2 %v2174_v39  ;;  %v2496_v39 = vand.u32 4294901760, %v2470_v36 }
 0x5da   : > { %2201 = vmatmul.f32.vlgmr.msrb.gmra.mxu3 %v2170_v26 }
 0x5de   : > { %2113 = vmatmul.f32.vlgmr.msrb.gmra.mxu0 %v2010_v30  ;;  %2249 = vmatmul.f32.vlgmr.msra.gmra.mxu1 %v2172_v32  ;;  %v2472_v30 = vld [vmem:[#allocation6 + $0x18] sm:$0xff] }
 0x5df   : > { %v2492_v32 = vand.u32 4294901760, %v2472_v30 }
 0x5e0   : > { %2273 = vmatmul.f32.vlgmr.msra.gmra.mxu2 %v2170_v26 }
 0x5e1   : > { %v2522_v34 = vsub.f32 %v2472_v30, %v2492_v32 }
 0x5e2   : > { %2295 = vmatmul.f32.vlgmr.msra.gmra.mxu3 %v2170_v26 }
 0x5e3   : > { %v2523_v37 = vand.u32 4294901760, %v2522_v34 }
 0x5e6   : > { %2225 = vmatmul.f32.vlgmr.msra.gmra.mxu0 %v2171_v17 }
 0x64b   : > { %v2042_v45 = vpop.f32.mrf.mxu1 }
 0x653   : > { %v2016_v31 = vpop.f32.mrf.mxu0  ;;  %v2066_v40 = vpop.f32.mrf.mxu2 }
 0x654   : > { %v2043_v41 = vadd.f32 %v2042_v45, %v2016_v31  ;;  %v2136_v46 = vpop.f32.mrf.mxu1  ;;  %v2469_v45 = vld [vmem:[#allocation6] sm:$0xff]  ;;  %v2524_v31 = vsub.f32 %v2522_v34, %v2523_v37 }
 0x655   : > { %v2090_v42 = vpop.f32.mrf.mxu3 }
 0x656   : > { %v2067_v43 = vadd.f32 %v2066_v40, %v2043_v41  ;;  %v2529_v40 = vand.u32 4294901760, %v2528_v38  ;;  %v2534_v41 = vsub.f32 %v2470_v36, %v2496_v39  ;;  %v2709_v36 = vld [vmem:[#allocation8] sm:$0xff] }
 0x658   : > { %v2091_v44 = vadd.f32 %v2090_v42, %v2067_v43  ;;  %v2498_v42 = vand.u32 4294901760, %v2469_v45  ;;  %v2525_v43 = vand.u32 4294901760, %v2524_v31 }
 0x65b   : > { %v2114_v47 = vpop.f32.mrf.mxu0  ;;  %v2176_v50 = vpop.f32.mrf.mxu2 }
 0x65c   : > { %v2115_v49 = vadd.f32 %v2114_v47, %v2091_v44  ;;  %v2250_v53 = vpop.f32.mrf.mxu1  ;;  %v2530_v44 = vsub.f32 %v2528_v38, %v2529_v40  ;;  %v2540_v47 = vsub.f32 %v2469_v45, %v2498_v42  ;;  %v2737_v45 = vand.u32 4294901760, %v2709_v36 }
 0x65d   : > { %v2202_v52 = vpop.f32.mrf.mxu3 }
 0x65e   : > { %v2137_v51 = vadd.f32 %v2136_v46, %v2115_v49  ;;  %v2203_v54 = vadd.f32 %v2202_v52, %v2176_v50  ;;  %v2535_v46 = vand.u32 4294901760, %v2534_v41  ;;  %v2531_v49 = vand.u32 4294901760, %v2530_v44 }
 0x660   : > { %2140 = vrot.lane.b32.xlu0 %v2137_v51, %s3589_s19  ;;  %v2536_v50 = vsub.f32 %v2534_v41, %v2535_v46  ;;  %v2541_v51 = vand.u32 4294901760, %v2540_v47 }
 0x662   : > { %v2537_v52 = vand.u32 4294901760, %v2536_v50 }
 0x663   : > { %v2226_v48 = vpop.f32.mrf.mxu0  ;;  %v2274_v57 = vpop.f32.mrf.mxu2 }
 0x664   : > { %v2227_v55 = vadd.f32 %v2226_v48, %v2203_v54  ;;  %v2542_v54 = vsub.f32 %v2540_v47, %v2541_v51 }
 0x665   : > { %v2296_v59 = vpop.f32.mrf.mxu3 }
 0x666   : > { %v2251_v56 = vadd.f32 %v2250_v53, %v2227_v55  ;;  %v2543_v48 = vand.u32 4294901760, %v2542_v54 }
 0x668   : > { %v2275_v58 = vadd.f32 %v2274_v57, %v2251_v56 }
 0x66a   : > { %v2297_v60 = vadd.f32 %v2296_v59, %v2275_v58 }
 0x66c   : > { %v2299_v61 = vsel %vm1184_vm1, %v2297_v60, -inf }
 0x66d   : > { %2300 = vmax.xlane.f32.xlu2 %v2299_v61 }
 0x6d2   : > { %v2141_v62 = vpop.permute.xlu0 %2140 }
 0x6d3   : > { %2144 = vst.msk [vmem:[#allocation2] sm:$0xff] %vm2143_vm3, %v2141_v62  ;;  %v3389_v62 = vld [vmem:[%s4191_s8] ss:$0 sm:$0xff] }
 0x6e0   : > { %v2301_v63 = vpop.xlane.xlu2 %2300 }
 0x6e1   : > { %v2302_v0 = vsub.f32 %v2297_v60, %v2301_v63 }
 0x6e3   : > { %v2303_v1 = vmul.f32 1.442695, %v2302_v0 }
 0x6e5   : > { %3408 = vpow2.f32 %v2303_v1 }
 0x6eb   : > { %v3409_v3 = vpop.eup %3408 }
 0x6ec   : > { %v2305_v4 = vsel %vm1184_vm1, %v3409_v3, 0.0 }
 0x6ed   : > { %2306 = vadd.xlane.f32.xlu1 %v2305_v4 }
 0x706   : > { %2310 = vrot.lane.b32.xlu1 %v3980_v2, %s3587_s28 }
 0x760   : > { %v2307_v5 = vpop.xlane.xlu1 %2306 }
 0x761   : > { %3410 = vrcp.f32 %v2307_v5 }
 0x767   : > { %v3411_v6 = vpop.eup %3410 }
 0x768   : > { %v2309_v7 = vmul.f32 %v3411_v6, %v3409_v3 }
 0x76a   : > { %v2314_v8 = vsel %vm1184_vm1, %v2309_v7, 0 }
 0x76b   : > { %v2333_v9 = vand.u32 4294901760, %v2314_v8 }
 0x76d   : > { %v2334_v10 = vsub.f32 %v2314_v8, %v2333_v9 }
 0x76f   : > { %v2335_v11 = vand.u32 4294901760, %v2334_v10 }
 0x771   : > { %v2336_v12 = vsub.f32 %v2334_v10, %v2335_v11 }
 0x773   : > { %v2337_v15 = vand.u32 4294901760, %v2336_v12  ;;  %v3418_v12 = vld [vmem:[%s3788_s7] sm:$0xff]  ;;  %s3523_s7 = sshra.s32 %s3205_s3, 4  ;;  %s3524_s7 = int_to_ptr.hbm [resolvable:$true] %s3523_s7 }
 0x774   : > { %s3525_s17 = scalar_lea.hbm %s3524_s7, 8  ;;  %p3530_p12 = scmp.lt.s32.totalorder %s3524_s7, %s4241_s0 }
 0x775   : > { %p3526_p1 = scmp.ne.s32.totalorder %s3524_s7, %s3525_s17  ;;  %p3531_p7 = scmp.lt.s32.totalorder %s3529_s29, %s3525_s17 }
 0x777   : > { %p3527_p3 = pnand %p3526_p1, %p3751_p4  ;;  %p3532_p8 = por %p3531_p7, %p3530_p12 }
 0x778   : > { %v2311_v13 = vpop.permute.xlu1 %2310 }
 0x779   : > { %v2331_v14 = vand.u32 4294901760, %v2311_v13  ;;  %p3528_p5 = pneg %p3527_p3 }
 0x77b   : > { %v2358_v16 = vsub.f32 %v2311_v13, %v2331_v14  ;;  %2332 = vmatpush.msrb.mxu0 %v2331_v14  ;;  %2408 = vmatpush.msrb.mxu3 %v2331_v14  ;;  %p3533_p9 = pnand %p3532_p8, %p3528_p5 }
 0x77c   : > { %2338 = vmatmul.f32.vlgmr.msrb.gmra.mxu0 %v2337_v15  ;;  %2412 = vmatmul.f32.vlgmr.msrb.gmra.mxu3 %v2335_v11  ;;  %v3591_v15 = vmov 32.0  }
 0x77d   : > { %v2359_v18 = vand.u32 4294901760, %v2358_v16  ;;  %2385 = vmatpush.msrb.mxu2 %v2358_v16  ;;  %2526 = vmatpush.msra.mxu3 %v2525_v43  ;;  %3412 = vrcp.f32 %v3591_v15 }
 0x77e   : > { %2388 = vmatmul.f32.vlgmr.msrb.gmra.mxu2 %v2334_v10 }
 0x77f   : > { %v2360_v2 = vsub.f32 %v2358_v16, %v2359_v18  ;;  %2434 = vmatpush.msra.mxu0 %v2359_v18  ;;  %2493 = vmatpush.msra.mxu2 %v2492_v32 }
 0x780   : > { %2532 = vmatpush.msra.mxu3 %v2531_v49 }
 0x781   : > { %v2361_v19 = vand.u32 4294901760, %v2360_v2  ;;  %2564 = vmatpush.msrb.mxu0 %v2522_v34  ;;  %2495 = vmatpush.msra.mxu2 %v2494_v35 }
 0x782   : > { %2538 = vmatpush.msra.mxu3 %v2537_v52 }
 0x783   : > { %2362 = vmatpush.msrb.mxu1 %v2361_v19  ;;  %2567 = vmatpush.msrb.mxu0 %v2528_v38  ;;  %v3413_v16 = vpop.eup %3412 }
 0x784   : > { %2364 = vmatmul.f32.vlgmr.msrb.gmra.mxu1 %v2333_v9  ;;  %2436 = vmatmul.f32.vlgmr.msra.gmra.mxu0 %v2333_v9  ;;  %v2672_v18 = vmul.f32 32.0, %v3413_v16  ;;  %vm2676_vm5 = vweird.f32 %v3413_v16 }
 0x785   : > { %2456 = vmatpush.msra.mxu1 %v2331_v14  ;;  %2497 = vmatpush.msra.mxu2 %v2496_v39 }
 0x786   : > { %2570 = vmatpush.msrb.mxu0 %v2534_v41  ;;  %2544 = vmatpush.msra.mxu3 %v2543_v48  ;;  %v2673_v2 = vsub.f32 1.0, %v2672_v18  ;;  %v2909_v18 = vld [vmem:[%s4196_s13 + $0x20] sm:$0xff] }
 0x787   : > { %2593 = vmatpush.msrb.mxu1 %v2492_v32  ;;  %2499 = vmatpush.msra.mxu2 %v2498_v42 }
 0x788   : > { %2573 = vmatpush.msrb.mxu0 %v2540_v47  ;;  %2653 = vmatpush.msrb.mxu3 %v2492_v32  ;;  %v2674_v19 = vmul.f32 %v3413_v16, %v2673_v2  ;;  %v2710_v32 = vld [vmem:[#allocation8 + $0x8] sm:$0xff] }
 0x789   : > { %2595 = vmatpush.msrb.mxu1 %v2494_v35  ;;  %2622 = vmatpush.msrb.mxu2 %v2523_v37 }
 0x78a   : > { %2655 = vmatpush.msrb.mxu3 %v2494_v35  ;;  %v2735_v35 = vand.u32 4294901760, %v2710_v32 }
 0x78b   : > { %2597 = vmatpush.msrb.mxu1 %v2496_v39  ;;  %2626 = vmatpush.msrb.mxu2 %v2529_v40 }
 0x78c   : > { %2458 = vmatmul.f32.vlgmr.msra.gmra.mxu1 %v2333_v9  ;;  %2657 = vmatpush.msrb.mxu3 %v2496_v39  ;;  %v2773_v39 = vsub.f32 %v2710_v32, %v2735_v35 }
 0x78d   : > { %2599 = vmatpush.msrb.mxu1 %v2498_v42  ;;  %2630 = vmatpush.msrb.mxu2 %v2535_v46 }
 0x78e   : > { %2659 = vmatpush.msrb.mxu3 %v2498_v42  ;;  %v2774_v41 = vand.u32 4294901760, %v2773_v39  ;;  %v2779_v42 = vsub.f32 %v2709_v36, %v2737_v45 }
 0x78f   : > { %2634 = vmatpush.msrb.mxu2 %v2541_v51 }
 0x790   : > { %v2775_v44 = vsub.f32 %v2773_v39, %v2774_v41  ;;  %v2780_v46 = vand.u32 4294901760, %v2779_v42 }
 0x792   : > { %v2776_v47 = vand.u32 4294901760, %v2775_v44  ;;  %v2781_v49 = vsub.f32 %v2779_v42, %v2780_v46 }
 0x794   : > { %v2782_v50 = vand.u32 4294901760, %v2781_v49 }
 0x7f9   : > { %v2339_v20 = vpop.f32.mrf.mxu0 }
 0x7ff   : > { %v2413_v25 = vpop.f32.mrf.mxu3 }
 0x801   : > { %v2365_v21 = vpop.f32.mrf.mxu1  ;;  %v2389_v23 = vpop.f32.mrf.mxu2 }
 0x802   : > { %v2366_v22 = vadd.f32 %v2365_v21, %v2339_v20  ;;  %v2437_v27 = vpop.f32.mrf.mxu0  ;;  %v2675_v20 = vadd.f32 %v3413_v16, %v2674_v19 }
 0x804   : > { %v2390_v24 = vadd.f32 %v2389_v23, %v2366_v22  ;;  %v4047_v21 = vsel %vm2676_vm5, %v3413_v16, %v2675_v20 }
 0x806   : > { %v2414_v26 = vadd.f32 %v2413_v25, %v2390_v24 }
 0x808   : > { %v2438_v28 = vadd.f32 %v2437_v27, %v2414_v26  ;;  %v2712_v27 = vld [vmem:[#allocation8 + $0x18] sm:$0xff] }
 0x809   : > { %v2459_v17 = vpop.f32.mrf.mxu1 }
 0x80a   : > { %v2460_v29 = vadd.f32 %v2459_v17, %v2438_v28  ;;  %v2731_v28 = vand.u32 4294901760, %v2712_v27  ;;  %v2711_v17 = vld [vmem:[#allocation8 + $0x10] sm:$0xff] }
 0x80b   : > { %v2733_v30 = vand.u32 4294901760, %v2711_v17 }
 0x80c   : > { %2463 = vrot.lane.b32.xlu1 %v2460_v29, %s3590_s15  ;;  %v2761_v29 = vsub.f32 %v2712_v27, %v2731_v28  ;;  %2732 = vmatpush.msra.mxu0 %v2731_v28  ;;  %s4243_s15 = sld [smem:[#allocation26_spill]] }
 0x80d   : > { %v2767_v34 = vsub.f32 %v2711_v17, %v2733_v30  ;;  %v2907_v17 = vld [vmem:[%s4196_s13 + $0x10] sm:$0xff] }
 0x80e   : > { %v2762_v33 = vand.u32 4294901760, %v2761_v29  ;;  %2734 = vmatpush.msra.mxu0 %v2733_v30 }
 0x80f   : > { %v2768_v38 = vand.u32 4294901760, %v2767_v34 }
 0x810   : > { %v2763_v37 = vsub.f32 %v2761_v29, %v2762_v33  ;;  %2736 = vmatpush.msra.mxu0 %v2735_v35 }
 0x811   : > { %v2769_v40 = vsub.f32 %v2767_v34, %v2768_v38 }
 0x812   : > { %v2764_v31 = vand.u32 4294901760, %v2763_v37  ;;  %2738 = vmatpush.msra.mxu0 %v2737_v45 }
 0x813   : > { %v2770_v43 = vand.u32 4294901760, %v2769_v40 }
 0x814   : > { %2765 = vmatpush.msra.mxu1 %v2764_v31  ;;  %v2905_v31 = vld [vmem:[%s4196_s13] sm:$0xff] }
 0x816   : > { %2771 = vmatpush.msra.mxu1 %v2770_v43  ;;  %v2942_v43 = vand.u32 4294901760, %v2905_v31 }
 0x818   : > { %2777 = vmatpush.msra.mxu1 %v2776_v47  ;;  %v3004_v49 = vsub.f32 %v2905_v31, %v2942_v43 }
 0x81a   : > { %2783 = vmatpush.msra.mxu1 %v2782_v50 }
 0x87e   : > { %v2464_v55 = vpop.permute.xlu1 %2463 }
 0x87f   : > { %2467 = vst.msk [vmem:[#allocation2] sm:$0xff] %vm2466_vm4, %v2464_v55 }
 0x886   : > { %v2468_v53 = vld [vmem:[#allocation2] sm:$0xff] }
 0x887   : > { %v2478_v56 = vsel %vm608_vm0, %v2468_v53, 0 }
 0x888   : > { %v2500_v57 = vand.u32 4294901760, %v2478_v56 }
 0x88a   : > { %2546 = vmatmul.f32.vlgmr.msra.gmra.mxu3 %v2500_v57  ;;  %v2501_v58 = vsub.f32 %v2478_v56, %v2500_v57 }
 0x88b   : > { %2832 = vmatpush.msra.mxu3 %v2731_v28 }
 0x88c   : > { %2576 = vmatmul.f32.vlgmr.msrb.gmra.mxu0 %v2501_v58  ;;  %v2502_v59 = vand.u32 4294901760, %v2501_v58 }
 0x88d   : > { %2834 = vmatpush.msra.mxu3 %v2733_v30  ;;  %2861 = vmatpush.msrb.mxu0 %v2762_v33  ;;  %v2938_v33 = vand.u32 4294901760, %v2907_v17 }
 0x88e   : > { %2603 = vmatmul.f32.vlgmr.msrb.gmra.mxu1 %v2502_v59  ;;  %v2503_v60 = vsub.f32 %v2501_v58, %v2502_v59  ;;  %v3390_v59 = vld [vmem:[%s4192_s9] ss:$0 sm:$0xff] }
 0x88f   : > { %2836 = vmatpush.msra.mxu3 %v2735_v35  ;;  %2865 = vmatpush.msrb.mxu0 %v2768_v38  ;;  %v2992_v38 = vsub.f32 %v2907_v17, %v2938_v33 }
 0x890   : > { %v2504_v61 = vand.u32 4294901760, %v2503_v60  ;;  %2892 = vmatpush.msrb.mxu1 %v2731_v28 }
 0x891   : > { %2838 = vmatpush.msra.mxu3 %v2737_v45  ;;  %2869 = vmatpush.msrb.mxu0 %v2774_v41  ;;  %v2993_v41 = vand.u32 4294901760, %v2992_v38 }
 0x892   : > { %2505 = vmatmul.f32.vlgmr.msra.gmra.mxu2 %v2504_v61  ;;  %2661 = vmatmul.f32.vlgmr.msrb.gmra.mxu3 %v2500_v57 }
 0x893   : > { %2803 = vmatpush.msra.mxu2 %v2761_v29  ;;  %2873 = vmatpush.msrb.mxu0 %v2780_v46  ;;  %v2994_v46 = vsub.f32 %v2992_v38, %v2993_v41 }
 0x894   : > { %2894 = vmatpush.msrb.mxu1 %v2733_v30 }
 0x895   : > { %2806 = vmatpush.msra.mxu2 %v2767_v34 }
 0x896   : > { %2896 = vmatpush.msrb.mxu1 %v2735_v35  ;;  %v2906_v35 = vld [vmem:[%s4196_s13 + $0x8] sm:$0xff] }
 0x897   : > { %2809 = vmatpush.msra.mxu2 %v2773_v39  ;;  %v2940_v39 = vand.u32 4294901760, %v2906_v35 }
 0x898   : > { %2898 = vmatpush.msrb.mxu1 %v2737_v45 }
 0x899   : > { %2812 = vmatpush.msra.mxu2 %v2779_v42  ;;  %v2998_v42 = vsub.f32 %v2906_v35, %v2940_v39 }
 0x89a   : > { %2636 = vmatmul.f32.vlgmr.msrb.gmra.mxu2 %v2500_v57 }
 0x89b   : > { %v2999_v47 = vand.u32 4294901760, %v2998_v42 }
 0x909   : > { %v2577_v4 = vpop.f32.mrf.mxu0 }
 0x90b   : > { %v2604_v6 = vpop.f32.mrf.mxu1 }
 0x90d   : > { %v2547_v63 = vpop.f32.mrf.mxu3 }
 0x915   : > { %v2506_v0 = vpop.f32.mrf.mxu2  ;;  %v2662_v10 = vpop.f32.mrf.mxu3 }
 0x916   : > { %v2507_v1 = vadd.f32 %v3389_v62, %v2506_v0  ;;  %v3391_v62 = vld [vmem:[%s4193_s10] ss:$0 sm:$0xff] }
 0x918   : > { %v2548_v3 = vadd.f32 %v2547_v63, %v2507_v1 }
 0x91a   : > { %v2578_v5 = vadd.f32 %v2577_v4, %v2548_v3 }
 0x91c   : > { %v2605_v7 = vadd.f32 %v2604_v6, %v2578_v5 }
 0x91d   : > { %v2637_v8 = vpop.f32.mrf.mxu2 }
 0x91e   : > { %v2638_v9 = vadd.f32 %v2637_v8, %v2605_v7  ;;  %v2912_v8 = vld [vmem:[%s4196_s13 + $0x38] sm:$0xff] }
 0x920   : > { %v2663_v11 = vadd.f32 %v2662_v10, %v2638_v9  ;;  %v4070_v9 = vand.u32 4294901760, %v2912_v8  ;;  %v2911_v10 = vld [vmem:[%s4196_s13 + $0x30] sm:$0xff] }
 0x922   : > { %v2665_v13 = vadd.f32 %v3418_v12, %v2663_v11  ;;  %v4076_v11 = vsub.f32 %v2912_v8, %v4070_v9  ;;  %v4078_v12 = vand.u32 4294901760, %v2911_v10  ;;  %2929 = vmatpush.msrb.mxu2 %v4070_v9 }
 0x924   : > { %v2668_v14 = vsel %vm608_vm0, %v2665_v13, 0.0  ;;  %v4087_v15 = vsub.f32 %v2911_v10, %v4078_v12  ;;  %2931 = vmatpush.msrb.mxu2 %v4078_v12 }
 0x925   : > { %2669 = vadd.xlane.f32.xlu2 %v2668_v14  ;;  %v2963_v14 = vand.u32 4294901760, %v4076_v11 }
 0x926   : > { %v2969_v19 = vand.u32 4294901760, %v4087_v15 }
 0x927   : > { %v2964_v2 = vsub.f32 %v4076_v11, %v2963_v14 }
 0x998   : > { %v2670_v22 = vpop.xlane.xlu2 %2669 }
 0x999   : > { %v2678_v23 = vmul.f32 %v4047_v21, %v2670_v22  ;;  %v4102_v22 = vand.u32 4294901760, %v2909_v18 }
 0x99b   : > { %v4050_v24 = vsub.f32 %v2665_v13, %v2678_v23  ;;  %v2910_v13 = vld [vmem:[%s4196_s13 + $0x28] sm:$0xff]  ;;  %v2908_v23 = vld [vmem:[%s4196_s13 + $0x18] sm:$0xff]  ;;  %v2980_v27 = vsub.f32 %v2909_v18, %v4102_v22 }
 0x99c   : > { %v4089_v16 = vand.u32 4294901760, %v2910_v13  ;;  %v2936_v28 = vand.u32 4294901760, %v2908_v23 }
 0x99d   : > { %v2680_v25 = vmul.f32 %v4050_v24, %v4050_v24  ;;  %v2981_v32 = vand.u32 4294901760, %v2980_v27 }
 0x99e   : > { %v4100_v20 = vsub.f32 %v2910_v13, %v4089_v16  ;;  %2933 = vmatpush.msrb.mxu2 %v4089_v16  ;;  %v2986_v34 = vsub.f32 %v2908_v23, %v2936_v28 }
 0x99f   : > { %v2681_v26 = vsel %vm608_vm0, %v2680_v25, 0.0  ;;  %v2970_v25 = vsub.f32 %v4087_v15, %v2969_v19  ;;  %v2982_v37 = vsub.f32 %v2980_v27, %v2981_v32 }
 0x9a0   : > { %2682 = vadd.xlane.f32.xlu0 %v2681_v26  ;;  %v2975_v26 = vand.u32 4294901760, %v4100_v20  ;;  %2935 = vmatpush.msrb.mxu2 %v4102_v22  ;;  %v2987_v45 = vand.u32 4294901760, %v2986_v34 }
 0x9a1   : > { %v2971_v29 = vand.u32 4294901760, %v2970_v25  ;;  %v2983_v40 = vand.u32 4294901760, %v2982_v37 }
 0x9a2   : > { %v2976_v30 = vsub.f32 %v4100_v20, %v2975_v26  ;;  %2937 = vmatpush.msrb.mxu2 %v2936_v28  ;;  %v2988_v44 = vsub.f32 %v2986_v34, %v2987_v45 }
 0x9a4   : > { %v2977_v36 = vand.u32 4294901760, %v2976_v30  ;;  %2939 = vmatpush.msrb.mxu2 %v2938_v33  ;;  %v2989_v50 = vand.u32 4294901760, %v2988_v44 }
 0x9a6   : > { %2941 = vmatpush.msrb.mxu2 %v2940_v39 }
 0x9a8   : > { %2943 = vmatpush.msrb.mxu2 %v2942_v43 }
 0xa13   : > { %v2683_v51 = vpop.xlane.xlu0 %2682 }
 0xa14   : > { %v2684_v52 = vmul.f32 %v2683_v51, %v4047_v21  ;;  %v2995_v51 = vand.u32 4294901760, %v2994_v46 }
 0xa16   : > { %v2685_v54 = vadd.f32 1e-05, %v2684_v52  ;;  %v3000_v52 = vsub.f32 %v2998_v42, %v2999_v47 }
 0xa18   : > { %3414 = vrsqrt.f32 %v2685_v54  ;;  %vm2692_vm7 = vweird.f32 %v2685_v54 }
 0xa1e   : > { %v3415_v48 = vpop.eup %3414 }
 0xa1f   : > { %v2687_v55 = vmul.f32 %v3415_v48, %v2685_v54  ;;  %vm2693_vm6 = vweird.f32 %v3415_v48  ;;  %v3005_v54 = vand.u32 4294901760, %v3004_v49 }
 0xa20   : > { %vm2694_vm8 = vmor %vm2692_vm7, %vm2693_vm6 }
 0xa21   : > { %v2688_v53 = vmul.f32 %v3415_v48, %v2687_v55  ;;  %v3006_v55 = vsub.f32 %v3004_v49, %v3005_v54 }
 0xa23   : > { %v2689_v56 = vmul.f32 0.5, %v2688_v53  ;;  %v3007_v53 = vand.u32 4294901760, %v3006_v55 }
 0xa25   : > { %v2690_v57 = vsub.f32 1.5, %v2689_v56  ;;  %v3392_v56 = vld [vmem:[%s4195_s12] ss:$0 sm:$0xff] }
 0xa27   : > { %v2691_v58 = vmul.f32 %v3415_v48, %v2690_v57 }
 0xa29   : > { %v2695_v60 = vsel %vm2694_vm8, %v3415_v48, %v2691_v58  ;;  %v3001_v48 = vand.u32 4294901760, %v3000_v52 }
 0xa2a   : > { %v2696_v61 = vmul.f32 %v2695_v60, %v4050_v24  ;;  %v2965_v24 = vand.u32 4294901760, %v2964_v2 }
 0xa2c   : > { %v2700_v63 = vmul.f32 %v3390_v59, %v2696_v61  ;;  %2966 = vmatpush.msrb.mxu3 %v2965_v24 }
 0xa2e   : > { %v4063_v0 = vadd.f32 %v3391_v62, %v2700_v63  ;;  %2972 = vmatpush.msrb.mxu3 %v2971_v29 }
 0xa30   : > { %v2717_v1 = vsel %vm608_vm0, %v4063_v0, 0  ;;  %2978 = vmatpush.msrb.mxu3 %v2977_v36 }
 0xa31   : > { %v2739_v3 = vand.u32 4294901760, %v2717_v1 }
 0xa32   : > { %2984 = vmatpush.msrb.mxu3 %v2983_v40 }
 0xa33   : > { %2785 = vmatmul.f32.vlgmr.msra.gmra.mxu1 %v2739_v3  ;;  %v2740_v4 = vsub.f32 %v2717_v1, %v2739_v3 }
 0xa34   : > { %3061 = vmatpush.msra.mxu1 %v4070_v9  ;;  %2990 = vmatpush.msrb.mxu3 %v2989_v50 }
 0xa35   : > { %2815 = vmatmul.f32.vlgmr.msra.gmra.mxu2 %v2740_v4  ;;  %v2741_v5 = vand.u32 4294901760, %v2740_v4 }
 0xa36   : > { %3063 = vmatpush.msra.mxu1 %v4078_v12  ;;  %3094 = vmatpush.msra.mxu2 %v2963_v14  ;;  %v3393_v14 = vld [vmem:[%s4197_s14] ss:$0 sm:$0xff] }
 0xa37   : > { %2842 = vmatmul.f32.vlgmr.msra.gmra.mxu3 %v2741_v5  ;;  %v2742_v6 = vsub.f32 %v2740_v4, %v2741_v5 }
 0xa38   : > { %3065 = vmatpush.msra.mxu1 %v4089_v16  ;;  %3098 = vmatpush.msra.mxu2 %v2969_v19 }
 0xa39   : > { %v2743_v7 = vand.u32 4294901760, %v2742_v6  ;;  %2996 = vmatpush.msrb.mxu3 %v2995_v51 }
 0xa3a   : > { %3067 = vmatpush.msra.mxu1 %v4102_v22  ;;  %3102 = vmatpush.msra.mxu2 %v2975_v26 }
 0xa3b   : > { %2744 = vmatmul.f32.vlgmr.msra.gmra.mxu0 %v2743_v7  ;;  %2900 = vmatmul.f32.vlgmr.msrb.gmra.mxu1 %v2739_v3 }
 0xa3c   : > { %3024 = vmatpush.msra.mxu0 %v4076_v11  ;;  %3069 = vmatpush.msra.mxu1 %v2936_v28 }
 0xa3d   : > { %3002 = vmatpush.msrb.mxu3 %v3001_v48  ;;  %3106 = vmatpush.msra.mxu2 %v2981_v32 }
 0xa3e   : > { %3027 = vmatpush.msra.mxu0 %v4087_v15  ;;  %3071 = vmatpush.msra.mxu1 %v2938_v33 }
 0xa3f   : > { %3008 = vmatpush.msrb.mxu3 %v3007_v53  ;;  %3110 = vmatpush.msra.mxu2 %v2987_v45 }
 0xa40   : > { %3030 = vmatpush.msra.mxu0 %v4100_v20  ;;  %3073 = vmatpush.msra.mxu1 %v2940_v39 }
 0xa41   : > { %3137 = vmatpush.msra.mxu3 %v4070_v9  ;;  %3114 = vmatpush.msra.mxu2 %v2993_v41  ;;  %v3394_v41 = vld [vmem:[%s4239_s11] ss:$0 sm:$0xff] }
 0xa42   : > { %3033 = vmatpush.msra.mxu0 %v2980_v27  ;;  %3075 = vmatpush.msra.mxu1 %v2942_v43 }
 0xa43   : > { %2875 = vmatmul.f32.vlgmr.msrb.gmra.mxu0 %v2739_v3  ;;  %3139 = vmatpush.msra.mxu3 %v4078_v12 }
 0xa44   : > { %3036 = vmatpush.msra.mxu0 %v2986_v34  ;;  %3118 = vmatpush.msra.mxu2 %v2999_v47 }
 0xa45   : > { %3141 = vmatpush.msra.mxu3 %v4089_v16 }
 0xa46   : > { %3039 = vmatpush.msra.mxu0 %v2992_v38  ;;  %3122 = vmatpush.msra.mxu2 %v3005_v54 }
 0xa47   : > { %3143 = vmatpush.msra.mxu3 %v4102_v22 }
 0xa48   : > { %3042 = vmatpush.msra.mxu0 %v2998_v42 }
 0xa49   : > { %3145 = vmatpush.msra.mxu3 %v2936_v28 }
 0xa4a   : > { %3045 = vmatpush.msra.mxu0 %v3004_v49 }
 0xa4b   : > { %3147 = vmatpush.msra.mxu3 %v2938_v33 }
 0xa4d   : > { %3149 = vmatpush.msra.mxu3 %v2940_v39 }
 0xa4f   : > { %3151 = vmatpush.msra.mxu3 %v2942_v43  ;;  %v3395_v43 = vld [vmem:[%s4243_s15] ss:$0 sm:$0xff] }
 0xab0   : > { %v2786_v57 = vpop.f32.mrf.mxu1 }
 0xab8   : > { %v2745_v58 = vpop.f32.mrf.mxu0  ;;  %v2816_v61 = vpop.f32.mrf.mxu2 }
 0xab9   : > { %v2746_v59 = vadd.f32 %v3392_v56, %v2745_v58  ;;  %v2901_v5 = vpop.f32.mrf.mxu1 }
 0xaba   : > { %v2843_v63 = vpop.f32.mrf.mxu3 }
 0xabb   : > { %v2787_v60 = vadd.f32 %v2786_v57, %v2746_v59 }
 0xabd   : > { %v2817_v62 = vadd.f32 %v2816_v61, %v2787_v60 }
 0xabf   : > { %v2844_v1 = vadd.f32 %v2843_v63, %v2817_v62 }
 0xac0   : > { %v2876_v3 = vpop.f32.mrf.mxu0 }
 0xac1   : > { %v2877_v4 = vadd.f32 %v2876_v3, %v2844_v1 }
 0xac3   : > { %v2902_v6 = vadd.f32 %v2901_v5, %v2877_v4 }
 0xac5   : > { %v2904_v7 = vmax.f32 %v2902_v6, 0.0 }
 0xac7   : > { %v2918_v8 = vsel %vm2916_vm9, %v2904_v7, 0 }
 0xac8   : > { %v2944_v9 = vand.u32 4294901760, %v2918_v8 }
 0xaca   : > { %v2945_v10 = vsub.f32 %v2918_v8, %v2944_v9  ;;  %3010 = vmatmul.f32.vlgmr.msrb.gmra.mxu3 %v2944_v9 }
 0xacc   : > { %3048 = vmatmul.f32.vlgmr.msra.gmra.mxu0 %v2945_v10  ;;  %v2946_v11 = vand.u32 4294901760, %v2945_v10 }
 0xace   : > { %3079 = vmatmul.f32.vlgmr.msra.gmra.mxu1 %v2946_v11  ;;  %v2947_v12 = vsub.f32 %v2945_v10, %v2946_v11 }
 0xad0   : > { %v2948_v13 = vand.u32 4294901760, %v2947_v12 }
 0xad2   : > { %2949 = vmatmul.f32.vlgmr.msrb.gmra.mxu2 %v2948_v13  ;;  %3153 = vmatmul.f32.vlgmr.msra.gmra.mxu3 %v2944_v9 }
 0xada   : > { %3124 = vmatmul.f32.vlgmr.msra.gmra.mxu2 %v2944_v9 }
 0xb49   : > { %v3049_v19 = vpop.f32.mrf.mxu0 }
 0xb4b   : > { %v3080_v22 = vpop.f32.mrf.mxu1 }
 0xb4d   : > { %v3011_v15 = vpop.f32.mrf.mxu3 }
 0xb55   : > { %v2950_v16 = vpop.f32.mrf.mxu2  ;;  %v3154_v26 = vpop.f32.mrf.mxu3 }
 0xb56   : > { %v2951_v18 = vadd.f32 %v3393_v14, %v2950_v16 }
 0xb58   : > { %v3012_v2 = vadd.f32 %v3011_v15, %v2951_v18 }
 0xb5a   : > { %v3050_v20 = vadd.f32 %v3049_v19, %v3012_v2 }
 0xb5c   : > { %v3081_v23 = vadd.f32 %v3080_v22, %v3050_v20 }
 0xb5d   : > { %v3125_v24 = vpop.f32.mrf.mxu2 }
 0xb5e   : > { %v3126_v25 = vadd.f32 %v3125_v24, %v3081_v23 }
 0xb60   : > { %v3155_v27 = vadd.f32 %v3154_v26, %v3126_v25 }
 0xb62   : > { %v3157_v28 = vadd.f32 %v3155_v27, %v4063_v0 }
 0xb64   : > { %v3158_v17 = vsel %vm608_vm0, %v3157_v28, 0.0 }
 0xb65   : > { %3159 = vadd.xlane.f32.xlu1 %v3158_v17 }
 0xbd8   : > { %v3160_v29 = vpop.xlane.xlu1 %3159 }
 0xbd9   : > { %v3161_v30 = vmul.f32 %v3160_v29, %v4047_v21 }
 0xbdb   : > { %v3162_v32 = vsub.f32 %v3157_v28, %v3161_v30 }
 0xbdd   : > { %v3163_v33 = vmul.f32 %v3162_v32, %v3162_v32 }
 0xbdf   : > { %v3164_v34 = vsel %vm608_vm0, %v3163_v33, 0.0 }
 0xbe0   : > { %3165 = vadd.xlane.f32.xlu2 %v3164_v34 }
 0xc53   : > { %v3166_v35 = vpop.xlane.xlu2 %3165 }
 0xc54   : > { %v3167_v36 = vmul.f32 %v3166_v35, %v4047_v21 }
 0xc56   : > { %v3168_v37 = vadd.f32 1e-05, %v3167_v36 }
 0xc58   : > { %3416 = vrsqrt.f32 %v3168_v37  ;;  %vm3175_vm11 = vweird.f32 %v3168_v37 }
 0xc5e   : > { %v3417_v38 = vpop.eup %3416 }
 0xc5f   : > { %v3170_v0 = vmul.f32 %v3417_v38, %v3168_v37  ;;  %vm3176_vm10 = vweird.f32 %v3417_v38 }
 0xc60   : > { %vm3177_vm12 = vmor %vm3175_vm11, %vm3176_vm10 }
 0xc61   : > { %v3171_v39 = vmul.f32 %v3417_v38, %v3170_v0 }
 0xc63   : > { %v3172_v45 = vmul.f32 0.5, %v3171_v39 }
 0xc65   : > { %v3173_v31 = vsub.f32 1.5, %v3172_v45 }
 0xc67   : > { %v3174_v40 = vmul.f32 %v3417_v38, %v3173_v31 }
 0xc69   : > { %v3178_v21 = vsel %vm3177_vm12, %v3417_v38, %v3174_v40 }
 0xc6a   : > { %v3179_v42 = vmul.f32 %v3178_v21, %v3162_v32 }
 0xc6c   : > { %v3183_v44 = vmul.f32 %v3394_v41, %v3179_v42 }
 0xc6e   : > { %v3187_v46 = vadd.f32 %v3395_v43, %v3183_v44 }
 0xc70   : > { %3188 = vst.msk [vmem:[%s598_s30] sm:$0xff] %vm608_vm0, %v3187_v46 }
 0xc71   : > { %3536 = shalt.err (!%p3533_p9)
}
 0xc72   : > { %3320 = dma.vmem_to_hbm [thread:$0]  (%p3751_p4), %s3203_s2, 128, %s3205_s3, %s3190_s26  }
 0xc73 PF: > { %s4244_s1 = sld [smem:[#allocation13_spill]]  ;;  %p4246_p10 = scmp.ge.s32.totalorder %s3579_s27, 2 }
 0xc75   : > { %p3334_p13 = pnand %p4246_p10, %p3755_p6 }
 0xc77   : > { %p3335_p11 = pneg %p3334_p13 }
 0xc79   : > { %s3216_s16 = sand.u32 1, %s4244_s1  }
 0xc7a   : > { %s3217_s19 = scalar_lea.sflag [#allocation5], %s3216_s16 }
 0xc7b   : > { %3562 = dma.done.wait (%p3335_p11), %s3217_s19, 128  }
 0xc7c   : > { %3564 = vsyncadd (%p3335_p11), %s3217_s19, 4294967168  ;;  %s4247_s27 = sld [smem:[#allocation15_spill]]  ;;  %s4250_s24 = smov %s3571_s25 }
 0xc7d   : > { %s4248_s15 = sld [smem:[#allocation14_spill]] }
 0xc7e   : > { %s4249_s26 = sld [smem:[#allocation16_spill]] }
 0xc82   : > { %p31_p0 = scmp.ge.s32.totalorder %s4247_s27, 4  }
 0xc83   : > { %s4251_s25 = smov %s4248_s15 }
 0xc84   :  { %33 = sbr.rel (!%p31_p0) target bundleno = 16 (0x10), region = 141 }
 0xc89   :  { %3223 = vsyncpa [#allocation4], 1 }
 0xc8a   :  { %3225 = vsyncpa [#allocation4 + $0x1], 1 }
 0xc8b   :  { %3226 = vsyncpa [#allocation7], 1 }
 0xc8c   :  { %3227 = vsyncpa [#allocation5], 1 }
 0xc8d   :  { %3229 = vsyncpa [#allocation5 + $0x1], 1 }

// kernel: tpu_custom_call.1
= control target key start
LH: loop header
LB: loop body
LE: loop exit
PB: predicated region body
PF: predicated region fallthrough
CT: control target
= control target key end

     0   :  { %s4183_s0 = inlined_call_operand.hbm [shape: f32[2,8,32], index: 0, kind: input, shape index: {}]   ;;  %s4184_s1 = inlined_call_operand.vmem [shape: f32[32,32], index: 1, kind: input, shape index: {}]   ;;  %s4185_s2 = inlined_call_operand.vmem [shape: f32[1,32], index: 2, kind: input, shape index: {}]   ;;  %s4186_s3 = inlined_call_operand.vmem [shape: f32[32,32], index: 3, kind: input, shape index: {}]   ;;  %s4187_s4 = inlined_call_operand.vmem [shape: f32[1,32], index: 4, kind: input, shape index: {}]   ;;  %s4188_s5 = inlined_call_operand.vmem [shape: f32[32,32], index: 5, kind: input, shape index: {}]   ;;  %s4189_s6 = inlined_call_operand.vmem [shape: f32[1,32], index: 6, kind: input, shape index: {}]   ;;  %s4190_s7 = inlined_call_operand.hbm [shape: f32[32,32], index: 7, kind: input, shape index: {}]   ;;  %s4191_s8 = inlined_call_operand.vmem [shape: f32[1,32], index: 8, kind: input, shape index: {}]   ;;  %s4192_s9 = inlined_call_operand.vmem [shape: f32[1,32], index: 9, kind: input, shape index: {}]   ;;  %s4193_s10 = inlined_call_operand.vmem [shape: f32[1,32], index: 10, kind: input, shape index: {}]   ;;  %s4194_s11 = inlined_call_operand.hbm [shape: f32[32,64], index: 11, kind: input, shape index: {}]   ;;  %s4195_s12 = inlined_call_operand.vmem [shape: f32[1,64], index: 12, kind: input, shape index: {}]   ;;  %s4196_s13 = inlined_call_operand.vmem [shape: f32[64,32], index: 13, kind: input, shape index: {}]   ;;  %s4197_s14 = inlined_call_operand.vmem [shape: f32[1,32], index: 14, kind: input, shape index: {}]   ;;  %s4198_s15 = inlined_call_operand.vmem [shape: f32[1,32], index: 15, kind: input, shape index: {}]   ;;  %s4199_s16 = inlined_call_operand.vmem [shape: f32[1,32], index: 16, kind: input, shape index: {}]   ;;  %s4200_s17 = inlined_call_operand.hbm [shape: f32[2,8,32], index: 17, kind: output, shape index: {}]  }
   0x1   :  { %4211 = sst [smem:[#allocation19_spill]] %s4183_s0 }
   0x2   :  { %4212 = sst [smem:[#allocation20_spill]] %s4184_s1 }
   0x3   :  { %4213 = sst [smem:[#allocation21_spill]] %s4185_s2 }
   0x4   :  { %4214 = sst [smem:[#allocation22_spill]] %s4186_s3 }
   0x5   :  { %4215 = sst [smem:[#allocation23_spill]] %s4190_s7 }
   0x6   :  { %4216 = sst [smem:[#allocation24_spill]] %s4194_s11 }
   0x7   :  { %4217 = sst [smem:[#allocation25_spill]] %s4198_s15 }
   0x8   :  { %4218 = sst [smem:[#allocation26_spill]] %s4199_s16 }
   0x9   :  { %4219 = sst [smem:[#allocation27_spill]] %s4200_s17 }
   0xa   :  { %22 = vsyncpa [#allocation4], 0 }
   0xb   :  { %24 = vsyncpa [#allocation4 + $0x1], 0 }
   0xc   :  { %25 = vsyncpa [#allocation7], 0 }
   0xd   :  { %26 = vsyncpa [#allocation5], 0 }
   0xe   :  { %28 = vsyncpa [#allocation5 + $0x1], 0  ;;  %s3682_s24 = smov 0   ;;  %s3684_s25 = smov 0  }
   0xf   :  { %s3686_s26 = smov 0   ;;  %s3688_s27 = smov 0  }
  0x10 LB: > { %4220 = sst [smem:[#allocation13_spill]] %s3567_s24  ;;  %s3706_s30 = sadd.s32 4294967295, %s3579_s27   ;;  %s3579_s27 = sphi %s3688_s27, %s4247_s27   ;;  %s3575_s26 = sphi %s3686_s26, %s4249_s26   ;;  %s3571_s25 = sphi %s3684_s25, %s4251_s25   ;;  %s3567_s24 = sphi %s3682_s24, %s4250_s24  }
  0x11   : > { %4221 = sst [smem:[#allocation14_spill]] %s3575_s26  ;;  %p3295_p0 = scmp.ge.s32.totalorder %s3579_s27, 1 }
  0x12   : > { %s4222_s7 = sld [smem:[#allocation23_spill]]  ;;  %p55_p1 = scmp.eq.s32.totalorder %s3706_s30, 0 }
  0x13   : > { %p427_p2 = scmp.lt.s32.totalorder %s3579_s27, 3  ;;  %s3581_s19 = smov [#allocation6]  }
  0x14   : > { %s458_s1 = sshll.u32 %s3581_s19, 4  ;;  %s4224_s11 = sld [smem:[#allocation24_spill]]  ;;  %s459_s1 = int_to_ptr.vmem [resolvable:$true] %s458_s1 }
  0x15   : > { %p3711_p3 = pnand %p3295_p0, %p427_p2  ;;  %s3582_s23 = smov [#allocation8]  }
  0x16   : > { %s481_s28 = sshll.u32 %s3582_s23, 4  ;;  %s3583_s29 = smov 128   ;;  %s482_s28 = int_to_ptr.vmem [resolvable:$true] %s481_s28 }
  0x17   : > { %p3322_p4 = pneg %p3711_p3  ;;  %s3584_s19 = smov 8  }
  0x18   : > { %s456_s0 = sshll.u32 %s4222_s7, 4  ;;  %s3294_s20 = sadd.s32 4294967294, %s3579_s27   ;;  %s457_s0 = int_to_ptr.hbm [resolvable:$true] %s456_s0 }
  0x19   : > { %p3323_p6 = pnand %p3322_p4, %p55_p1  ;;  %s3725_s21 = sadd.s32 1, %s3579_s27  }
  0x1a   : > { %s479_s22 = sshll.u32 %s4224_s11, 4  ;;  %4225 = sst [smem:[#allocation15_spill]] %s3725_s21  ;;  %s480_s22 = int_to_ptr.hbm [resolvable:$true] %s479_s22 }
  0x1b   : > { %3325 = dma.hbm_to_vmem [thread:$0]  (!%p3323_p6), %s457_s0, 512, %s459_s1, [#allocation7], %s3583_s29, %s3583_s29, %s3584_s19  }
  0x1c   : > { %3328 = dma.hbm_to_vmem [thread:$0]  (!%p3323_p6), %s480_s22, 512, %s482_s28, [#allocation7], %s3583_s29, %s3583_s29, %s3584_s19  }
  0x1d   : > { %s38_s7 = ssub.s32 %s3579_s27, %s3725_s21  ;;  %s41_s11 = sadd.s32 1, %s3575_s26 }
  0x1e   : > { %p39_p7 = scmp.eq.s32.totalorder %s38_s7, 0  ;;  %p48_p8 = scmp.ne.s32.totalorder %s3575_s26, %s3571_s25 }
  0x1f   : > { %p49_p9 = scmp.eq.s32.totalorder %s3579_s27, 0  ;;  %p54_p10 = scmp.ne.s32.totalorder %s3571_s25, %s3567_s24 }
  0x20   : > { %s3736_s23 = scalar_select %p39_p7, %s3575_s26, %s41_s11  }
  0x21   : > { %p3738_p11 = por %p49_p9, %p48_p8  ;;  %p3744_p12 = por %p55_p1, %p54_p10 }
  0x22   : > { %4226 = sst [smem:[#allocation16_spill]] %s3736_s23  ;;  %p414_p13 = scmp.eq.s32.totalorder %s3706_s30, 1 }
  0x23   : > { %p420_p0 = scmp.eq.s32.totalorder %s3294_s20, 1  ;;  %p3339_p2 = scmp.lt.s32.totalorder %s3579_s27, 2 }
  0x24   : > { %s510_s1 = sand.u32 1, %s3575_s26   ;;  %p3751_p4 = por %p414_p13, %p48_p8 }
  0x25   : > { %p3755_p6 = por %p420_p0, %p54_p10  ;;  %s3299_s22 = sshll.u32 %s510_s1, 3 }
  0x26   : > { %s4229_s7 = scalar_select %p3751_p4, 1, 0 }
  0x27   : > { %s4231_s11 = scalar_select %p3755_p6, 1, 0 }
  0x28   : > { %4230 = sst [smem:[#allocation17_spill]] %s4229_s7  ;;  %s3300_s28 = sshll.u32 %s3579_s27, 3 }
  0x29   : > { %4232 = sst [smem:[#allocation18_spill]] %s4231_s11  ;;  %s514_s24 = scalar_lea.vmem [#allocation3], %s3299_s22 }
  0x2a   : > { %s4233_s23 = sld [smem:[#allocation19_spill]]  ;;  %s522_s17 = sshll.u32 %s514_s24, 4  ;;  %s523_s17 = int_to_ptr.vmem [resolvable:$true] %s522_s17 }
  0x2b   : > { %p3765_p7 = pnand %p3339_p2, %p3738_p11  ;;  %s511_s26 = scalar_lea.sflag [#allocation4], %s510_s1 }
  0x2d   : > { %p3483_p9 = pneg %p3765_p7 }
  0x30   : > { %s518_s21 = scalar_lea.hbm %s4233_s23, %s3300_s28 }
  0x31   : > { %s520_s15 = sshll.u32 %s518_s21, 4  ;;  %s3486_s21 = scalar_lea.hbm %s4233_s23, 16  ;;  %s521_s15 = int_to_ptr.hbm [resolvable:$true] %s520_s15 }
  0x32   : > { %s3479_s7 = sshra.s32 %s521_s15, 4  ;;  %s3480_s7 = int_to_ptr.hbm [resolvable:$true] %s3479_s7 }
  0x33   : > { %s3481_s11 = scalar_lea.hbm %s3480_s7, 8  ;;  %p3487_p11 = scmp.lt.s32.totalorder %s3480_s7, %s4233_s23 }
  0x34   : > { %p3482_p8 = scmp.ne.s32.totalorder %s3480_s7, %s3481_s11  ;;  %p3488_p0 = scmp.lt.s32.totalorder %s3486_s21, %s3481_s11 }
  0x36   : > { %p3484_p10 = pnand %p3483_p9, %p3482_p8  ;;  %p3489_p2 = por %p3488_p0, %p3487_p11 }
  0x38   : > { %p3485_p13 = pneg %p3484_p10 }
  0x3a   : > { %p3490_p5 = pnand %p3489_p2, %p3485_p13 }
  0x3c   : > { %3493 = shalt.err (!%p3490_p5)
}
  0x3d   : > { %3332 = dma.hbm_to_vmem [thread:$0]  (!%p3765_p7), %s521_s15, 128, %s523_s17, %s511_s26  }
  0x3e   : > { %531 = sbr.rel (%p3711_p3) target bundleno = 3187 (0xc73), region = 88  ;;  %s3782_s1 = sand.u32 (!%p3711_p3), 1, %s3571_s25  }
  0x3f   : > { %s3302_s29 = sshll.u32 (!%p3711_p3), %s3782_s1, 3  ;;  %s534_s19 = scalar_lea.sflag (!%p3711_p3), [#allocation4], %s3782_s1 }
  0x40   : > { %s3788_s7 = scalar_lea.vmem (!%p3711_p3), [#allocation3], %s3302_s29 }
  0x43   : > { %3554 = dma.done.wait (%p3744_p12), %s534_s19, 128  }
  0x44   : > { %3556 = vsyncadd (%p3744_p12), %s534_s19, 4294967168 }
  0x45   : > { %3558 = dma.done.wait (%p55_p1), [#allocation7], 1024  }
  0x46   : > { %3560 = vsyncadd (%p55_p1), [#allocation7], 4294966272  ;;  %vm608_vm0 = vcmask 261120   ;;  %s4235_s26 = sld [smem:[#allocation20_spill]]  ;;  %v599_v7 = vld [vmem:[%s3788_s7] sm:$0xff]  ;;  %v993_v52 = vld [vmem:[%s4188_s5 + $0x18] sm:$0xff] }
  0x47   : > { %s4237_s3 = sld [smem:[#allocation22_spill]]  ;;  %v610_v10 = vsel %vm608_vm0, %v599_v7, 0  ;;  %v992_v55 = vld [vmem:[%s4188_s5 + $0x10] sm:$0xff]  ;;  %v3902_v56 = vand.u32 4294901760, %v993_v52  ;;  %v991_v59 = vld [vmem:[%s4188_s5 + $0x8] sm:$0xff]  ;;  %vm1184_vm1 = vcmask 64512  }
  0x48   : > { %v3838_v17 = vand.u32 4294901760, %v610_v10  ;;  %v3907_v58 = vand.u32 4294901760, %v992_v55  ;;  %v3915_v61 = vand.u32 4294901760, %v991_v59  ;;  %s4238_s2 = sld [smem:[#allocation21_spill]]  ;;  %s3585_s22 = smov 120   ;;  %vm1820_vm2 = vcmask 130112  }
  0x49   : > { %v1040_v60 = vsub.f32 %v993_v52, %v3902_v56  ;;  %s3586_s24 = smov 112   ;;  %s3587_s28 = smov 104   ;;  %vm2143_vm3 = vcmask 195712   ;;  %vm2466_vm4 = vcmask 261312   ;;  %vm2916_vm9 = vcmask 523264  }
  0x4a   : > { %v3855_v25 = vsub.f32 %v610_v10, %v3838_v17  ;;  %v1046_v62 = vsub.f32 %v992_v55, %v3907_v58  ;;  %s3588_s16 = smov 8   ;;  %s3589_s19 = smov 16  }
  0x4b   : > { %v1041_v63 = vand.u32 4294901760, %v1040_v60  ;;  %s3590_s15 = smov 24   ;;  %s3307_s17 = sshll.u32 %s3706_s30, 3 }
  0x4c   : > { %s4236_s18 = smov %s4235_s26  ;;  %v603_v0 = vld [vmem:[%s4235_s26 + $0x18] sm:$0xff]  ;;  %v3869_v34 = vand.u32 4294901760, %v3855_v25  ;;  %s4239_s11 = sld [smem:[#allocation25_spill]] }
  0x4d   : > { %v602_v1 = vld [vmem:[%s4236_s18 + $0x10] sm:$0xff]  ;;  %v601_v2 = vld [vmem:[%s4236_s18 + $0x8] sm:$0xff]  ;;  %v3807_v3 = vand.u32 4294901760, %v603_v0  ;;  %v600_v6 = vld [vmem:[%s4236_s18] sm:$0xff]  ;;  %s598_s30 = scalar_lea.vmem [#allocation9], %s3302_s29  ;;  %s3190_s26 = scalar_lea.sflag [#allocation5], %s3782_s1 }
  0x4e   : > { %v3809_v4 = vand.u32 4294901760, %v602_v1  ;;  %v3811_v5 = vand.u32 4294901760, %v601_v2  ;;  %v800_v8 = vld [vmem:[%s4237_s3 + $0x18] sm:$0xff]  ;;  %v3820_v9 = vand.u32 4294901760, %v600_v6  ;;  %v799_v12 = vld [vmem:[%s4237_s3 + $0x10] sm:$0xff]  ;;  %v798_v13 = vld [vmem:[%s4237_s3 + $0x8] sm:$0xff]  ;;  %v635_v40 = vsub.f32 %v3855_v25, %v3869_v34 }
  0x4f   : > { %v3823_v11 = vand.u32 4294901760, %v800_v8  ;;  %v654_v14 = vsub.f32 %v603_v0, %v3807_v3  ;;  %625 = vmatpush.msra.mxu0 %v3807_v3  ;;  %725 = vmatpush.msra.mxu3 %v3807_v3  ;;  %v797_v18 = vld [vmem:[%s4237_s3] sm:$0xff]  ;;  %v3846_v20 = vand.u32 4294901760, %v799_v12  ;;  %v3851_v22 = vand.u32 4294901760, %v798_v13 }
  0x50   : > { %v660_v15 = vsub.f32 %v602_v1, %v3809_v4  ;;  %v3836_v16 = vsub.f32 %v601_v2, %v3811_v5  ;;  %v3844_v19 = vsub.f32 %v600_v6, %v3820_v9  ;;  %v3864_v30 = vand.u32 4294901760, %v797_v18 }
  0x51   : > { %v3849_v21 = vsub.f32 %v800_v8, %v3823_v11  ;;  %696 = vmatpush.msra.mxu2 %v654_v14  ;;  %627 = vmatpush.msra.mxu0 %v3809_v4  ;;  %v655_v23 = vand.u32 4294901760, %v654_v14  ;;  %v3862_v29 = vsub.f32 %v799_v12, %v3846_v20  ;;  %v3875_v37 = vsub.f32 %v798_v13, %v3851_v22 }
  0x52   : > { %v661_v24 = vand.u32 4294901760, %v660_v15  ;;  %v667_v26 = vand.u32 4294901760, %v3836_v16  ;;  %727 = vmatpush.msra.mxu3 %v3809_v4  ;;  %v673_v27 = vand.u32 4294901760, %v3844_v19  ;;  %v3886_v46 = vand.u32 4294901760, %v635_v40 }
  0x53   : > { %v848_v28 = vand.u32 4294901760, %v3849_v21  ;;  %699 = vmatpush.msra.mxu2 %v660_v15  ;;  %v656_v31 = vsub.f32 %v654_v14, %v655_v23  ;;  %629 = vmatpush.msra.mxu0 %v3811_v5  ;;  %v854_v36 = vand.u32 4294901760, %v3862_v29  ;;  %v860_v44 = vand.u32 4294901760, %v3875_v37 }
  0x54   : > { %v662_v32 = vsub.f32 %v660_v15, %v661_v24  ;;  %v668_v33 = vsub.f32 %v3836_v16, %v667_v26  ;;  %729 = vmatpush.msra.mxu3 %v3811_v5  ;;  %v674_v41 = vsub.f32 %v3844_v19, %v673_v27  ;;  %v865_v47 = vsub.f32 %v797_v18, %v3864_v30  ;;  %v3386_v15 = vld [vmem:[%s4238_s2] ss:$0 sm:$0xff]  ;;  %s3202_s2 = sshll.u32 %s598_s30, 4  ;;  %s3203_s2 = int_to_ptr.vmem [resolvable:$true] %s3202_s2 }
  0x55   : > { %v849_v35 = vsub.f32 %v3849_v21, %v848_v28  ;;  %v657_v38 = vand.u32 4294901760, %v656_v31  ;;  %702 = vmatpush.msra.mxu2 %v3836_v16  ;;  %631 = vmatpush.msra.mxu0 %v3820_v9  ;;  %v855_v43 = vsub.f32 %v3862_v29, %v854_v36  ;;  %v861_v49 = vsub.f32 %v3875_v37, %v860_v44 }
  0x56   : > { %v663_v39 = vand.u32 4294901760, %v662_v32  ;;  %731 = vmatpush.msra.mxu3 %v3820_v9  ;;  %v669_v45 = vand.u32 4294901760, %v668_v33  ;;  %v675_v50 = vand.u32 4294901760, %v674_v41  ;;  %v866_v51 = vand.u32 4294901760, %v865_v47  ;;  %637 = vmatmul.f32.vlgmr.msra.gmra.mxu0 %v3886_v46 }
  0x57   : > { %754 = vmatpush.msrb.mxu0 %v655_v23  ;;  %v850_v42 = vand.u32 4294901760, %v849_v35  ;;  %658 = vmatpush.msra.mxu1 %v657_v38  ;;  %v856_v48 = vand.u32 4294901760, %v855_v43  ;;  %v862_v54 = vand.u32 4294901760, %v861_v49  ;;  %v1052_v0 = vsub.f32 %v991_v59, %v3915_v61 }
  0x58   : > { %705 = vmatpush.msra.mxu2 %v3844_v19  ;;  %735 = vmatmul.f32.vlgmr.msra.gmra.mxu3 %v3869_v34  ;;  %v867_v53 = vsub.f32 %v865_v47, %v866_v51  ;;  %v1047_v1 = vand.u32 4294901760, %v1046_v62  ;;  %v1042_v2 = vsub.f32 %v1040_v60, %v1041_v63 }
  0x59   : > { %708 = vmatmul.f32.vlgmr.msra.gmra.mxu2 %v3855_v25  ;;  %664 = vmatpush.msra.mxu1 %v663_v39 }
  0x5a   : > { %818 = vmatpush.msrb.mxu2 %v3823_v11  ;;  %851 = vmatpush.msrb.mxu3 %v850_v42  ;;  %v868_v57 = vand.u32 4294901760, %v867_v53  ;;  %v1043_v6 = vand.u32 4294901760, %v1042_v2 }
  0x5b   : > { %670 = vmatpush.msra.mxu1 %v669_v45  ;;  %758 = vmatpush.msrb.mxu0 %v661_v24 }
  0x5c   : > { %820 = vmatpush.msrb.mxu2 %v3846_v20  ;;  %857 = vmatpush.msrb.mxu3 %v856_v48 }
  0x5d   : > { %676 = vmatpush.msra.mxu1 %v675_v50  ;;  %762 = vmatpush.msrb.mxu0 %v667_v26  ;;  %v3387_v26 = vld [vmem:[%s4187_s4] ss:$0 sm:$0xff] }
  0x5e   : > { %822 = vmatpush.msrb.mxu2 %v3851_v22  ;;  %678 = vmatmul.f32.vlgmr.msra.gmra.mxu1 %v3838_v17 }
  0x5f   : > { %785 = vmatpush.msrb.mxu1 %v3807_v3  ;;  %863 = vmatpush.msrb.mxu3 %v862_v54  ;;  %v1053_v3 = vand.u32 4294901760, %v1052_v0  ;;  %v3388_v54 = vld [vmem:[%s4189_s6] ss:$0 sm:$0xff] }
  0x60   : > { %824 = vmatpush.msrb.mxu2 %v3864_v30  ;;  %766 = vmatpush.msrb.mxu0 %v673_v27 }
  0x61   : > { %830 = vmatmul.f32.vlgmr.msrb.gmra.mxu2 %v3886_v46  ;;  %787 = vmatpush.msrb.mxu1 %v3809_v4  ;;  %v1048_v4 = vsub.f32 %v1046_v62, %v1047_v1  ;;  %v1054_v8 = vsub.f32 %v1052_v0, %v1053_v3 }
  0x62   : > { %869 = vmatpush.msrb.mxu3 %v868_v57  ;;  %947 = vmatpush.msra.mxu2 %v848_v28 }
  0x63   : > { %789 = vmatpush.msrb.mxu1 %v3811_v5  ;;  %768 = vmatmul.f32.vlgmr.msrb.gmra.mxu0 %v3838_v17  ;;  %v990_v5 = vld [vmem:[%s4188_s5] sm:$0xff] }
  0x64   : > { %871 = vmatmul.f32.vlgmr.msrb.gmra.mxu3 %v3838_v17  ;;  %889 = vmatpush.msra.mxu0 %v3849_v21  ;;  %v1016_v7 = vand.u32 4294901760, %v990_v5 }
  0x65   : > { %791 = vmatpush.msrb.mxu1 %v3820_v9  ;;  %951 = vmatpush.msra.mxu2 %v854_v36  ;;  %v1049_v9 = vand.u32 4294901760, %v1048_v4 }
  0x66   : > { %978 = vmatpush.msra.mxu3 %v3823_v11  ;;  %793 = vmatmul.f32.vlgmr.msrb.gmra.mxu1 %v3838_v17  ;;  %v1058_v10 = vsub.f32 %v990_v5, %v1016_v7 }
  0x67   : > { %892 = vmatpush.msra.mxu0 %v3862_v29  ;;  %918 = vmatpush.msra.mxu1 %v3823_v11  ;;  %v1055_v11 = vand.u32 4294901760, %v1054_v8 }
  0x68   : > { %955 = vmatpush.msra.mxu2 %v860_v44  ;;  %980 = vmatpush.msra.mxu3 %v3846_v20  ;;  %v1059_v12 = vand.u32 4294901760, %v1058_v10 }
  0x69   : > { %895 = vmatpush.msra.mxu0 %v3875_v37  ;;  %920 = vmatpush.msra.mxu1 %v3846_v20 }
  0x6a   : > { %959 = vmatpush.msra.mxu2 %v866_v51  ;;  %982 = vmatpush.msra.mxu3 %v3851_v22  ;;  %v1060_v13 = vsub.f32 %v1058_v10, %v1059_v12 }
  0x6b   : > { %961 = vmatmul.f32.vlgmr.msra.gmra.mxu2 %v3838_v17  ;;  %898 = vmatpush.msra.mxu0 %v865_v47 }
  0x6c   : > { %922 = vmatpush.msra.mxu1 %v3851_v22  ;;  %984 = vmatpush.msra.mxu3 %v3864_v30  ;;  %v1061_v14 = vand.u32 4294901760, %v1060_v13 }
  0x6d   : > { %901 = vmatmul.f32.vlgmr.msra.gmra.mxu0 %v3855_v25  ;;  %986 = vmatmul.f32.vlgmr.msra.gmra.mxu3 %v3838_v17 }
  0x6e   : > { %924 = vmatpush.msra.mxu1 %v3864_v30  ;;  %1082 = vmatpush.msrb.mxu2 %v1040_v60 }
  0x6f   : > { %928 = vmatmul.f32.vlgmr.msra.gmra.mxu1 %v3869_v34  ;;  %1011 = vmatpush.msrb.mxu0 %v3902_v56 }
  0x70   : > { %1085 = vmatpush.msrb.mxu2 %v1046_v62  ;;  %1111 = vmatpush.msrb.mxu3 %v3902_v56 }
  0x71   : > { %1013 = vmatpush.msrb.mxu0 %v3907_v58  ;;  %1044 = vmatpush.msrb.mxu1 %v1043_v6 }
  0x72   : > { %1088 = vmatpush.msrb.mxu2 %v1052_v0  ;;  %1113 = vmatpush.msrb.mxu3 %v3907_v58 }
  0x73   : > { %1015 = vmatpush.msrb.mxu0 %v3915_v61  ;;  %1050 = vmatpush.msrb.mxu1 %v1049_v9 }
  0x74   : > { %1091 = vmatpush.msrb.mxu2 %v1058_v10  ;;  %1115 = vmatpush.msrb.mxu3 %v3915_v61 }
  0x75   : > { %1094 = vmatmul.f32.vlgmr.msrb.gmra.mxu2 %v3855_v25  ;;  %1017 = vmatpush.msrb.mxu0 %v1016_v7 }
  0x76   : > { %1056 = vmatpush.msrb.mxu1 %v1055_v11  ;;  %1117 = vmatpush.msrb.mxu3 %v1016_v7 }
  0x77   : > { %1023 = vmatmul.f32.vlgmr.msrb.gmra.mxu0 %v3886_v46  ;;  %1121 = vmatmul.f32.vlgmr.msrb.gmra.mxu3 %v3869_v34 }
  0x78   : > { %1140 = vmatpush.msra.mxu0 %v1041_v63  ;;  %1062 = vmatpush.msrb.mxu1 %v1061_v14 }
  0x79   : > { %1064 = vmatmul.f32.vlgmr.msrb.gmra.mxu1 %v3838_v17 }
  0x7a   : > { %1144 = vmatpush.msra.mxu0 %v1047_v1  ;;  %1171 = vmatpush.msra.mxu1 %v3902_v56 }
  0x7c   : > { %1148 = vmatpush.msra.mxu0 %v1053_v3  ;;  %1173 = vmatpush.msra.mxu1 %v3907_v58 }
  0x7e   : > { %1152 = vmatpush.msra.mxu0 %v1059_v12  ;;  %1175 = vmatpush.msra.mxu1 %v3915_v61 }
  0x7f   : > { %1154 = vmatmul.f32.vlgmr.msra.gmra.mxu0 %v3838_v17 }
  0x80   : > { %1177 = vmatpush.msra.mxu1 %v1016_v7 }
  0x81   : > { %1179 = vmatmul.f32.vlgmr.msra.gmra.mxu1 %v3838_v17 }
  0xd3   : > { %v638_v16 = vpop.f32.mrf.mxu0 }
  0xd4   : > { %v639_v18 = vadd.f32 %v3386_v15, %v638_v16 }
  0xdb   : > { %v679_v19 = vpop.f32.mrf.mxu1  ;;  %v736_v22 = vpop.f32.mrf.mxu3 }
  0xdc   : > { %v709_v20 = vpop.f32.mrf.mxu2  ;;  %v680_v21 = vadd.f32 %v679_v19, %v639_v18 }
  0xde   : > { %v710_v23 = vadd.f32 %v709_v20, %v680_v21 }
  0xe0   : > { %v737_v24 = vadd.f32 %v736_v22, %v710_v23  ;;  %v769_v25 = vpop.f32.mrf.mxu0 }
  0xe2   : > { %v770_v27 = vadd.f32 %v769_v25, %v737_v24 }
  0xe3   : > { %v794_v28 = vpop.f32.mrf.mxu1 }
  0xe4   : > { %v831_v17 = vpop.f32.mrf.mxu2  ;;  %v795_v29 = vadd.f32 %v794_v28, %v770_v27 }
  0xe5   : > { %v832_v30 = vadd.f32 %v3387_v26, %v831_v17 }
  0xe6   : > { %v3963_v31 = vmul.f32 0.35355338, %v795_v29 }
  0xe7   : > { %v872_v32 = vpop.f32.mrf.mxu3 }
  0xe8   : > { %v1186_v33 = vsel %vm1184_vm1, %v3963_v31, 0  ;;  %v873_v34 = vadd.f32 %v872_v32, %v832_v30 }
  0xe9   : > { %v1208_v35 = vand.u32 4294901760, %v1186_v33 }
  0xea   : > { %v902_v36 = vpop.f32.mrf.mxu0 }
  0xeb   : > { %v1209_v37 = vsub.f32 %v1186_v33, %v1208_v35  ;;  %v903_v38 = vadd.f32 %v902_v36, %v873_v34 }
  0xec   : > { %v929_v39 = vpop.f32.mrf.mxu1 }
  0xed   : > { %v930_v40 = vadd.f32 %v929_v39, %v903_v38  ;;  %v1210_v43 = vand.u32 4294901760, %v1209_v37 }
  0xee   : > { %v962_v41 = vpop.f32.mrf.mxu2 }
  0xef   : > { %v963_v42 = vadd.f32 %v962_v41, %v930_v40  ;;  %v1211_v47 = vsub.f32 %v1209_v37, %v1210_v43 }
  0xf0   : > { %v987_v44 = vpop.f32.mrf.mxu3 }
  0xf1   : > { %v3967_v45 = vadd.f32 %v987_v44, %v963_v42  ;;  %v1212_v50 = vand.u32 4294901760, %v1211_v47 }
  0xf3   : > { %1500 = vrot.lane.b32.xlu1 %v3967_v45, %s3585_s22  ;;  %v1189_v46 = vsel %vm1184_vm1, %v3967_v45, 0 }
  0xf4   : > { %v1206_v48 = vand.u32 4294901760, %v1189_v46  ;;  %v1024_v55 = vpop.f32.mrf.mxu0 }
  0xf5   : > { %v1025_v56 = vadd.f32 %v3388_v54, %v1024_v55 }
  0xf6   : > { %1207 = vmatpush.xpose.msra.mxu2 %v1206_v48  ;;  %1283 = vmatpush.xpose.msrb.mxu1 %v1206_v48  ;;  %v1233_v49 = vsub.f32 %v1189_v46, %v1206_v48  ;;  %v1065_v57 = vpop.f32.mrf.mxu1 }
  0xf7   : > { %v1066_v59 = vadd.f32 %v1065_v57, %v1025_v56 }
  0xf8   : > { %1260 = vmatpush.xpose.msrb.mxu0 %v1233_v49  ;;  %v1234_v51 = vand.u32 4294901760, %v1233_v49  ;;  %v1095_v58 = vpop.f32.mrf.mxu2 }
  0xf9   : > { %1213 = vmatmul.f32.vlgmr.msra.gmra.mxu2 %v1212_v50  ;;  %1287 = vmatmul.f32.vlgmr.msrb.gmra.mxu1 %v1210_v43  ;;  %v1096_v61 = vadd.f32 %v1095_v58, %v1066_v59 }
  0xfa   : > { %1309 = vmatpush.xpose.msrb.mxu2 %v1234_v51  ;;  %v1235_v52 = vsub.f32 %v1233_v49, %v1234_v51  ;;  %v1122_v60 = vpop.f32.mrf.mxu3 }
  0xfb   : > { %1498 = vrot.lane.b32.xlu1 %v3963_v31, %s3585_s22  ;;  %1263 = vmatmul.f32.vlgmr.msrb.gmra.mxu0 %v1209_v37  ;;  %v1123_v63 = vadd.f32 %v1122_v60, %v1096_v61 }
  0xfc   : > { %v1236_v53 = vand.u32 4294901760, %v1235_v52  ;;  %v1155_v62 = vpop.f32.mrf.mxu0 }
  0xfd   : > { %v1156_v0 = vadd.f32 %v1155_v62, %v1123_v63 }
  0xfe   : > { %1237 = vmatpush.xpose.msra.mxu3 %v1236_v53  ;;  %v1180_v1 = vpop.f32.mrf.mxu1 }
  0xff   : > { %v3980_v2 = vadd.f32 %v1180_v1, %v1156_v0 }
 0x101   : > { %1239 = vmatmul.f32.vlgmr.msra.gmra.mxu3 %v1208_v35  ;;  %1311 = vmatmul.f32.vlgmr.msrb.gmra.mxu2 %v1208_v35  ;;  %v1366_v3 = vand.u32 4294901760, %v3980_v2 }
 0x102   : > { %1331 = vmatpush.xpose.msrb.mxu3 %v1206_v48 }
 0x103   : > { %1824 = vrot.lane.b32.xlu1 %v3967_v45, %s3586_s24  ;;  %v1393_v4 = vsub.f32 %v3980_v2, %v1366_v3  ;;  %1367 = vmatpush.msra.mxu0 %v1366_v3 }
 0x105   : > { %1420 = vmatpush.msra.mxu2 %v1393_v4  ;;  %v1394_v5 = vand.u32 4294901760, %v1393_v4 }
 0x106   : > { %1443 = vmatpush.msra.mxu3 %v1366_v3 }
 0x107   : > { %v1395_v6 = vsub.f32 %v1393_v4, %v1394_v5  ;;  %1469 = vmatpush.msrb.mxu0 %v1394_v5 }
 0x109   : > { %1333 = vmatmul.f32.vlgmr.msrb.gmra.mxu3 %v1208_v35  ;;  %v1396_v7 = vand.u32 4294901760, %v1395_v6 }
 0x10b   : > { %1397 = vmatpush.msra.mxu1 %v1396_v7 }
 0x10d   : > { %1491 = vmatpush.msrb.mxu1 %v1366_v3 }
 0x165   : > { %v1501_v8 = vpop.permute.xlu1 %1500 }
 0x166   : > { %v1504_v9 = vsel %vm1184_vm1, %v1501_v8, 0 }
 0x167   : > { %v1521_v10 = vand.u32 4294901760, %v1504_v9 }
 0x169   : > { %v1548_v11 = vsub.f32 %v1504_v9, %v1521_v10  ;;  %1522 = vmatpush.xpose.msrb.mxu2 %v1521_v10 }
 0x16b   : > { %v1549_v12 = vand.u32 4294901760, %v1548_v11 }
 0x16d   : > { %v1550_v13 = vsub.f32 %v1548_v11, %v1549_v12  ;;  %v1499_v33 = vpop.permute.xlu1 %1498 }
 0x16e   : > { %v1502_v35 = vsel %vm1184_vm1, %v1499_v33, 0 }
 0x16f   : > { %v1551_v14 = vand.u32 4294901760, %v1550_v13  ;;  %v1523_v36 = vand.u32 4294901760, %v1502_v35 }
 0x171   : > { %1552 = vmatpush.xpose.msrb.mxu3 %v1551_v14  ;;  %v1524_v39 = vsub.f32 %v1502_v35, %v1523_v36 }
 0x173   : > { %v1525_v43 = vand.u32 4294901760, %v1524_v39 }
 0x175   : > { %v1825_v40 = vpop.permute.xlu1 %1824  ;;  %v1526_v49 = vsub.f32 %v1524_v39, %v1525_v43 }
 0x176   : > { %v1288_v21 = vpop.f32.mrf.mxu1  ;;  %v1828_v44 = vsel %vm1184_vm1, %v1825_v40, 0 }
 0x177   : > { %v3992_v48 = vand.u32 4294901760, %v1828_v44  ;;  %v1527_v55 = vand.u32 4294901760, %v1526_v49 }
 0x178   : > { %v1264_v19 = vpop.f32.mrf.mxu0 }
 0x179   : > { %v3995_v53 = vsub.f32 %v1828_v44, %v3992_v48 }
 0x17b   : > { %v1873_v57 = vand.u32 4294901760, %v3995_v53 }
 0x17c   : > { %v1214_v15 = vpop.f32.mrf.mxu2 }
 0x17d   : > { %v1874_v60 = vsub.f32 %v3995_v53, %v1873_v57 }
 0x17f   : > { %v1875_v62 = vand.u32 4294901760, %v1874_v60 }
 0x184   : > { %v1240_v16 = vpop.f32.mrf.mxu3  ;;  %v1312_v23 = vpop.f32.mrf.mxu2 }
 0x185   : > { %v1241_v18 = vadd.f32 %v1240_v16, %v1214_v15 }
 0x187   : > { %v1265_v20 = vadd.f32 %v1264_v19, %v1241_v18 }
 0x189   : > { %v1289_v22 = vadd.f32 %v1288_v21, %v1265_v20 }
 0x18b   : > { %v1313_v24 = vadd.f32 %v1312_v23, %v1289_v22 }
 0x18c   : > { %v1334_v25 = vpop.f32.mrf.mxu3 }
 0x18d   : > { %v1335_v26 = vadd.f32 %v1334_v25, %v1313_v24 }
 0x18f   : > { %v1337_v27 = vsel %vm1184_vm1, %v1335_v26, -inf }
 0x190   : > { %1338 = vmax.xlane.f32.xlu0 %v1337_v27 }
 0x203   : > { %v1339_v28 = vpop.xlane.xlu0 %1338 }
 0x204   : > { %v1340_v17 = vsub.f32 %v1335_v26, %v1339_v28 }
 0x206   : > { %v1341_v29 = vmul.f32 1.442695, %v1340_v17 }
 0x208   : > { %3396 = vpow2.f32 %v1341_v29 }
 0x20e   : > { %v3397_v30 = vpop.eup %3396 }
 0x20f   : > { %v1343_v32 = vsel %vm1184_vm1, %v3397_v30, 0.0 }
 0x210   : > { %1344 = vadd.xlane.f32.xlu0 %v1343_v32 }
 0x224   : > { %1664 = vrot.lane.b32.xlu0 %v3980_v2, %s3585_s22 }
 0x283   : > { %v1345_v34 = vpop.xlane.xlu0 %1344 }
 0x284   : > { %3398 = vrcp.f32 %v1345_v34 }
 0x28a   : > { %v3399_v37 = vpop.eup %3398 }
 0x28b   : > { %v1347_v38 = vmul.f32 %v3399_v37, %v3397_v30 }
 0x28d   : > { %v1349_v41 = vsel %vm1184_vm1, %v1347_v38, 0 }
 0x28e   : > { %v1368_v42 = vand.u32 4294901760, %v1349_v41 }
 0x290   : > { %1399 = vmatmul.f32.vlgmr.msra.gmra.mxu1 %v1368_v42  ;;  %v1369_v46 = vsub.f32 %v1349_v41, %v1368_v42 }
 0x291   : > { %1598 = vmatpush.xpose.msra.mxu1 %v1521_v10 }
 0x292   : > { %1423 = vmatmul.f32.vlgmr.msra.gmra.mxu2 %v1369_v46  ;;  %v1370_v47 = vand.u32 4294901760, %v1369_v46 }
 0x293   : > { %1624 = vmatpush.xpose.msra.mxu2 %v1549_v12 }
 0x294   : > { %1447 = vmatmul.f32.vlgmr.msra.gmra.mxu3 %v1370_v47  ;;  %v1371_v50 = vsub.f32 %v1369_v46, %v1370_v47 }
 0x295   : > { %1646 = vmatpush.xpose.msra.mxu3 %v1521_v10 }
 0x296   : > { %v1665_v51 = vpop.permute.xlu0 %1664  ;;  %v1372_v52 = vand.u32 4294901760, %v1371_v50 }
 0x297   : > { %v1685_v54 = vand.u32 4294901760, %v1665_v51 }
 0x298   : > { %1373 = vmatmul.f32.vlgmr.msra.gmra.mxu0 %v1372_v52  ;;  %1493 = vmatmul.f32.vlgmr.msrb.gmra.mxu1 %v1368_v42 }
 0x299   : > { %v1712_v56 = vsub.f32 %v1665_v51, %v1685_v54  ;;  %1575 = vmatpush.xpose.msra.mxu0 %v1548_v11 }
 0x29a   : > { %1528 = vmatmul.f32.vlgmr.msrb.gmra.mxu2 %v1527_v55 }
 0x29b   : > { %v1713_v58 = vand.u32 4294901760, %v1712_v56  ;;  %1739 = vmatpush.msrb.mxu2 %v1712_v56 }
 0x29c   : > { %1554 = vmatmul.f32.vlgmr.msrb.gmra.mxu3 %v1523_v36 }
 0x29d   : > { %v1714_v59 = vsub.f32 %v1712_v56, %v1713_v58  ;;  %1762 = vmatpush.msrb.mxu3 %v1685_v54 }
 0x29f   : > { %v1715_v61 = vand.u32 4294901760, %v1714_v59 }
 0x2a0   : > { %1471 = vmatmul.f32.vlgmr.msrb.gmra.mxu0 %v1368_v42  ;;  %1602 = vmatmul.f32.vlgmr.msra.gmra.mxu1 %v1525_v43 }
 0x2a1   : > { %1686 = vmatpush.msrb.mxu0 %v1685_v54  ;;  %1716 = vmatpush.msrb.mxu1 %v1715_v61 }
 0x2a2   : > { %1626 = vmatmul.f32.vlgmr.msra.gmra.mxu2 %v1523_v36 }
 0x2a3   : > { %1810 = vmatpush.msra.mxu1 %v1685_v54  ;;  %1846 = vmatpush.xpose.msra.mxu2 %v3992_v48 }
 0x2a4   : > { %1648 = vmatmul.f32.vlgmr.msra.gmra.mxu3 %v1523_v36 }
 0x2a5   : > { %1876 = vmatpush.xpose.msra.mxu3 %v1875_v62 }
 0x2a8   : > { %1578 = vmatmul.f32.vlgmr.msra.gmra.mxu0 %v1524_v39 }
 0x2a9   : > { %1788 = vmatpush.msra.mxu0 %v1713_v58 }
 0x30d   : > { %v1400_v63 = vpop.f32.mrf.mxu1 }
 0x315   : > { %v1374_v0 = vpop.f32.mrf.mxu0  ;;  %v1424_v1 = vpop.f32.mrf.mxu2 }
 0x316   : > { %v1401_v3 = vadd.f32 %v1400_v63, %v1374_v0  ;;  %v1494_v7 = vpop.f32.mrf.mxu1 }
 0x317   : > { %v1448_v4 = vpop.f32.mrf.mxu3 }
 0x318   : > { %v1425_v5 = vadd.f32 %v1424_v1, %v1401_v3 }
 0x31a   : > { %v1449_v6 = vadd.f32 %v1448_v4, %v1425_v5 }
 0x31d   : > { %v1472_v8 = vpop.f32.mrf.mxu0  ;;  %v1529_v10 = vpop.f32.mrf.mxu2 }
 0x31e   : > { %v1473_v9 = vadd.f32 %v1472_v8, %v1449_v6  ;;  %v1603_v16 = vpop.f32.mrf.mxu1 }
 0x31f   : > { %v1555_v12 = vpop.f32.mrf.mxu3 }
 0x320   : > { %v1495_v11 = vadd.f32 %v1494_v7, %v1473_v9  ;;  %v1556_v13 = vadd.f32 %v1555_v12, %v1529_v10 }
 0x322   : > { %1497 = vst.msk [vmem:[#allocation2] sm:$0xff] %vm1184_vm1, %v1495_v11 }
 0x325   : > { %v1579_v14 = vpop.f32.mrf.mxu0  ;;  %v1627_v19 = vpop.f32.mrf.mxu2 }
 0x326   : > { %v1580_v15 = vadd.f32 %v1579_v14, %v1556_v13 }
 0x327   : > { %v1649_v21 = vpop.f32.mrf.mxu3 }
 0x328   : > { %v1604_v18 = vadd.f32 %v1603_v16, %v1580_v15 }
 0x32a   : > { %v1628_v20 = vadd.f32 %v1627_v19, %v1604_v18 }
 0x32c   : > { %v1650_v22 = vadd.f32 %v1649_v21, %v1628_v20 }
 0x32e   : > { %v1652_v23 = vsel %vm1184_vm1, %v1650_v22, -inf }
 0x32f   : > { %1653 = vmax.xlane.f32.xlu2 %v1652_v23 }
 0x3a2   : > { %v1654_v24 = vpop.xlane.xlu2 %1653 }
 0x3a3   : > { %v1655_v25 = vsub.f32 %v1650_v22, %v1654_v24 }
 0x3a5   : > { %v1656_v26 = vmul.f32 1.442695, %v1655_v25 }
 0x3a7   : > { %3400 = vpow2.f32 %v1656_v26 }
 0x3ad   : > { %v3401_v27 = vpop.eup %3400 }
 0x3ae   : > { %v1658_v28 = vsel %vm1184_vm1, %v3401_v27, 0.0 }
 0x3af   : > { %1659 = vadd.xlane.f32.xlu2 %v1658_v28 }
 0x3c7   : > { %1822 = vrot.lane.b32.xlu2 %v3963_v31, %s3586_s24 }
 0x3cf   : > { %1987 = vrot.lane.b32.xlu2 %v3980_v2, %s3586_s24  ;;  %s4240_s24 = sld [smem:[#allocation27_spill]] }
 0x3d5   : > { %s4241_s0 = smov %s4240_s24  ;;  %s3200_s21 = scalar_lea.hbm %s4240_s24, %s3307_s17 }
 0x3d6   : > { %s3204_s3 = sshll.u32 %s3200_s21, 4  ;;  %s3529_s29 = scalar_lea.hbm %s4241_s0, 16  ;;  %s3205_s3 = int_to_ptr.hbm [resolvable:$true] %s3204_s3 }
 0x3d7   : > { %2147 = vrot.lane.b32.xlu2 %v3967_v45, %s3587_s28 }
 0x3df   : > { %2145 = vrot.lane.b32.xlu2 %v3963_v31, %s3587_s28 }
 0x422   : > { %v1660_v17 = vpop.xlane.xlu2 %1659 }
 0x423   : > { %3402 = vrcp.f32 %v1660_v17 }
 0x429   : > { %v3403_v29 = vpop.eup %3402 }
 0x42a   : > { %v1662_v30 = vmul.f32 %v3403_v29, %v3401_v27  ;;  %v1823_v32 = vpop.permute.xlu2 %1822 }
 0x42b   : > { %v1826_v33 = vsel %vm1184_vm1, %v1823_v32, 0 }
 0x42c   : > { %v1847_v34 = vand.u32 4294901760, %v1826_v33  ;;  %v1668_v35 = vsel %vm1184_vm1, %v1662_v30, 0 }
 0x42d   : > { %v1687_v36 = vand.u32 4294901760, %v1668_v35 }
 0x42e   : > { %v1848_v37 = vsub.f32 %v1826_v33, %v1847_v34 }
 0x42f   : > { %1718 = vmatmul.f32.vlgmr.msrb.gmra.mxu1 %v1687_v36  ;;  %v1688_v38 = vsub.f32 %v1668_v35, %v1687_v36 }
 0x430   : > { %v1849_v39 = vand.u32 4294901760, %v1848_v37  ;;  %1922 = vmatpush.xpose.msrb.mxu1 %v3992_v48 }
 0x431   : > { %1742 = vmatmul.f32.vlgmr.msrb.gmra.mxu2 %v1688_v38  ;;  %v1689_v45 = vand.u32 4294901760, %v1688_v38 }
 0x432   : > { %1948 = vmatpush.xpose.msrb.mxu2 %v1873_v57  ;;  %v1988_v31 = vpop.permute.xlu2 %1987  ;;  %v1850_v40 = vsub.f32 %v1848_v37, %v1849_v39 }
 0x433   : > { %v2008_v41 = vand.u32 4294901760, %v1988_v31  ;;  %1766 = vmatmul.f32.vlgmr.msrb.gmra.mxu3 %v1689_v45  ;;  %v1690_v42 = vsub.f32 %v1688_v38, %v1689_v45 }
 0x434   : > { %1970 = vmatpush.xpose.msrb.mxu3 %v3992_v48  ;;  %v1851_v46 = vand.u32 4294901760, %v1850_v40 }
 0x435   : > { %v2035_v43 = vsub.f32 %v1988_v31, %v2008_v41  ;;  %v1691_v44 = vand.u32 4294901760, %v1690_v42 }
 0x437   : > { %v2036_v47 = vand.u32 4294901760, %v2035_v43  ;;  %1692 = vmatmul.f32.vlgmr.msrb.gmra.mxu0 %v1691_v44  ;;  %1812 = vmatmul.f32.vlgmr.msra.gmra.mxu1 %v1687_v36 }
 0x438   : > { %1899 = vmatpush.xpose.msrb.mxu0 %v3995_v53 }
 0x439   : > { %v2037_v49 = vsub.f32 %v2035_v43, %v2036_v47  ;;  %1852 = vmatmul.f32.vlgmr.msra.gmra.mxu2 %v1851_v46 }
 0x43a   : > { %2062 = vmatpush.msra.mxu2 %v2035_v43  ;;  %v2148_v50 = vpop.permute.xlu2 %2147 }
 0x43b   : > { %v2038_v51 = vand.u32 4294901760, %v2037_v49  ;;  %v2151_v52 = vsel %vm1184_vm1, %v2148_v50, 0  ;;  %1878 = vmatmul.f32.vlgmr.msra.gmra.mxu3 %v1847_v34 }
 0x43c   : > { %v4021_v54 = vand.u32 4294901760, %v2151_v52  ;;  %2085 = vmatpush.msra.mxu3 %v2008_v41 }
 0x43d   : > { %2039 = vmatpush.msra.mxu1 %v2038_v51 }
 0x43e   : > { %v4024_v48 = vsub.f32 %v2151_v52, %v4021_v54 }
 0x43f   : > { %1790 = vmatmul.f32.vlgmr.msra.gmra.mxu0 %v1687_v36  ;;  %1926 = vmatmul.f32.vlgmr.msrb.gmra.mxu1 %v1849_v39 }
 0x440   : > { %v2196_v55 = vand.u32 4294901760, %v4024_v48  ;;  %2009 = vmatpush.msra.mxu0 %v2008_v41  ;;  %2133 = vmatpush.msrb.mxu1 %v2008_v41 }
 0x441   : > { %1950 = vmatmul.f32.vlgmr.msrb.gmra.mxu2 %v1847_v34 }
 0x442   : > { %v2197_v53 = vsub.f32 %v4024_v48, %v2196_v55  ;;  %2169 = vmatpush.xpose.msrb.mxu2 %v4021_v54  ;;  %v2146_v23 = vpop.permute.xlu2 %2145 }
 0x443   : > { %1972 = vmatmul.f32.vlgmr.msrb.gmra.mxu3 %v1847_v34  ;;  %v2149_v25 = vsel %vm1184_vm1, %v2146_v23, 0 }
 0x444   : > { %v2198_v56 = vand.u32 4294901760, %v2197_v53  ;;  %v2170_v26 = vand.u32 4294901760, %v2149_v25 }
 0x446   : > { %2199 = vmatpush.xpose.msrb.mxu3 %v2198_v56  ;;  %v2171_v17 = vsub.f32 %v2149_v25, %v2170_v26 }
 0x447   : > { %1902 = vmatmul.f32.vlgmr.msrb.gmra.mxu0 %v1848_v37 }
 0x448   : > { %2111 = vmatpush.msrb.mxu0 %v2036_v47  ;;  %v2172_v32 = vand.u32 4294901760, %v2171_v17 }
 0x44a   : > { %v2173_v35 = vsub.f32 %v2171_v17, %v2172_v32 }
 0x44c   : > { %v2174_v39 = vand.u32 4294901760, %v2173_v35 }
 0x4ac   : > { %v1719_v57 = vpop.f32.mrf.mxu1 }
 0x4b4   : > { %v1693_v58 = vpop.f32.mrf.mxu0  ;;  %v1743_v59 = vpop.f32.mrf.mxu2 }
 0x4b5   : > { %v1720_v60 = vadd.f32 %v1719_v57, %v1693_v58  ;;  %v1813_v0 = vpop.f32.mrf.mxu1 }
 0x4b6   : > { %v1767_v61 = vpop.f32.mrf.mxu3 }
 0x4b7   : > { %v1744_v62 = vadd.f32 %v1743_v59, %v1720_v60 }
 0x4b9   : > { %v1768_v63 = vadd.f32 %v1767_v61, %v1744_v62 }
 0x4bc   : > { %v1791_v1 = vpop.f32.mrf.mxu0  ;;  %v1853_v4 = vpop.f32.mrf.mxu2 }
 0x4bd   : > { %v1792_v3 = vadd.f32 %v1791_v1, %v1768_v63  ;;  %v1927_v10 = vpop.f32.mrf.mxu1 }
 0x4be   : > { %v1879_v6 = vpop.f32.mrf.mxu3 }
 0x4bf   : > { %v1814_v5 = vadd.f32 %v1813_v0, %v1792_v3  ;;  %v1880_v7 = vadd.f32 %v1879_v6, %v1853_v4 }
 0x4c4   : > { %v1903_v8 = vpop.f32.mrf.mxu0  ;;  %v1951_v12 = vpop.f32.mrf.mxu2 }
 0x4c5   : > { %v1904_v9 = vadd.f32 %v1903_v8, %v1880_v7 }
 0x4c6   : > { %v1973_v14 = vpop.f32.mrf.mxu3 }
 0x4c7   : > { %v1928_v11 = vadd.f32 %v1927_v10, %v1904_v9 }
 0x4c9   : > { %v1952_v13 = vadd.f32 %v1951_v12, %v1928_v11 }
 0x4cb   : > { %v1974_v15 = vadd.f32 %v1973_v14, %v1952_v13 }
 0x4cd   : > { %v1976_v16 = vsel %vm1184_vm1, %v1974_v15, -inf }
 0x4ce   : > { %1977 = vmax.xlane.f32.xlu1 %v1976_v16 }
 0x541   : > { %v1978_v18 = vpop.xlane.xlu1 %1977 }
 0x542   : > { %v1979_v19 = vsub.f32 %v1974_v15, %v1978_v18 }
 0x544   : > { %v1980_v20 = vmul.f32 1.442695, %v1979_v19 }
 0x546   : > { %3404 = vpow2.f32 %v1980_v20 }
 0x54c   : > { %v3405_v21 = vpop.eup %3404 }
 0x54d   : > { %v1982_v22 = vsel %vm1184_vm1, %v3405_v21, 0.0 }
 0x54e   : > { %1983 = vadd.xlane.f32.xlu0 %v1982_v22 }
 0x562   : > { %1817 = vrot.lane.b32.xlu0 %v1814_v5, %s3588_s16 }
 0x5c1   : > { %v1984_v24 = vpop.xlane.xlu0 %1983 }
 0x5c2   : > { %3406 = vrcp.f32 %v1984_v24 }
 0x5c8   : > { %v3407_v27 = vpop.eup %3406 }
 0x5c9   : > { %v1986_v28 = vmul.f32 %v3407_v27, %v3405_v21 }
 0x5cb   : > { %v1991_v29 = vsel %vm1184_vm1, %v1986_v28, 0 }
 0x5cc   : > { %v2010_v30 = vand.u32 4294901760, %v1991_v29 }
 0x5ce   : > { %2041 = vmatmul.f32.vlgmr.msra.gmra.mxu1 %v2010_v30  ;;  %v2011_v33 = vsub.f32 %v1991_v29, %v2010_v30 }
 0x5cf   : > { %2245 = vmatpush.xpose.msra.mxu1 %v4021_v54 }
 0x5d0   : > { %2065 = vmatmul.f32.vlgmr.msra.gmra.mxu2 %v2011_v33  ;;  %v2012_v34 = vand.u32 4294901760, %v2011_v33 }
 0x5d1   : > { %2271 = vmatpush.xpose.msra.mxu2 %v2196_v55 }
 0x5d2   : > { %2089 = vmatmul.f32.vlgmr.msra.gmra.mxu3 %v2012_v34  ;;  %v2013_v36 = vsub.f32 %v2011_v33, %v2012_v34  ;;  %v2471_v33 = vld [vmem:[#allocation6 + $0x10] sm:$0xff] }
 0x5d3   : > { %2293 = vmatpush.xpose.msra.mxu3 %v4021_v54  ;;  %v2494_v35 = vand.u32 4294901760, %v2471_v33 }
 0x5d4   : > { %v1818_v37 = vpop.permute.xlu0 %1817  ;;  %v2014_v38 = vand.u32 4294901760, %v2013_v36  ;;  %v2470_v36 = vld [vmem:[#allocation6 + $0x8] sm:$0xff] }
 0x5d5   : > { %1821 = vst.msk [vmem:[#allocation2] sm:$0xff] %vm1820_vm2, %v1818_v37 }
 0x5d6   : > { %2015 = vmatmul.f32.vlgmr.msra.gmra.mxu0 %v2014_v38  ;;  %2135 = vmatmul.f32.vlgmr.msrb.gmra.mxu1 %v2010_v30  ;;  %v2528_v38 = vsub.f32 %v2471_v33, %v2494_v35 }
 0x5d7   : > { %2222 = vmatpush.xpose.msra.mxu0 %v4024_v48 }
 0x5d8   : > { %2175 = vmatmul.f32.vlgmr.msrb.gmra.mxu2 %v2174_v39  ;;  %v2496_v39 = vand.u32 4294901760, %v2470_v36 }
 0x5da   : > { %2201 = vmatmul.f32.vlgmr.msrb.gmra.mxu3 %v2170_v26 }
 0x5de   : > { %2113 = vmatmul.f32.vlgmr.msrb.gmra.mxu0 %v2010_v30  ;;  %2249 = vmatmul.f32.vlgmr.msra.gmra.mxu1 %v2172_v32  ;;  %v2472_v30 = vld [vmem:[#allocation6 + $0x18] sm:$0xff] }
 0x5df   : > { %v2492_v32 = vand.u32 4294901760, %v2472_v30 }
 0x5e0   : > { %2273 = vmatmul.f32.vlgmr.msra.gmra.mxu2 %v2170_v26 }
 0x5e1   : > { %v2522_v34 = vsub.f32 %v2472_v30, %v2492_v32 }
 0x5e2   : > { %2295 = vmatmul.f32.vlgmr.msra.gmra.mxu3 %v2170_v26 }
 0x5e3   : > { %v2523_v37 = vand.u32 4294901760, %v2522_v34 }
 0x5e6   : > { %2225 = vmatmul.f32.vlgmr.msra.gmra.mxu0 %v2171_v17 }
 0x64b   : > { %v2042_v45 = vpop.f32.mrf.mxu1 }
 0x653   : > { %v2016_v31 = vpop.f32.mrf.mxu0  ;;  %v2066_v40 = vpop.f32.mrf.mxu2 }
 0x654   : > { %v2043_v41 = vadd.f32 %v2042_v45, %v2016_v31  ;;  %v2136_v46 = vpop.f32.mrf.mxu1  ;;  %v2469_v45 = vld [vmem:[#allocation6] sm:$0xff]  ;;  %v2524_v31 = vsub.f32 %v2522_v34, %v2523_v37 }
 0x655   : > { %v2090_v42 = vpop.f32.mrf.mxu3 }
 0x656   : > { %v2067_v43 = vadd.f32 %v2066_v40, %v2043_v41  ;;  %v2529_v40 = vand.u32 4294901760, %v2528_v38  ;;  %v2534_v41 = vsub.f32 %v2470_v36, %v2496_v39  ;;  %v2709_v36 = vld [vmem:[#allocation8] sm:$0xff] }
 0x658   : > { %v2091_v44 = vadd.f32 %v2090_v42, %v2067_v43  ;;  %v2498_v42 = vand.u32 4294901760, %v2469_v45  ;;  %v2525_v43 = vand.u32 4294901760, %v2524_v31 }
 0x65b   : > { %v2114_v47 = vpop.f32.mrf.mxu0  ;;  %v2176_v50 = vpop.f32.mrf.mxu2 }
 0x65c   : > { %v2115_v49 = vadd.f32 %v2114_v47, %v2091_v44  ;;  %v2250_v53 = vpop.f32.mrf.mxu1  ;;  %v2530_v44 = vsub.f32 %v2528_v38, %v2529_v40  ;;  %v2540_v47 = vsub.f32 %v2469_v45, %v2498_v42  ;;  %v2737_v45 = vand.u32 4294901760, %v2709_v36 }
 0x65d   : > { %v2202_v52 = vpop.f32.mrf.mxu3 }
 0x65e   : > { %v2137_v51 = vadd.f32 %v2136_v46, %v2115_v49  ;;  %v2203_v54 = vadd.f32 %v2202_v52, %v2176_v50  ;;  %v2535_v46 = vand.u32 4294901760, %v2534_v41  ;;  %v2531_v49 = vand.u32 4294901760, %v2530_v44 }
 0x660   : > { %2140 = vrot.lane.b32.xlu0 %v2137_v51, %s3589_s19  ;;  %v2536_v50 = vsub.f32 %v2534_v41, %v2535_v46  ;;  %v2541_v51 = vand.u32 4294901760, %v2540_v47 }
 0x662   : > { %v2537_v52 = vand.u32 4294901760, %v2536_v50 }
 0x663   : > { %v2226_v48 = vpop.f32.mrf.mxu0  ;;  %v2274_v57 = vpop.f32.mrf.mxu2 }
 0x664   : > { %v2227_v55 = vadd.f32 %v2226_v48, %v2203_v54  ;;  %v2542_v54 = vsub.f32 %v2540_v47, %v2541_v51 }
 0x665   : > { %v2296_v59 = vpop.f32.mrf.mxu3 }
 0x666   : > { %v2251_v56 = vadd.f32 %v2250_v53, %v2227_v55  ;;  %v2543_v48 = vand.u32 4294901760, %v2542_v54 }
 0x668   : > { %v2275_v58 = vadd.f32 %v2274_v57, %v2251_v56 }
 0x66a   : > { %v2297_v60 = vadd.f32 %v2296_v59, %v2275_v58 }
 0x66c   : > { %v2299_v61 = vsel %vm1184_vm1, %v2297_v60, -inf }
 0x66d   : > { %2300 = vmax.xlane.f32.xlu2 %v2299_v61 }
 0x6d2   : > { %v2141_v62 = vpop.permute.xlu0 %2140 }
 0x6d3   : > { %2144 = vst.msk [vmem:[#allocation2] sm:$0xff] %vm2143_vm3, %v2141_v62  ;;  %v3389_v62 = vld [vmem:[%s4191_s8] ss:$0 sm:$0xff] }
 0x6e0   : > { %v2301_v63 = vpop.xlane.xlu2 %2300 }
 0x6e1   : > { %v2302_v0 = vsub.f32 %v2297_v60, %v2301_v63 }
 0x6e3   : > { %v2303_v1 = vmul.f32 1.442695, %v2302_v0 }
 0x6e5   : > { %3408 = vpow2.f32 %v2303_v1 }
 0x6eb   : > { %v3409_v3 = vpop.eup %3408 }
 0x6ec   : > { %v2305_v4 = vsel %vm1184_vm1, %v3409_v3, 0.0 }
 0x6ed   : > { %2306 = vadd.xlane.f32.xlu1 %v2305_v4 }
 0x706   : > { %2310 = vrot.lane.b32.xlu1 %v3980_v2, %s3587_s28 }
 0x760   : > { %v2307_v5 = vpop.xlane.xlu1 %2306 }
 0x761   : > { %3410 = vrcp.f32 %v2307_v5 }
 0x767   : > { %v3411_v6 = vpop.eup %3410 }
 0x768   : > { %v2309_v7 = vmul.f32 %v3411_v6, %v3409_v3 }
 0x76a   : > { %v2314_v8 = vsel %vm1184_vm1, %v2309_v7, 0 }
 0x76b   : > { %v2333_v9 = vand.u32 4294901760, %v2314_v8 }
 0x76d   : > { %v2334_v10 = vsub.f32 %v2314_v8, %v2333_v9 }
 0x76f   : > { %v2335_v11 = vand.u32 4294901760, %v2334_v10 }
 0x771   : > { %v2336_v12 = vsub.f32 %v2334_v10, %v2335_v11 }
 0x773   : > { %v2337_v15 = vand.u32 4294901760, %v2336_v12  ;;  %v3418_v12 = vld [vmem:[%s3788_s7] sm:$0xff]  ;;  %s3523_s7 = sshra.s32 %s3205_s3, 4  ;;  %s3524_s7 = int_to_ptr.hbm [resolvable:$true] %s3523_s7 }
 0x774   : > { %s3525_s17 = scalar_lea.hbm %s3524_s7, 8  ;;  %p3530_p12 = scmp.lt.s32.totalorder %s3524_s7, %s4241_s0 }
 0x775   : > { %p3526_p1 = scmp.ne.s32.totalorder %s3524_s7, %s3525_s17  ;;  %p3531_p7 = scmp.lt.s32.totalorder %s3529_s29, %s3525_s17 }
 0x777   : > { %p3527_p3 = pnand %p3526_p1, %p3751_p4  ;;  %p3532_p8 = por %p3531_p7, %p3530_p12 }
 0x778   : > { %v2311_v13 = vpop.permute.xlu1 %2310 }
 0x779   : > { %v2331_v14 = vand.u32 4294901760, %v2311_v13  ;;  %p3528_p5 = pneg %p3527_p3 }
 0x77b   : > { %v2358_v16 = vsub.f32 %v2311_v13, %v2331_v14  ;;  %2332 = vmatpush.msrb.mxu0 %v2331_v14  ;;  %2408 = vmatpush.msrb.mxu3 %v2331_v14  ;;  %p3533_p9 = pnand %p3532_p8, %p3528_p5 }
 0x77c   : > { %2338 = vmatmul.f32.vlgmr.msrb.gmra.mxu0 %v2337_v15  ;;  %2412 = vmatmul.f32.vlgmr.msrb.gmra.mxu3 %v2335_v11  ;;  %v3591_v15 = vmov 32.0  }
 0x77d   : > { %v2359_v18 = vand.u32 4294901760, %v2358_v16  ;;  %2385 = vmatpush.msrb.mxu2 %v2358_v16  ;;  %2526 = vmatpush.msra.mxu3 %v2525_v43  ;;  %3412 = vrcp.f32 %v3591_v15 }
 0x77e   : > { %2388 = vmatmul.f32.vlgmr.msrb.gmra.mxu2 %v2334_v10 }
 0x77f   : > { %v2360_v2 = vsub.f32 %v2358_v16, %v2359_v18  ;;  %2434 = vmatpush.msra.mxu0 %v2359_v18  ;;  %2493 = vmatpush.msra.mxu2 %v2492_v32 }
 0x780   : > { %2532 = vmatpush.msra.mxu3 %v2531_v49 }
 0x781   : > { %v2361_v19 = vand.u32 4294901760, %v2360_v2  ;;  %2564 = vmatpush.msrb.mxu0 %v2522_v34  ;;  %2495 = vmatpush.msra.mxu2 %v2494_v35 }
 0x782   : > { %2538 = vmatpush.msra.mxu3 %v2537_v52 }
 0x783   : > { %2362 = vmatpush.msrb.mxu1 %v2361_v19  ;;  %2567 = vmatpush.msrb.mxu0 %v2528_v38  ;;  %v3413_v16 = vpop.eup %3412 }
 0x784   : > { %2364 = vmatmul.f32.vlgmr.msrb.gmra.mxu1 %v2333_v9  ;;  %2436 = vmatmul.f32.vlgmr.msra.gmra.mxu0 %v2333_v9  ;;  %v2672_v18 = vmul.f32 32.0, %v3413_v16  ;;  %vm2676_vm5 = vweird.f32 %v3413_v16 }
 0x785   : > { %2456 = vmatpush.msra.mxu1 %v2331_v14  ;;  %2497 = vmatpush.msra.mxu2 %v2496_v39 }
 0x786   : > { %2570 = vmatpush.msrb.mxu0 %v2534_v41  ;;  %2544 = vmatpush.msra.mxu3 %v2543_v48  ;;  %v2673_v2 = vsub.f32 1.0, %v2672_v18  ;;  %v2909_v18 = vld [vmem:[%s4196_s13 + $0x20] sm:$0xff] }
 0x787   : > { %2593 = vmatpush.msrb.mxu1 %v2492_v32  ;;  %2499 = vmatpush.msra.mxu2 %v2498_v42 }
 0x788   : > { %2573 = vmatpush.msrb.mxu0 %v2540_v47  ;;  %2653 = vmatpush.msrb.mxu3 %v2492_v32  ;;  %v2674_v19 = vmul.f32 %v3413_v16, %v2673_v2  ;;  %v2710_v32 = vld [vmem:[#allocation8 + $0x8] sm:$0xff] }
 0x789   : > { %2595 = vmatpush.msrb.mxu1 %v2494_v35  ;;  %2622 = vmatpush.msrb.mxu2 %v2523_v37 }
 0x78a   : > { %2655 = vmatpush.msrb.mxu3 %v2494_v35  ;;  %v2735_v35 = vand.u32 4294901760, %v2710_v32 }
 0x78b   : > { %2597 = vmatpush.msrb.mxu1 %v2496_v39  ;;  %2626 = vmatpush.msrb.mxu2 %v2529_v40 }
 0x78c   : > { %2458 = vmatmul.f32.vlgmr.msra.gmra.mxu1 %v2333_v9  ;;  %2657 = vmatpush.msrb.mxu3 %v2496_v39  ;;  %v2773_v39 = vsub.f32 %v2710_v32, %v2735_v35 }
 0x78d   : > { %2599 = vmatpush.msrb.mxu1 %v2498_v42  ;;  %2630 = vmatpush.msrb.mxu2 %v2535_v46 }
 0x78e   : > { %2659 = vmatpush.msrb.mxu3 %v2498_v42  ;;  %v2774_v41 = vand.u32 4294901760, %v2773_v39  ;;  %v2779_v42 = vsub.f32 %v2709_v36, %v2737_v45 }
 0x78f   : > { %2634 = vmatpush.msrb.mxu2 %v2541_v51 }
 0x790   : > { %v2775_v44 = vsub.f32 %v2773_v39, %v2774_v41  ;;  %v2780_v46 = vand.u32 4294901760, %v2779_v42 }
 0x792   : > { %v2776_v47 = vand.u32 4294901760, %v2775_v44  ;;  %v2781_v49 = vsub.f32 %v2779_v42, %v2780_v46 }
 0x794   : > { %v2782_v50 = vand.u32 4294901760, %v2781_v49 }
 0x7f9   : > { %v2339_v20 = vpop.f32.mrf.mxu0 }
 0x7ff   : > { %v2413_v25 = vpop.f32.mrf.mxu3 }
 0x801   : > { %v2365_v21 = vpop.f32.mrf.mxu1  ;;  %v2389_v23 = vpop.f32.mrf.mxu2 }
 0x802   : > { %v2366_v22 = vadd.f32 %v2365_v21, %v2339_v20  ;;  %v2437_v27 = vpop.f32.mrf.mxu0  ;;  %v2675_v20 = vadd.f32 %v3413_v16, %v2674_v19 }
 0x804   : > { %v2390_v24 = vadd.f32 %v2389_v23, %v2366_v22  ;;  %v4047_v21 = vsel %vm2676_vm5, %v3413_v16, %v2675_v20 }
 0x806   : > { %v2414_v26 = vadd.f32 %v2413_v25, %v2390_v24 }
 0x808   : > { %v2438_v28 = vadd.f32 %v2437_v27, %v2414_v26  ;;  %v2712_v27 = vld [vmem:[#allocation8 + $0x18] sm:$0xff] }
 0x809   : > { %v2459_v17 = vpop.f32.mrf.mxu1 }
 0x80a   : > { %v2460_v29 = vadd.f32 %v2459_v17, %v2438_v28  ;;  %v2731_v28 = vand.u32 4294901760, %v2712_v27  ;;  %v2711_v17 = vld [vmem:[#allocation8 + $0x10] sm:$0xff] }
 0x80b   : > { %v2733_v30 = vand.u32 4294901760, %v2711_v17 }
 0x80c   : > { %2463 = vrot.lane.b32.xlu1 %v2460_v29, %s3590_s15  ;;  %v2761_v29 = vsub.f32 %v2712_v27, %v2731_v28  ;;  %2732 = vmatpush.msra.mxu0 %v2731_v28  ;;  %s4243_s15 = sld [smem:[#allocation26_spill]] }
 0x80d   : > { %v2767_v34 = vsub.f32 %v2711_v17, %v2733_v30  ;;  %v2907_v17 = vld [vmem:[%s4196_s13 + $0x10] sm:$0xff] }
 0x80e   : > { %v2762_v33 = vand.u32 4294901760, %v2761_v29  ;;  %2734 = vmatpush.msra.mxu0 %v2733_v30 }
 0x80f   : > { %v2768_v38 = vand.u32 4294901760, %v2767_v34 }
 0x810   : > { %v2763_v37 = vsub.f32 %v2761_v29, %v2762_v33  ;;  %2736 = vmatpush.msra.mxu0 %v2735_v35 }
 0x811   : > { %v2769_v40 = vsub.f32 %v2767_v34, %v2768_v38 }
 0x812   : > { %v2764_v31 = vand.u32 4294901760, %v2763_v37  ;;  %2738 = vmatpush.msra.mxu0 %v2737_v45 }
 0x813   : > { %v2770_v43 = vand.u32 4294901760, %v2769_v40 }
 0x814   : > { %2765 = vmatpush.msra.mxu1 %v2764_v31  ;;  %v2905_v31 = vld [vmem:[%s4196_s13] sm:$0xff] }
 0x816   : > { %2771 = vmatpush.msra.mxu1 %v2770_v43  ;;  %v2942_v43 = vand.u32 4294901760, %v2905_v31 }
 0x818   : > { %2777 = vmatpush.msra.mxu1 %v2776_v47  ;;  %v3004_v49 = vsub.f32 %v2905_v31, %v2942_v43 }
 0x81a   : > { %2783 = vmatpush.msra.mxu1 %v2782_v50 }
 0x87e   : > { %v2464_v55 = vpop.permute.xlu1 %2463 }
 0x87f   : > { %2467 = vst.msk [vmem:[#allocation2] sm:$0xff] %vm2466_vm4, %v2464_v55 }
 0x886   : > { %v2468_v53 = vld [vmem:[#allocation2] sm:$0xff] }
 0x887   : > { %v2478_v56 = vsel %vm608_vm0, %v2468_v53, 0 }
 0x888   : > { %v2500_v57 = vand.u32 4294901760, %v2478_v56 }
 0x88a   : > { %2546 = vmatmul.f32.vlgmr.msra.gmra.mxu3 %v2500_v57  ;;  %v2501_v58 = vsub.f32 %v2478_v56, %v2500_v57 }
 0x88b   : > { %2832 = vmatpush.msra.mxu3 %v2731_v28 }
 0x88c   : > { %2576 = vmatmul.f32.vlgmr.msrb.gmra.mxu0 %v2501_v58  ;;  %v2502_v59 = vand.u32 4294901760, %v2501_v58 }
 0x88d   : > { %2834 = vmatpush.msra.mxu3 %v2733_v30  ;;  %2861 = vmatpush.msrb.mxu0 %v2762_v33  ;;  %v2938_v33 = vand.u32 4294901760, %v2907_v17 }
 0x88e   : > { %2603 = vmatmul.f32.vlgmr.msrb.gmra.mxu1 %v2502_v59  ;;  %v2503_v60 = vsub.f32 %v2501_v58, %v2502_v59  ;;  %v3390_v59 = vld [vmem:[%s4192_s9] ss:$0 sm:$0xff] }
 0x88f   : > { %2836 = vmatpush.msra.mxu3 %v2735_v35  ;;  %2865 = vmatpush.msrb.mxu0 %v2768_v38  ;;  %v2992_v38 = vsub.f32 %v2907_v17, %v2938_v33 }
 0x890   : > { %v2504_v61 = vand.u32 4294901760, %v2503_v60  ;;  %2892 = vmatpush.msrb.mxu1 %v2731_v28 }
 0x891   : > { %2838 = vmatpush.msra.mxu3 %v2737_v45  ;;  %2869 = vmatpush.msrb.mxu0 %v2774_v41  ;;  %v2993_v41 = vand.u32 4294901760, %v2992_v38 }
 0x892   : > { %2505 = vmatmul.f32.vlgmr.msra.gmra.mxu2 %v2504_v61  ;;  %2661 = vmatmul.f32.vlgmr.msrb.gmra.mxu3 %v2500_v57 }
 0x893   : > { %2803 = vmatpush.msra.mxu2 %v2761_v29  ;;  %2873 = vmatpush.msrb.mxu0 %v2780_v46  ;;  %v2994_v46 = vsub.f32 %v2992_v38, %v2993_v41 }
 0x894   : > { %2894 = vmatpush.msrb.mxu1 %v2733_v30 }
 0x895   : > { %2806 = vmatpush.msra.mxu2 %v2767_v34 }
 0x896   : > { %2896 = vmatpush.msrb.mxu1 %v2735_v35  ;;  %v2906_v35 = vld [vmem:[%s4196_s13 + $0x8] sm:$0xff] }
 0x897   : > { %2809 = vmatpush.msra.mxu2 %v2773_v39  ;;  %v2940_v39 = vand.u32 4294901760, %v2906_v35 }
 0x898   : > { %2898 = vmatpush.msrb.mxu1 %v2737_v45 }
 0x899   : > { %2812 = vmatpush.msra.mxu2 %v2779_v42  ;;  %v2998_v42 = vsub.f32 %v2906_v35, %v2940_v39 }
 0x89a   : > { %2636 = vmatmul.f32.vlgmr.msrb.gmra.mxu2 %v2500_v57 }
 0x89b   : > { %v2999_v47 = vand.u32 4294901760, %v2998_v42 }
 0x909   : > { %v2577_v4 = vpop.f32.mrf.mxu0 }
 0x90b   : > { %v2604_v6 = vpop.f32.mrf.mxu1 }
 0x90d   : > { %v2547_v63 = vpop.f32.mrf.mxu3 }
 0x915   : > { %v2506_v0 = vpop.f32.mrf.mxu2  ;;  %v2662_v10 = vpop.f32.mrf.mxu3 }
 0x916   : > { %v2507_v1 = vadd.f32 %v3389_v62, %v2506_v0  ;;  %v3391_v62 = vld [vmem:[%s4193_s10] ss:$0 sm:$0xff] }
 0x918   : > { %v2548_v3 = vadd.f32 %v2547_v63, %v2507_v1 }
 0x91a   : > { %v2578_v5 = vadd.f32 %v2577_v4, %v2548_v3 }
 0x91c   : > { %v2605_v7 = vadd.f32 %v2604_v6, %v2578_v5 }
 0x91d   : > { %v2637_v8 = vpop.f32.mrf.mxu2 }
 0x91e   : > { %v2638_v9 = vadd.f32 %v2637_v8, %v2605_v7  ;;  %v2912_v8 = vld [vmem:[%s4196_s13 + $0x38] sm:$0xff] }
 0x920   : > { %v2663_v11 = vadd.f32 %v2662_v10, %v2638_v9  ;;  %v4070_v9 = vand.u32 4294901760, %v2912_v8  ;;  %v2911_v10 = vld [vmem:[%s4196_s13 + $0x30] sm:$0xff] }
 0x922   : > { %v2665_v13 = vadd.f32 %v3418_v12, %v2663_v11  ;;  %v4076_v11 = vsub.f32 %v2912_v8, %v4070_v9  ;;  %v4078_v12 = vand.u32 4294901760, %v2911_v10  ;;  %2929 = vmatpush.msrb.mxu2 %v4070_v9 }
 0x924   : > { %v2668_v14 = vsel %vm608_vm0, %v2665_v13, 0.0  ;;  %v4087_v15 = vsub.f32 %v2911_v10, %v4078_v12  ;;  %2931 = vmatpush.msrb.mxu2 %v4078_v12 }
 0x925   : > { %2669 = vadd.xlane.f32.xlu2 %v2668_v14  ;;  %v2963_v14 = vand.u32 4294901760, %v4076_v11 }
 0x926   : > { %v2969_v19 = vand.u32 4294901760, %v4087_v15 }
 0x927   : > { %v2964_v2 = vsub.f32 %v4076_v11, %v2963_v14 }
 0x998   : > { %v2670_v22 = vpop.xlane.xlu2 %2669 }
 0x999   : > { %v2678_v23 = vmul.f32 %v4047_v21, %v2670_v22  ;;  %v4102_v22 = vand.u32 4294901760, %v2909_v18 }
 0x99b   : > { %v4050_v24 = vsub.f32 %v2665_v13, %v2678_v23  ;;  %v2910_v13 = vld [vmem:[%s4196_s13 + $0x28] sm:$0xff]  ;;  %v2908_v23 = vld [vmem:[%s4196_s13 + $0x18] sm:$0xff]  ;;  %v2980_v27 = vsub.f32 %v2909_v18, %v4102_v22 }
 0x99c   : > { %v4089_v16 = vand.u32 4294901760, %v2910_v13  ;;  %v2936_v28 = vand.u32 4294901760, %v2908_v23 }
 0x99d   : > { %v2680_v25 = vmul.f32 %v4050_v24, %v4050_v24  ;;  %v2981_v32 = vand.u32 4294901760, %v2980_v27 }
 0x99e   : > { %v4100_v20 = vsub.f32 %v2910_v13, %v4089_v16  ;;  %2933 = vmatpush.msrb.mxu2 %v4089_v16  ;;  %v2986_v34 = vsub.f32 %v2908_v23, %v2936_v28 }
 0x99f   : > { %v2681_v26 = vsel %vm608_vm0, %v2680_v25, 0.0  ;;  %v2970_v25 = vsub.f32 %v4087_v15, %v2969_v19  ;;  %v2982_v37 = vsub.f32 %v2980_v27, %v2981_v32 }
 0x9a0   : > { %2682 = vadd.xlane.f32.xlu0 %v2681_v26  ;;  %v2975_v26 = vand.u32 4294901760, %v4100_v20  ;;  %2935 = vmatpush.msrb.mxu2 %v4102_v22  ;;  %v2987_v45 = vand.u32 4294901760, %v2986_v34 }
 0x9a1   : > { %v2971_v29 = vand.u32 4294901760, %v2970_v25  ;;  %v2983_v40 = vand.u32 4294901760, %v2982_v37 }
 0x9a2   : > { %v2976_v30 = vsub.f32 %v4100_v20, %v2975_v26  ;;  %2937 = vmatpush.msrb.mxu2 %v2936_v28  ;;  %v2988_v44 = vsub.f32 %v2986_v34, %v2987_v45 }
 0x9a4   : > { %v2977_v36 = vand.u32 4294901760, %v2976_v30  ;;  %2939 = vmatpush.msrb.mxu2 %v2938_v33  ;;  %v2989_v50 = vand.u32 4294901760, %v2988_v44 }
 0x9a6   : > { %2941 = vmatpush.msrb.mxu2 %v2940_v39 }
 0x9a8   : > { %2943 = vmatpush.msrb.mxu2 %v2942_v43 }
 0xa13   : > { %v2683_v51 = vpop.xlane.xlu0 %2682 }
 0xa14   : > { %v2684_v52 = vmul.f32 %v2683_v51, %v4047_v21  ;;  %v2995_v51 = vand.u32 4294901760, %v2994_v46 }
 0xa16   : > { %v2685_v54 = vadd.f32 1e-05, %v2684_v52  ;;  %v3000_v52 = vsub.f32 %v2998_v42, %v2999_v47 }
 0xa18   : > { %3414 = vrsqrt.f32 %v2685_v54  ;;  %vm2692_vm7 = vweird.f32 %v2685_v54 }
 0xa1e   : > { %v3415_v48 = vpop.eup %3414 }
 0xa1f   : > { %v2687_v55 = vmul.f32 %v3415_v48, %v2685_v54  ;;  %vm2693_vm6 = vweird.f32 %v3415_v48  ;;  %v3005_v54 = vand.u32 4294901760, %v3004_v49 }
 0xa20   : > { %vm2694_vm8 = vmor %vm2692_vm7, %vm2693_vm6 }
 0xa21   : > { %v2688_v53 = vmul.f32 %v3415_v48, %v2687_v55  ;;  %v3006_v55 = vsub.f32 %v3004_v49, %v3005_v54 }
 0xa23   : > { %v2689_v56 = vmul.f32 0.5, %v2688_v53  ;;  %v3007_v53 = vand.u32 4294901760, %v3006_v55 }
 0xa25   : > { %v2690_v57 = vsub.f32 1.5, %v2689_v56  ;;  %v3392_v56 = vld [vmem:[%s4195_s12] ss:$0 sm:$0xff] }
 0xa27   : > { %v2691_v58 = vmul.f32 %v3415_v48, %v2690_v57 }
 0xa29   : > { %v2695_v60 = vsel %vm2694_vm8, %v3415_v48, %v2691_v58  ;;  %v3001_v48 = vand.u32 4294901760, %v3000_v52 }
 0xa2a   : > { %v2696_v61 = vmul.f32 %v2695_v60, %v4050_v24  ;;  %v2965_v24 = vand.u32 4294901760, %v2964_v2 }
 0xa2c   : > { %v2700_v63 = vmul.f32 %v3390_v59, %v2696_v61  ;;  %2966 = vmatpush.msrb.mxu3 %v2965_v24 }
 0xa2e   : > { %v4063_v0 = vadd.f32 %v3391_v62, %v2700_v63  ;;  %2972 = vmatpush.msrb.mxu3 %v2971_v29 }
 0xa30   : > { %v2717_v1 = vsel %vm608_vm0, %v4063_v0, 0  ;;  %2978 = vmatpush.msrb.mxu3 %v2977_v36 }
 0xa31   : > { %v2739_v3 = vand.u32 4294901760, %v2717_v1 }
 0xa32   : > { %2984 = vmatpush.msrb.mxu3 %v2983_v40 }
 0xa33   : > { %2785 = vmatmul.f32.vlgmr.msra.gmra.mxu1 %v2739_v3  ;;  %v2740_v4 = vsub.f32 %v2717_v1, %v2739_v3 }
 0xa34   : > { %3061 = vmatpush.msra.mxu1 %v4070_v9  ;;  %2990 = vmatpush.msrb.mxu3 %v2989_v50 }
 0xa35   : > { %2815 = vmatmul.f32.vlgmr.msra.gmra.mxu2 %v2740_v4  ;;  %v2741_v5 = vand.u32 4294901760, %v2740_v4 }
 0xa36   : > { %3063 = vmatpush.msra.mxu1 %v4078_v12  ;;  %3094 = vmatpush.msra.mxu2 %v2963_v14  ;;  %v3393_v14 = vld [vmem:[%s4197_s14] ss:$0 sm:$0xff] }
 0xa37   : > { %2842 = vmatmul.f32.vlgmr.msra.gmra.mxu3 %v2741_v5  ;;  %v2742_v6 = vsub.f32 %v2740_v4, %v2741_v5 }
 0xa38   : > { %3065 = vmatpush.msra.mxu1 %v4089_v16  ;;  %3098 = vmatpush.msra.mxu2 %v2969_v19 }
 0xa39   : > { %v2743_v7 = vand.u32 4294901760, %v2742_v6  ;;  %2996 = vmatpush.msrb.mxu3 %v2995_v51 }
 0xa3a   : > { %3067 = vmatpush.msra.mxu1 %v4102_v22  ;;  %3102 = vmatpush.msra.mxu2 %v2975_v26 }
 0xa3b   : > { %2744 = vmatmul.f32.vlgmr.msra.gmra.mxu0 %v2743_v7  ;;  %2900 = vmatmul.f32.vlgmr.msrb.gmra.mxu1 %v2739_v3 }
 0xa3c   : > { %3024 = vmatpush.msra.mxu0 %v4076_v11  ;;  %3069 = vmatpush.msra.mxu1 %v2936_v28 }
 0xa3d   : > { %3002 = vmatpush.msrb.mxu3 %v3001_v48  ;;  %3106 = vmatpush.msra.mxu2 %v2981_v32 }
 0xa3e   : > { %3027 = vmatpush.msra.mxu0 %v4087_v15  ;;  %3071 = vmatpush.msra.mxu1 %v2938_v33 }
 0xa3f   : > { %3008 = vmatpush.msrb.mxu3 %v3007_v53  ;;  %3110 = vmatpush.msra.mxu2 %v2987_v45 }
 0xa40   : > { %3030 = vmatpush.msra.mxu0 %v4100_v20  ;;  %3073 = vmatpush.msra.mxu1 %v2940_v39 }
 0xa41   : > { %3137 = vmatpush.msra.mxu3 %v4070_v9  ;;  %3114 = vmatpush.msra.mxu2 %v2993_v41  ;;  %v3394_v41 = vld [vmem:[%s4239_s11] ss:$0 sm:$0xff] }
 0xa42   : > { %3033 = vmatpush.msra.mxu0 %v2980_v27  ;;  %3075 = vmatpush.msra.mxu1 %v2942_v43 }
 0xa43   : > { %2875 = vmatmul.f32.vlgmr.msrb.gmra.mxu0 %v2739_v3  ;;  %3139 = vmatpush.msra.mxu3 %v4078_v12 }
 0xa44   : > { %3036 = vmatpush.msra.mxu0 %v2986_v34  ;;  %3118 = vmatpush.msra.mxu2 %v2999_v47 }
 0xa45   : > { %3141 = vmatpush.msra.mxu3 %v4089_v16 }
 0xa46   : > { %3039 = vmatpush.msra.mxu0 %v2992_v38  ;;  %3122 = vmatpush.msra.mxu2 %v3005_v54 }
 0xa47   : > { %3143 = vmatpush.msra.mxu3 %v4102_v22 }
 0xa48   : > { %3042 = vmatpush.msra.mxu0 %v2998_v42 }
 0xa49   : > { %3145 = vmatpush.msra.mxu3 %v2936_v28 }
 0xa4a   : > { %3045 = vmatpush.msra.mxu0 %v3004_v49 }
 0xa4b   : > { %3147 = vmatpush.msra.mxu3 %v2938_v33 }
 0xa4d   : > { %3149 = vmatpush.msra.mxu3 %v2940_v39 }
 0xa4f   : > { %3151 = vmatpush.msra.mxu3 %v2942_v43  ;;  %v3395_v43 = vld [vmem:[%s4243_s15] ss:$0 sm:$0xff] }
 0xab0   : > { %v2786_v57 = vpop.f32.mrf.mxu1 }
 0xab8   : > { %v2745_v58 = vpop.f32.mrf.mxu0  ;;  %v2816_v61 = vpop.f32.mrf.mxu2 }
 0xab9   : > { %v2746_v59 = vadd.f32 %v3392_v56, %v2745_v58  ;;  %v2901_v5 = vpop.f32.mrf.mxu1 }
 0xaba   : > { %v2843_v63 = vpop.f32.mrf.mxu3 }
 0xabb   : > { %v2787_v60 = vadd.f32 %v2786_v57, %v2746_v59 }
 0xabd   : > { %v2817_v62 = vadd.f32 %v2816_v61, %v2787_v60 }
 0xabf   : > { %v2844_v1 = vadd.f32 %v2843_v63, %v2817_v62 }
 0xac0   : > { %v2876_v3 = vpop.f32.mrf.mxu0 }
 0xac1   : > { %v2877_v4 = vadd.f32 %v2876_v3, %v2844_v1 }
 0xac3   : > { %v2902_v6 = vadd.f32 %v2901_v5, %v2877_v4 }
 0xac5   : > { %v2904_v7 = vmax.f32 %v2902_v6, 0.0 }
 0xac7   : > { %v2918_v8 = vsel %vm2916_vm9, %v2904_v7, 0 }
 0xac8   : > { %v2944_v9 = vand.u32 4294901760, %v2918_v8 }
 0xaca   : > { %v2945_v10 = vsub.f32 %v2918_v8, %v2944_v9  ;;  %3010 = vmatmul.f32.vlgmr.msrb.gmra.mxu3 %v2944_v9 }
 0xacc   : > { %3048 = vmatmul.f32.vlgmr.msra.gmra.mxu0 %v2945_v10  ;;  %v2946_v11 = vand.u32 4294901760, %v2945_v10 }
 0xace   : > { %3079 = vmatmul.f32.vlgmr.msra.gmra.mxu1 %v2946_v11  ;;  %v2947_v12 = vsub.f32 %v2945_v10, %v2946_v11 }
 0xad0   : > { %v2948_v13 = vand.u32 4294901760, %v2947_v12 }
 0xad2   : > { %2949 = vmatmul.f32.vlgmr.msrb.gmra.mxu2 %v2948_v13  ;;  %3153 = vmatmul.f32.vlgmr.msra.gmra.mxu3 %v2944_v9 }
 0xada   : > { %3124 = vmatmul.f32.vlgmr.msra.gmra.mxu2 %v2944_v9 }
 0xb49   : > { %v3049_v19 = vpop.f32.mrf.mxu0 }
 0xb4b   : > { %v3080_v22 = vpop.f32.mrf.mxu1 }
 0xb4d   : > { %v3011_v15 = vpop.f32.mrf.mxu3 }
 0xb55   : > { %v2950_v16 = vpop.f32.mrf.mxu2  ;;  %v3154_v26 = vpop.f32.mrf.mxu3 }
 0xb56   : > { %v2951_v18 = vadd.f32 %v3393_v14, %v2950_v16 }
 0xb58   : > { %v3012_v2 = vadd.f32 %v3011_v15, %v2951_v18 }
 0xb5a   : > { %v3050_v20 = vadd.f32 %v3049_v19, %v3012_v2 }
 0xb5c   : > { %v3081_v23 = vadd.f32 %v3080_v22, %v3050_v20 }
 0xb5d   : > { %v3125_v24 = vpop.f32.mrf.mxu2 }
 0xb5e   : > { %v3126_v25 = vadd.f32 %v3125_v24, %v3081_v23 }
 0xb60   : > { %v3155_v27 = vadd.f32 %v3154_v26, %v3126_v25 }
 0xb62   : > { %v3157_v28 = vadd.f32 %v3155_v27, %v4063_v0 }
 0xb64   : > { %v3158_v17 = vsel %vm608_vm0, %v3157_v28, 0.0 }
 0xb65   : > { %3159 = vadd.xlane.f32.xlu1 %v3158_v17 }
 0xbd8   : > { %v3160_v29 = vpop.xlane.xlu1 %3159 }
 0xbd9   : > { %v3161_v30 = vmul.f32 %v3160_v29, %v4047_v21 }
 0xbdb   : > { %v3162_v32 = vsub.f32 %v3157_v28, %v3161_v30 }
 0xbdd   : > { %v3163_v33 = vmul.f32 %v3162_v32, %v3162_v32 }
 0xbdf   : > { %v3164_v34 = vsel %vm608_vm0, %v3163_v33, 0.0 }
 0xbe0   : > { %3165 = vadd.xlane.f32.xlu2 %v3164_v34 }
 0xc53   : > { %v3166_v35 = vpop.xlane.xlu2 %3165 }
 0xc54   : > { %v3167_v36 = vmul.f32 %v3166_v35, %v4047_v21 }
 0xc56   : > { %v3168_v37 = vadd.f32 1e-05, %v3167_v36 }
 0xc58   : > { %3416 = vrsqrt.f32 %v3168_v37  ;;  %vm3175_vm11 = vweird.f32 %v3168_v37 }
 0xc5e   : > { %v3417_v38 = vpop.eup %3416 }
 0xc5f   : > { %v3170_v0 = vmul.f32 %v3417_v38, %v3168_v37  ;;  %vm3176_vm10 = vweird.f32 %v3417_v38 }
 0xc60   : > { %vm3177_vm12 = vmor %vm3175_vm11, %vm3176_vm10 }
 0xc61   : > { %v3171_v39 = vmul.f32 %v3417_v38, %v3170_v0 }
 0xc63   : > { %v3172_v45 = vmul.f32 0.5, %v3171_v39 }
 0xc65   : > { %v3173_v31 = vsub.f32 1.5, %v3172_v45 }
 0xc67   : > { %v3174_v40 = vmul.f32 %v3417_v38, %v3173_v31 }
 0xc69   : > { %v3178_v21 = vsel %vm3177_vm12, %v3417_v38, %v3174_v40 }
 0xc6a   : > { %v3179_v42 = vmul.f32 %v3178_v21, %v3162_v32 }
 0xc6c   : > { %v3183_v44 = vmul.f32 %v3394_v41, %v3179_v42 }
 0xc6e   : > { %v3187_v46 = vadd.f32 %v3395_v43, %v3183_v44 }
 0xc70   : > { %3188 = vst.msk [vmem:[%s598_s30] sm:$0xff] %vm608_vm0, %v3187_v46 }
 0xc71   : > { %3536 = shalt.err (!%p3533_p9)
}
 0xc72   : > { %3320 = dma.vmem_to_hbm [thread:$0]  (%p3751_p4), %s3203_s2, 128, %s3205_s3, %s3190_s26  }
 0xc73 PF: > { %s4244_s1 = sld [smem:[#allocation13_spill]]  ;;  %p4246_p10 = scmp.ge.s32.totalorder %s3579_s27, 2 }
 0xc75   : > { %p3334_p13 = pnand %p4246_p10, %p3755_p6 }
 0xc77   : > { %p3335_p11 = pneg %p3334_p13 }
 0xc79   : > { %s3216_s16 = sand.u32 1, %s4244_s1  }
 0xc7a   : > { %s3217_s19 = scalar_lea.sflag [#allocation5], %s3216_s16 }
 0xc7b   : > { %3562 = dma.done.wait (%p3335_p11), %s3217_s19, 128  }
 0xc7c   : > { %3564 = vsyncadd (%p3335_p11), %s3217_s19, 4294967168  ;;  %s4247_s27 = sld [smem:[#allocation15_spill]]  ;;  %s4250_s24 = smov %s3571_s25 }
 0xc7d   : > { %s4248_s15 = sld [smem:[#allocation14_spill]] }
 0xc7e   : > { %s4249_s26 = sld [smem:[#allocation16_spill]] }
 0xc82   : > { %p31_p0 = scmp.ge.s32.totalorder %s4247_s27, 4  }
 0xc83   : > { %s4251_s25 = smov %s4248_s15 }
 0xc84   :  { %33 = sbr.rel (!%p31_p0) target bundleno = 16 (0x10), region = 141 }
 0xc89   :  { %3223 = vsyncpa [#allocation4], 1 }
 0xc8a   :  { %3225 = vsyncpa [#allocation4 + $0x1], 1 }
 0xc8b   :  { %3226 = vsyncpa [#allocation7], 1 }
 0xc8c   :  { %3227 = vsyncpa [#allocation5], 1 }
 0xc8d   :  { %3229 = vsyncpa [#allocation5 + $0x1], 1 }

</bundles_post_ra>
